<compile_context>
chip_gen: v6e
topology: v6e:2x2x1
jax: 0.10.0
libtpu: 0.0.40
codegen_flags: <defaults>
</compile_context>

<pallas_src>
import jax
import jax.numpy as jnp
from jax.experimental import pallas as pl
from jax.experimental.pallas import tpu as pltpu

NEG_SLOPE = 0.01        # torch.nn.LeakyReLU default negative_slope
LN_EPS = 1e-5           # torch.nn.LayerNorm default eps
L2_EPS = 1e-12          # torch F.normalize eps
MAX_TILE_ROWS = 512     # token-tile rows: sweep 512-2048 on v5e/v6e; keeps
                        # double-buffered tiles well under ~24-32 MiB on v7x
                        # even for the embed_dim=96 production config.
VMEM_LIMIT_BYTES = 48 * 1024 * 1024   # above the default scoped VMEM on
                                      # v5e(16)/v6e(32)/v7x(32) MiB, below
                                      # physical on every generation.


def _leaky(x):
    return jnp.where(x >= 0, x, x * NEG_SLOPE)


def _layernorm(x, g, b):
    mu = jnp.mean(x, axis=-1, keepdims=True)
    var = jnp.mean(jnp.square(x - mu), axis=-1, keepdims=True)
    return (x - mu) * jax.lax.rsqrt(var + LN_EPS) * g + b


def _adapter_block(f, w1cat_ref, w2s_ref, w2c_ref):
    """Fused seg/cls ClipAdapters.

    First layers of both adapters are fused into ONE wide GEMM
    (x @ [seg_w1 | cls_w1]) producing a lane-dense (TN, 2Cb) intermediate.
    The second-layer GEMMs stay separate because each branch applies its own
    LeakyReLU AFTER fc2 (summing pre-activation would change semantics).
    """
    cb = w2s_ref.shape[0]
    h = _leaky(jnp.dot(f.astype(jnp.bfloat16), w1cat_ref[...],
                       preferred_element_type=jnp.float32))      # (TN, 2Cb)
    hb = h.astype(jnp.bfloat16)
    seg_r = _leaky(jnp.dot(hb[:, :cb], w2s_ref[...],
                           preferred_element_type=jnp.float32))  # (TN, C)
    cls_r = _leaky(jnp.dot(hb[:, cb:], w2c_ref[...],
                           preferred_element_type=jnp.float32))  # (TN, C)
    mixed = f * 0.6 + 0.2 * (seg_r + cls_r)
    return h, mixed


# ----------------------------- Pallas kernels -----------------------------

def _stage0_kernel(xp_ref, pew_ref, peb_ref, peg_ref, pebeta_ref,
                   w1_ref, w2s_ref, w2c_ref, inter_ref, feat_ref):
    # conv4x4/stride4 as patch-vector matmul + bias + LayerNorm, then the
    # fused seg/cls adapters + residual blend, all in one pass over tokens.
    x = xp_ref[...]                                               # (TN, P) f32
    y = jnp.dot(x.astype(jnp.bfloat16), pew_ref[...],
                preferred_element_type=jnp.float32) + peb_ref[...]
    f = _layernorm(y, peg_ref[...], pebeta_ref[...])              # (TN, C) f32
    h, mixed = _adapter_block(f, w1_ref, w2s_ref, w2c_ref)
    inter_ref[...] = h                                            # [seg_i|cls_i]
    feat_ref[...] = mixed


def _stage_kernel(xm_ref, mgg_ref, mgb_ref, mgw_ref,
                  w1_ref, w2s_ref, w2c_ref, inter_ref, feat_ref):
    # timm PatchMerging (LayerNorm(4C) -> Linear(4C,2C,bias=False)) fused
    # with the seg/cls adapters + residual blend: one HBM round trip per stage.
    x = xm_ref[...]                                               # (TN, 4Cp)
    xn = _layernorm(x, mgg_ref[...], mgb_ref[...])
    f = jnp.dot(xn.astype(jnp.bfloat16), mgw_ref[...],
                preferred_element_type=jnp.float32)               # (TN, 2Cp)
    h, mixed = _adapter_block(f, w1_ref, w2s_ref, w2c_ref)
    inter_ref[...] = h
    feat_ref[...] = mixed


def _head_kernel(x_ref, g_ref, b_ref, w_ref, bias_ref, o_ref):
    # token-mean -> LayerNorm -> Linear(bottleneck, text_dim) -> L2 normalize
    x = x_ref[...]                                                # (B, T, Cb)
    feat = jnp.mean(x, axis=1)                                    # (B, Cb)
    fn = _layernorm(feat, g_ref[...], b_ref[...])
    proj = jnp.dot(fn.astype(jnp.bfloat16), w_ref[...],
                   preferred_element_type=jnp.float32) + bias_ref[...]
    # rsqrt + eps: EUP path, and no NaN for an all-zero projection.
    o_ref[...] = proj * jax.lax.rsqrt(
        jnp.sum(proj * proj, axis=-1, keepdims=True) + L2_EPS)


# ----------------------------- pallas_call wrappers -----------------------------

def _tile_rows(n):
    if n <= MAX_TILE_ROWS:
        return n
    return max(8, (MAX_TILE_ROWS // 8) * 8)


def _rows_spec(tn, c):
    return pl.BlockSpec((tn, c), lambda i: (i, 0))


def _resident_spec(shape):
    zeros = (0,) * len(shape)
    return pl.BlockSpec(shape, lambda i, _z=zeros: _z)


def _nbytes(*arrs):
    return int(sum(a.size * a.dtype.itemsize for a in arrs))


def run_stage0(xp2d, pe, ad):
    N, P = xp2d.shape
    C = pe["w"].shape[1]
    Cb = ad["w2_seg"].shape[0]
    tn = _tile_rows(N)
    flops = 2 * N * (P * C + 4 * C * Cb)
    bytes_acc = 4 * N * (P + 2 * Cb + C) + _nbytes(pe["w"], ad["w1_cat"],
                                                   ad["w2_seg"], ad["w2_cls"])
    return pl.pallas_call(
        _stage0_kernel,
        grid=(pl.cdiv(N, tn),),
        in_specs=[_rows_spec(tn, P),
                  _resident_spec(pe["w"].shape), _resident_spec((1, C)),
                  _resident_spec((1, C)), _resident_spec((1, C)),
                  _resident_spec(ad["w1_cat"].shape),
                  _resident_spec(ad["w2_seg"].shape),
                  _resident_spec(ad["w2_cls"].shape)],
        out_specs=(_rows_spec(tn, 2 * Cb), _rows_spec(tn, C)),
        out_shape=(jax.ShapeDtypeStruct((N, 2 * Cb), jnp.float32),
                   jax.ShapeDtypeStruct((N, C), jnp.float32)),
        compiler_params=pltpu.CompilerParams(
            dimension_semantics=("parallel",),
            vmem_limit_bytes=VMEM_LIMIT_BYTES),
        cost_estimate=pl.CostEstimate(flops=int(flops), transcendentals=int(N),
                                      bytes_accessed=int(bytes_acc)),
    )(xp2d, pe["w"], pe["b"], pe["g"], pe["beta"],
      ad["w1_cat"], ad["w2_seg"], ad["w2_cls"])


def run_stage(xm2d, mg, ad):
    N, C4 = xm2d.shape
    C = mg["w"].shape[1]
    Cb = ad["w2_seg"].shape[0]
    tn = _tile_rows(N)
    flops = 2 * N * (C4 * C + 4 * C * Cb)
    bytes_acc = 4 * N * (C4 + 2 * Cb + C) + _nbytes(mg["w"], ad["w1_cat"],
                                                    ad["w2_seg"], ad["w2_cls"])
    return pl.pallas_call(
        _stage_kernel,
        grid=(pl.cdiv(N, tn),),
        in_specs=[_rows_spec(tn, C4),
                  _resident_spec((1, C4)), _resident_spec((1, C4)),
                  _resident_spec(mg["w"].shape),
                  _resident_spec(ad["w1_cat"].shape),
                  _resident_spec(ad["w2_seg"].shape),
                  _resident_spec(ad["w2_cls"].shape)],
        out_specs=(_rows_spec(tn, 2 * Cb), _rows_spec(tn, C)),
        out_shape=(jax.ShapeDtypeStruct((N, 2 * Cb), jnp.float32),
                   jax.ShapeDtypeStruct((N, C), jnp.float32)),
        compiler_params=pltpu.CompilerParams(
            dimension_semantics=("parallel",),
            vmem_limit_bytes=VMEM_LIMIT_BYTES),
        cost_estimate=pl.CostEstimate(flops=int(flops), transcendentals=int(N),
                                      bytes_accessed=int(bytes_acc)),
    )(xm2d, mg["g"], mg["beta"], mg["w"],
      ad["w1_cat"], ad["w2_seg"], ad["w2_cls"])


def project_head(cls_tokens, g, beta, w, b):
    B, T, Cb = cls_tokens.shape
    D = w.shape[1]
    return pl.pallas_call(
        _head_kernel,
        grid=(1,),
        in_specs=[pl.BlockSpec((B, T, Cb), lambda i: (0, 0, 0)),
                  _resident_spec((1, Cb)), _resident_spec((1, Cb)),
                  _resident_spec((Cb, D)), _resident_spec((1, D))],
        out_specs=_rows_spec(B, D),
        out_shape=jax.ShapeDtypeStruct((B, D), jnp.float32),
        compiler_params=pltpu.CompilerParams(
            vmem_limit_bytes=VMEM_LIMIT_BYTES),
    )(cls_tokens, g, beta, w, b)


# ----------------------------- JAX glue (reshape-only) -----------------------------

def patchify(x_nchw, patch=4):
    # 4x4/stride-4 patch extraction; pad the 48-wide patch vector up to a
    # multiple of 64 so the patch-embed contraction is lane-aligned.
    B, C, H, W = x_nchw.shape
    Hp, Wp = H // patch, W // patch
    x = x_nchw.reshape(B, C, Hp, patch, Wp, patch)
    x = x.transpose(0, 2, 4, 1, 3, 5)                   # (B, Hp, Wp, C, ph, pw)
    x = x.reshape(B, Hp, Wp, C * patch * patch)
    P = C * patch * patch
    P_pad = ((P + 63) // 64) * 64
    if P_pad != P:
        x = jnp.pad(x, ((0, 0), (0, 0), (0, 0), (0, P_pad - P)))
    return x


def merge_patches(x_nhwc):
    # timm PatchMerging concat order [x0, x1, x2, x3]
    x0 = x_nhwc[:, 0::2, 0::2, :]
    x1 = x_nhwc[:, 1::2, 0::2, :]
    x2 = x_nhwc[:, 0::2, 1::2, :]
    x3 = x_nhwc[:, 1::2, 1::2, :]
    return jnp.concatenate([x0, x1, x2, x3], axis=-1)   # (B, H/2, W/2, 4C)


# ----------------------------- parameters -----------------------------

def init_params(key, *, image_size=64, embed_dim=32, num_layers=4,
                in_chans=3, patch=4, text_dim=128):
    keys = iter(jax.random.split(key, 64))
    s = 0.02

    def w_init(shape):
        return (s * jax.random.normal(next(keys), shape)).astype(jnp.float32)

    P = in_chans * patch * patch
    P_pad = ((P + 63) // 64) * 64
    c_stages = [embed_dim * 2 ** i for i in range(num_layers)]

    pe_w = w_init((P, embed_dim))
    pe_w = jnp.pad(pe_w, ((0, P_pad - P), (0, 0))).astype(jnp.bfloat16)

    params = {
        "cfg": {"image_size": image_size, "patch": patch, "num_layers": num_layers,
                "embed_dim": embed_dim, "text_dim": text_dim},
        "patch_embed": {
            "w": pe_w,                                           # (P_pad, C) bf16
            "b": jnp.zeros((1, embed_dim), jnp.float32),
            "g": jnp.ones((1, embed_dim), jnp.float32),
            "beta": jnp.zeros((1, embed_dim), jnp.float32),
        },
        "merge": [],
        "adapters": [],
        "logit_scale": jnp.asarray(2.6592, jnp.float32),
    }
    for i in range(1, num_layers):
        cp = c_stages[i - 1]
        params["merge"].append({
            "g": jnp.ones((1, 4 * cp), jnp.float32),
            "beta": jnp.zeros((1, 4 * cp), jnp.float32),
            "w": w_init((4 * cp, 2 * cp)).astype(jnp.bfloat16),
        })
    for c in c_stages:
        cb = c // 2
        seg_w1 = w_init((c, cb))
        cls_w1 = w_init((c, cb))
        params["adapters"].append({
            # first layers of seg & cls adapters fused column-wise -> (C, 2Cb)
            "w1_cat": jnp.concatenate([seg_w1, cls_w1], axis=1).astype(jnp.bfloat16),
            "w2_seg": w_init((cb, c)).astype(jnp.bfloat16),
            "w2_cls": w_init((cb, c)).astype(jnp.bfloat16),
        })
    cb_last = c_stages[-1] // 2
    params["head"] = {
        "g": jnp.ones((1, cb_last), jnp.float32),
        "beta": jnp.zeros((1, cb_last), jnp.float32),
        "w": w_init((cb_last, text_dim)).astype(jnp.bfloat16),
        "b": jnp.zeros((1, text_dim), jnp.float32),
    }
    return params


# ----------------------------- forward -----------------------------

def clip_swin_implanted_forward(params, x_input_image):
    cfg = params["cfg"]
    xp = patchify(x_input_image, cfg["patch"])           # (B, Hp, Wp, P_pad)
    B, Hp, Wp, P = xp.shape

    seg_intermediates = []
    cls_intermediates = []

    # stage 0: patch-embed (+LN) fused with adapter mix
    inter, feat2d = run_stage0(xp.reshape(B * Hp * Wp, P),
                               params["patch_embed"], params["adapters"][0])
    C = feat2d.shape[-1]
    Cb = C // 2
    seg_intermediates.append(inter[:, :Cb].reshape(B, Hp * Wp, Cb))
    cls_intermediates.append(inter[:, Cb:].reshape(B, Hp * Wp, Cb))
    feat = feat2d.reshape(B, Hp, Wp, C)
    # TODO(synk): Swin window-attention / shifted-window / MLP blocks of
    # backbone.layers[i] are not in the provided reference source; each stage
    # here is downsampling-only with identical shape semantics.

    for i in range(1, cfg["num_layers"]):
        merged = merge_patches(feat)                     # (B, H/2, W/2, 4C)
        Bm, Hm, Wm, C4 = merged.shape
        inter, f2d = run_stage(merged.reshape(Bm * Hm * Wm, C4),
                               params["merge"][i - 1], params["adapters"][i])
        C = C4 // 2
        Cb = C // 2
        seg_intermediates.append(inter[:, :Cb].reshape(Bm, Hm * Wm, Cb))
        cls_intermediates.append(inter[:, Cb:].reshape(Bm, Hm * Wm, Cb))
        feat = f2d.reshape(Bm, Hm, Wm, C)

    last_cls = cls_intermediates[-1]                     # (B, T_last, Cb_last)
    hd = params["head"]
    projected_image_feat = project_head(last_cls, hd["g"], hd["beta"],
                                        hd["w"], hd["b"])
    return projected_image_feat, params["logit_scale"], seg_intermediates


# ----------------------------- demo -----------------------------

if __name__ == "__main__":
    key = jax.random.PRNGKey(0)
    k_param, k_img = jax.random.split(key)

    # Small, module-consistent shapes: B=2, NCHW image (2, 3, 64, 64),
    # embed_dim=32 -> stage dims [32, 64, 128, 256], text_embedding_dim=128.
    params = init_params(k_param, image_size=64, embed_dim=32, num_layers=4,
                         in_chans=3, patch=4, text_dim=128)
    x = jax.random.normal(k_img, (2, 3, 64, 64), dtype=jnp.float32)

    proj, logit_scale, seg_ints = clip_swin_implanted_forward(params, x)
    jax.block_until_ready(proj)
    jax.block_until_ready(seg_ints)

    assert proj.shape == (2, 128)
    assert [s.shape for s in seg_ints] == [(2, 256, 16), (2, 64, 32),
                                           (2, 16, 64), (2, 4, 128)]
    # projected features are L2-normalized
    assert bool(jnp.allclose(jnp.linalg.norm(proj, axis=-1), 1.0, atol=1e-3))
    print("KERNEL_OK")
</pallas_src>

<mosaic_0001>
module attributes {stable_mosaic.version = 11 : i64} {
  func.func @_stage0_kernel(%arg0: i32, %arg1: memref<512x64xf32, #tpu.memory_space<vmem>>, %arg2: memref<64x32xbf16, #tpu.memory_space<vmem>>, %arg3: memref<1x32xf32, #tpu.memory_space<vmem>>, %arg4: memref<1x32xf32, #tpu.memory_space<vmem>>, %arg5: memref<1x32xf32, #tpu.memory_space<vmem>>, %arg6: memref<32x32xbf16, #tpu.memory_space<vmem>>, %arg7: memref<16x32xbf16, #tpu.memory_space<vmem>>, %arg8: memref<16x32xbf16, #tpu.memory_space<vmem>>, %arg9: memref<512x32xf32, #tpu.memory_space<vmem>>, %arg10: memref<512x32xf32, #tpu.memory_space<vmem>>) attributes {dimension_semantics = [#tpu.dimension_semantics<parallel>], iteration_bounds = array<i64: 1>, scalar_prefetch = 0 : i64, scratch_operands = 0 : i64, tpu.core_type = #tpu.core_type<tc>, window_params = [{transform_indices = @transform_0, window_bounds = array<i64: 512, 64>}, {pipeline_mode = #tpu.pipeline_mode<synchronous>, transform_indices = @transform_1, window_bounds = array<i64: 64, 32>}, {pipeline_mode = #tpu.pipeline_mode<synchronous>, transform_indices = @transform_2, window_bounds = array<i64: 1, 32>}, {pipeline_mode = #tpu.pipeline_mode<synchronous>, transform_indices = @transform_3, window_bounds = array<i64: 1, 32>}, {pipeline_mode = #tpu.pipeline_mode<synchronous>, transform_indices = @transform_4, window_bounds = array<i64: 1, 32>}, {pipeline_mode = #tpu.pipeline_mode<synchronous>, transform_indices = @transform_5, window_bounds = array<i64: 32, 32>}, {pipeline_mode = #tpu.pipeline_mode<synchronous>, transform_indices = @transform_6, window_bounds = array<i64: 16, 32>}, {pipeline_mode = #tpu.pipeline_mode<synchronous>, transform_indices = @transform_7, window_bounds = array<i64: 16, 32>}, {transform_indices = @transform_8, window_bounds = array<i64: 512, 32>}, {transform_indices = @transform_9, window_bounds = array<i64: 512, 32>}]} {
    %c0 = arith.constant 0 : index
    %c0_0 = arith.constant 0 : index
    %0 = vector.load %arg1[%c0, %c0_0] : memref<512x64xf32, #tpu.memory_space<vmem>>, vector<512x64xf32>
    %1 = arith.truncf %0 : vector<512x64xf32> to vector<512x64xbf16>
    %c0_1 = arith.constant 0 : index
    %c0_2 = arith.constant 0 : index
    %2 = vector.load %arg2[%c0_1, %c0_2] : memref<64x32xbf16, #tpu.memory_space<vmem>>, vector<64x32xbf16>
    %cst = arith.constant dense<0.000000e+00> : vector<512x32xf32>
    %3 = tpu.matmul %1, %2, %cst {dimension_numbers = #tpu.dot_dimension_numbers<[1], [0], [0], [1], [0, 0, 1, 1], [], []>} : vector<512x64xbf16>, vector<64x32xbf16>, vector<512x32xf32> -> vector<512x32xf32>
    %c0_3 = arith.constant 0 : index
    %c0_4 = arith.constant 0 : index
    %4 = vector.load %arg3[%c0_3, %c0_4] : memref<1x32xf32, #tpu.memory_space<vmem>>, vector<1x32xf32>
    %5 = vector.broadcast %4 : vector<1x32xf32> to vector<512x32xf32>
    %6 = arith.addf %3, %5 : vector<512x32xf32>
    %c0_5 = arith.constant 0 : index
    %c0_6 = arith.constant 0 : index
    %7 = vector.load %arg4[%c0_5, %c0_6] : memref<1x32xf32, #tpu.memory_space<vmem>>, vector<1x32xf32>
    %c0_7 = arith.constant 0 : index
    %c0_8 = arith.constant 0 : index
    %8 = vector.load %arg5[%c0_7, %c0_8] : memref<1x32xf32, #tpu.memory_space<vmem>>, vector<1x32xf32>
    %cst_9 = arith.constant dense<0.000000e+00> : vector<512xf32>
    %9 = vector.multi_reduction <add>, %6, %cst_9 [1] : vector<512x32xf32> to vector<512xf32>
    %10 = vector.shape_cast %9 : vector<512xf32> to vector<512x1xf32>
    %cst_10 = arith.constant 3.200000e+01 : f32
    %11 = vector.broadcast %cst_10 : f32 to vector<512x1xf32>
    %12 = arith.divf %10, %11 : vector<512x1xf32>
    %13 = vector.broadcast %12 : vector<512x1xf32> to vector<512x32xf32>
    %14 = arith.subf %6, %13 : vector<512x32xf32>
    %15 = arith.mulf %14, %14 : vector<512x32xf32>
    %cst_11 = arith.constant dense<0.000000e+00> : vector<512xf32>
    %16 = vector.multi_reduction <add>, %15, %cst_11 [1] : vector<512x32xf32> to vector<512xf32>
    %17 = vector.shape_cast %16 : vector<512xf32> to vector<512x1xf32>
    %cst_12 = arith.constant 3.200000e+01 : f32
    %18 = vector.broadcast %cst_12 : f32 to vector<512x1xf32>
    %19 = arith.divf %17, %18 : vector<512x1xf32>
    %20 = vector.broadcast %12 : vector<512x1xf32> to vector<512x32xf32>
    %21 = arith.subf %6, %20 : vector<512x32xf32>
    %cst_13 = arith.constant 9.99999974E-6 : f32
    %22 = vector.broadcast %cst_13 : f32 to vector<512x1xf32>
    %23 = arith.addf %19, %22 : vector<512x1xf32>
    %24 = math.rsqrt %23 : vector<512x1xf32>
    %25 = vector.broadcast %24 : vector<512x1xf32> to vector<512x32xf32>
    %26 = arith.mulf %21, %25 : vector<512x32xf32>
    %27 = vector.broadcast %7 : vector<1x32xf32> to vector<512x32xf32>
    %28 = arith.mulf %26, %27 : vector<512x32xf32>
    %29 = vector.broadcast %8 : vector<1x32xf32> to vector<512x32xf32>
    %30 = arith.addf %28, %29 : vector<512x32xf32>
    %31 = arith.truncf %30 : vector<512x32xf32> to vector<512x32xbf16>
    %c0_14 = arith.constant 0 : index
    %c0_15 = arith.constant 0 : index
    %32 = vector.load %arg6[%c0_14, %c0_15] : memref<32x32xbf16, #tpu.memory_space<vmem>>, vector<32x32xbf16>
    %cst_16 = arith.constant dense<0.000000e+00> : vector<512x32xf32>
    %33 = tpu.matmul %31, %32, %cst_16 {dimension_numbers = #tpu.dot_dimension_numbers<[1], [0], [0], [1], [0, 0, 1, 1], [], []>} : vector<512x32xbf16>, vector<32x32xbf16>, vector<512x32xf32> -> vector<512x32xf32>
    %cst_17 = arith.constant 0.000000e+00 : f32
    %34 = vector.broadcast %cst_17 : f32 to vector<512x32xf32>
    %35 = arith.cmpf oge, %33, %34 : vector<512x32xf32>
    %cst_18 = arith.constant 0.00999999977 : f32
    %36 = vector.broadcast %cst_18 : f32 to vector<512x32xf32>
    %37 = arith.mulf %33, %36 : vector<512x32xf32>
    %38 = arith.select %35, %33, %37 : vector<512x32xi1>, vector<512x32xf32>
    %39 = arith.truncf %38 : vector<512x32xf32> to vector<512x32xbf16>
    %40 = vector.extract_strided_slice %39 {offsets = [0, 0], sizes = [512, 16], strides = [1, 1]} : vector<512x32xbf16> to vector<512x16xbf16>
    %c0_19 = arith.constant 0 : index
    %c0_20 = arith.constant 0 : index
    %41 = vector.load %arg7[%c0_19, %c0_20] : memref<16x32xbf16, #tpu.memory_space<vmem>>, vector<16x32xbf16>
    %cst_21 = arith.constant dense<0.000000e+00> : vector<512x32xf32>
    %42 = tpu.matmul %40, %41, %cst_21 {dimension_numbers = #tpu.dot_dimension_numbers<[1], [0], [0], [1], [0, 0, 1, 1], [], []>} : vector<512x16xbf16>, vector<16x32xbf16>, vector<512x32xf32> -> vector<512x32xf32>
    %cst_22 = arith.constant 0.000000e+00 : f32
    %43 = vector.broadcast %cst_22 : f32 to vector<512x32xf32>
    %44 = arith.cmpf oge, %42, %43 : vector<512x32xf32>
    %cst_23 = arith.constant 0.00999999977 : f32
    %45 = vector.broadcast %cst_23 : f32 to vector<512x32xf32>
    %46 = arith.mulf %42, %45 : vector<512x32xf32>
    %47 = arith.select %44, %42, %46 : vector<512x32xi1>, vector<512x32xf32>
    %48 = vector.extract_strided_slice %39 {offsets = [0, 16], sizes = [512, 16], strides = [1, 1]} : vector<512x32xbf16> to vector<512x16xbf16>
    %c0_24 = arith.constant 0 : index
    %c0_25 = arith.constant 0 : index
    %49 = vector.load %arg8[%c0_24, %c0_25] : memref<16x32xbf16, #tpu.memory_space<vmem>>, vector<16x32xbf16>
    %cst_26 = arith.constant dense<0.000000e+00> : vector<512x32xf32>
    %50 = tpu.matmul %48, %49, %cst_26 {dimension_numbers = #tpu.dot_dimension_numbers<[1], [0], [0], [1], [0, 0, 1, 1], [], []>} : vector<512x16xbf16>, vector<16x32xbf16>, vector<512x32xf32> -> vector<512x32xf32>
    %cst_27 = arith.constant 0.000000e+00 : f32
    %51 = vector.broadcast %cst_27 : f32 to vector<512x32xf32>
    %52 = arith.cmpf oge, %50, %51 : vector<512x32xf32>
    %cst_28 = arith.constant 0.00999999977 : f32
    %53 = vector.broadcast %cst_28 : f32 to vector<512x32xf32>
    %54 = arith.mulf %50, %53 : vector<512x32xf32>
    %55 = arith.select %52, %50, %54 : vector<512x32xi1>, vector<512x32xf32>
    %cst_29 = arith.constant 6.000000e-01 : f32
    %56 = vector.broadcast %cst_29 : f32 to vector<512x32xf32>
    %57 = arith.mulf %30, %56 : vector<512x32xf32>
    %58 = arith.addf %47, %55 : vector<512x32xf32>
    %cst_30 = arith.constant 2.000000e-01 : f32
    %59 = vector.broadcast %cst_30 : f32 to vector<512x32xf32>
    %60 = arith.mulf %59, %58 : vector<512x32xf32>
    %61 = arith.addf %57, %60 : vector<512x32xf32>
    %c0_31 = arith.constant 0 : index
    %c0_32 = arith.constant 0 : index
    %62 = vector.load %arg9[%c0_31, %c0_32] : memref<512x32xf32, #tpu.memory_space<vmem>>, vector<512x32xf32>
    tpu.vector_store %arg9[%c0_31, %c0_32], %38 {strides = array<i32>} : memref<512x32xf32, #tpu.memory_space<vmem>>, vector<512x32xf32>,
    %c0_33 = arith.constant 0 : index
    %c0_34 = arith.constant 0 : index
    %63 = vector.load %arg10[%c0_33, %c0_34] : memref<512x32xf32, #tpu.memory_space<vmem>>, vector<512x32xf32>
    tpu.vector_store %arg10[%c0_33, %c0_34], %61 {strides = array<i32>} : memref<512x32xf32, #tpu.memory_space<vmem>>, vector<512x32xf32>,
    return
  }
  func.func @transform_0(%arg0: i32) -> (i32, i32) {
    %c0_i32 = arith.constant 0 : i32
    %c0_i32_0 = arith.constant 0 : i32
    return %arg0, %c0_i32 : i32, i32
  }
  func.func @transform_1(%arg0: i32) -> (i32, i32) {
    %c0_i32 = arith.constant 0 : i32
    %c0_i32_0 = arith.constant 0 : i32
    %c0_i32_1 = arith.constant 0 : i32
    return %c0_i32, %c0_i32_0 : i32, i32
  }
  func.func @transform_2(%arg0: i32) -> (i32, i32) {
    %c0_i32 = arith.constant 0 : i32
    %c0_i32_0 = arith.constant 0 : i32
    %c0_i32_1 = arith.constant 0 : i32
    return %c0_i32, %c0_i32_0 : i32, i32
  }
  func.func @transform_3(%arg0: i32) -> (i32, i32) {
    %c0_i32 = arith.constant 0 : i32
    %c0_i32_0 = arith.constant 0 : i32
    %c0_i32_1 = arith.constant 0 : i32
    return %c0_i32, %c0_i32_0 : i32, i32
  }
  func.func @transform_4(%arg0: i32) -> (i32, i32) {
    %c0_i32 = arith.constant 0 : i32
    %c0_i32_0 = arith.constant 0 : i32
    %c0_i32_1 = arith.constant 0 : i32
    return %c0_i32, %c0_i32_0 : i32, i32
  }
  func.func @transform_5(%arg0: i32) -> (i32, i32) {
    %c0_i32 = arith.constant 0 : i32
    %c0_i32_0 = arith.constant 0 : i32
    %c0_i32_1 = arith.constant 0 : i32
    return %c0_i32, %c0_i32_0 : i32, i32
  }
  func.func @transform_6(%arg0: i32) -> (i32, i32) {
    %c0_i32 = arith.constant 0 : i32
    %c0_i32_0 = arith.constant 0 : i32
    %c0_i32_1 = arith.constant 0 : i32
    return %c0_i32, %c0_i32_0 : i32, i32
  }
  func.func @transform_7(%arg0: i32) -> (i32, i32) {
    %c0_i32 = arith.constant 0 : i32
    %c0_i32_0 = arith.constant 0 : i32
    %c0_i32_1 = arith.constant 0 : i32
    return %c0_i32, %c0_i32_0 : i32, i32
  }
  func.func @transform_8(%arg0: i32) -> (i32, i32) {
    %c0_i32 = arith.constant 0 : i32
    %c0_i32_0 = arith.constant 0 : i32
    return %arg0, %c0_i32 : i32, i32
  }
  func.func @transform_9(%arg0: i32) -> (i32, i32) {
    %c0_i32 = arith.constant 0 : i32
    %c0_i32_0 = arith.constant 0 : i32
    return %arg0, %c0_i32 : i32, i32
  }
}

</mosaic_0001>

<bundles_post_ra>
// kernel: tpu_custom_call.1
= control target key start
LH: loop header
LB: loop body
LE: loop exit
PB: predicated region body
PF: predicated region fallthrough
CT: control target
= control target key end

     0   :  { %vm167_vm0 = vcmask 523264   ;;  %vm555_vm1 = vcmask 261120   ;;  %vm2194_vm7 = vcmask 130048   ;;  %s4531_s10 = smov 112   ;;  %s7327_s1 = inlined_call_operand.vmem [shape: bf16[64,32], index: 1, kind: input, shape index: {}]   ;;  %s7328_s0 = inlined_call_operand.vmem [shape: f32[512,64], index: 0, kind: input, shape index: {}]   ;;  %s7329_s2 = inlined_call_operand.vmem [shape: f32[1,32], index: 2, kind: input, shape index: {}]   ;;  %s7330_s5 = inlined_call_operand.vmem [shape: bf16[32,32], index: 5, kind: input, shape index: {}]   ;;  %s7331_s3 = inlined_call_operand.vmem [shape: f32[1,32], index: 3, kind: input, shape index: {}]   ;;  %s7332_s4 = inlined_call_operand.vmem [shape: f32[1,32], index: 4, kind: input, shape index: {}]   ;;  %s7333_s6 = inlined_call_operand.vmem [shape: bf16[16,32], index: 6, kind: input, shape index: {}]   ;;  %s7334_s7 = inlined_call_operand.vmem [shape: bf16[16,32], index: 7, kind: input, shape index: {}]   ;;  %s7335_s8 = inlined_call_operand.vmem [shape: f32[512,32], index: 8, kind: output, shape index: {0}]   ;;  %s7336_s9 = inlined_call_operand.vmem [shape: f32[512,32], index: 9, kind: output, shape index: {1}]  }
   0x1   :  { %v4393_v0 = vld [vmem:[%s7327_s1 + $0x18] sm:$0xff]   ;;  %v4394_v1 = vld [vmem:[%s7327_s1 + $0x10] sm:$0xff]   ;;  %v4395_v2 = vld [vmem:[%s7327_s1 + $0x8] sm:$0xff]  }
   0x2   :  { %4120 = vmatprep.subr.bf16.mxu0 %v4393_v0  ;;  %v32_v3 = vld [vmem:[%s7328_s0] sm:$0xff]  ;;  %v33_v4 = vld [vmem:[%s7328_s0 + $0x8] sm:$0xff]  ;;  %v34_v7 = vld [vmem:[%s7328_s0 + $0x10] sm:$0xff] }
   0x3   :  { %4121 = vmatpush3.bf16.msra.mxu0 %v4393_v0  ;;  %v96_v5 = vpack.c.bf16 %v33_v4, %v32_v3  ;;  %v4396_v6 = vld [vmem:[%s7327_s1] sm:$0xff]   ;;  %v35_v8 = vld [vmem:[%s7328_s0 + $0x18] sm:$0xff]  ;;  %v37_v10 = vld [vmem:[%s7328_s0 + $0x28] sm:$0xff] }
   0x4   :  { %4122 = vmatprep.subr.bf16.mxu0 %v4394_v1  ;;  %v36_v9 = vld [vmem:[%s7328_s0 + $0x20] sm:$0xff]  ;;  %v97_v11 = vpack.c.bf16 %v35_v8, %v34_v7  ;;  %v38_v13 = vld [vmem:[%s7328_s0 + $0x30] sm:$0xff]  ;;  %v39_v14 = vld [vmem:[%s7328_s0 + $0x38] sm:$0xff] }
   0x5   :  { %4128 = vmatprep.mubr.msk.bf16.mxu0 %vm167_vm0, %v96_v5  ;;  %v98_v12 = vpack.c.bf16 %v37_v10, %v36_v9  ;;  %v40_v15 = vld [vmem:[%s7328_s0 + $0x40] sm:$0xff]  ;;  %v41_v16 = vld [vmem:[%s7328_s0 + $0x48] sm:$0xff]  ;;  %v99_v17 = vpack.c.bf16 %v39_v14, %v38_v13  ;;  %v42_v19 = vld [vmem:[%s7328_s0 + $0x50] sm:$0xff] }
   0x6   :  { %v100_v18 = vpack.c.bf16 %v41_v16, %v40_v15  ;;  %v43_v20 = vld [vmem:[%s7328_s0 + $0x58] sm:$0xff]  ;;  %v44_v21 = vld [vmem:[%s7328_s0 + $0x60] sm:$0xff]  ;;  %v45_v22 = vld [vmem:[%s7328_s0 + $0x68] sm:$0xff] }
   0x7   :  { %4123 = vmatpush3.bf16.msra.mxu0 %v4394_v1  ;;  %v101_v23 = vpack.c.bf16 %v43_v20, %v42_v19  ;;  %v102_v24 = vpack.c.bf16 %v45_v22, %v44_v21  ;;  %v46_v25 = vld [vmem:[%s7328_s0 + $0x70] sm:$0xff]  ;;  %v47_v26 = vld [vmem:[%s7328_s0 + $0x78] sm:$0xff]  ;;  %v48_v27 = vld [vmem:[%s7328_s0 + $0x80] sm:$0xff] }
   0x8   :  { %4124 = vmatprep.subr.bf16.mxu0 %v4395_v2  ;;  %v49_v28 = vld [vmem:[%s7328_s0 + $0x88] sm:$0xff]  ;;  %v103_v29 = vpack.c.bf16 %v47_v26, %v46_v25  ;;  %v50_v31 = vld [vmem:[%s7328_s0 + $0x90] sm:$0xff]  ;;  %v51_v32 = vld [vmem:[%s7328_s0 + $0x98] sm:$0xff] }
   0x9   :  { %v104_v30 = vpack.c.bf16 %v49_v28, %v48_v27  ;;  %v52_v33 = vld [vmem:[%s7328_s0 + $0xa0] sm:$0xff]  ;;  %v53_v34 = vld [vmem:[%s7328_s0 + $0xa8] sm:$0xff]  ;;  %v105_v35 = vpack.c.bf16 %v51_v32, %v50_v31  ;;  %v54_v37 = vld [vmem:[%s7328_s0 + $0xb0] sm:$0xff] }
   0xa   :  { %v106_v36 = vpack.c.bf16 %v53_v34, %v52_v33  ;;  %v55_v38 = vld [vmem:[%s7328_s0 + $0xb8] sm:$0xff]  ;;  %v56_v39 = vld [vmem:[%s7328_s0 + $0xc0] sm:$0xff]  ;;  %v57_v40 = vld [vmem:[%s7328_s0 + $0xc8] sm:$0xff] }
   0xb   :  { %4125 = vmatpush3.bf16.msra.mxu0 %v4395_v2  ;;  %v107_v41 = vpack.c.bf16 %v55_v38, %v54_v37  ;;  %v108_v42 = vpack.c.bf16 %v57_v40, %v56_v39  ;;  %v58_v43 = vld [vmem:[%s7328_s0 + $0xd0] sm:$0xff]  ;;  %v59_v44 = vld [vmem:[%s7328_s0 + $0xd8] sm:$0xff]  ;;  %v60_v45 = vld [vmem:[%s7328_s0 + $0xe0] sm:$0xff] }
   0xc   :  { %4126 = vmatprep.subr.bf16.mxu0 %v4396_v6  ;;  %v61_v46 = vld [vmem:[%s7328_s0 + $0xe8] sm:$0xff]  ;;  %v109_v47 = vpack.c.bf16 %v59_v44, %v58_v43  ;;  %v62_v49 = vld [vmem:[%s7328_s0 + $0xf0] sm:$0xff]  ;;  %v63_v50 = vld [vmem:[%s7328_s0 + $0xf8] sm:$0xff] }
   0xd   :  { %v110_v48 = vpack.c.bf16 %v61_v46, %v60_v45  ;;  %v64_v51 = vld [vmem:[%s7328_s0 + $0x100] sm:$0xff]  ;;  %v65_v52 = vld [vmem:[%s7328_s0 + $0x108] sm:$0xff]  ;;  %v111_v53 = vpack.c.bf16 %v63_v50, %v62_v49  ;;  %v66_v55 = vld [vmem:[%s7328_s0 + $0x110] sm:$0xff] }
   0xe   :  { %v112_v54 = vpack.c.bf16 %v65_v52, %v64_v51  ;;  %v67_v56 = vld [vmem:[%s7328_s0 + $0x118] sm:$0xff]  ;;  %v68_v57 = vld [vmem:[%s7328_s0 + $0x120] sm:$0xff]  ;;  %v69_v58 = vld [vmem:[%s7328_s0 + $0x128] sm:$0xff] }
   0xf   :  { %4127 = vmatpush3.bf16.msra.mxu0 %v4396_v6  ;;  %v113_v59 = vpack.c.bf16 %v67_v56, %v66_v55  ;;  %v114_v60 = vpack.c.bf16 %v69_v58, %v68_v57  ;;  %v70_v61 = vld [vmem:[%s7328_s0 + $0x130] sm:$0xff]  ;;  %v71_v62 = vld [vmem:[%s7328_s0 + $0x138] sm:$0xff]  ;;  %v72_v63 = vld [vmem:[%s7328_s0 + $0x140] sm:$0xff] }
  0x10   :  { %v73_v0 = vld [vmem:[%s7328_s0 + $0x148] sm:$0xff]  ;;  %v115_v1 = vpack.c.bf16 %v71_v62, %v70_v61  ;;  %v74_v3 = vld [vmem:[%s7328_s0 + $0x150] sm:$0xff]  ;;  %v75_v4 = vld [vmem:[%s7328_s0 + $0x158] sm:$0xff] }
  0x11   :  { %v116_v2 = vpack.c.bf16 %v73_v0, %v72_v63  ;;  %v76_v5 = vld [vmem:[%s7328_s0 + $0x160] sm:$0xff]  ;;  %v77_v6 = vld [vmem:[%s7328_s0 + $0x168] sm:$0xff]  ;;  %v117_v7 = vpack.c.bf16 %v75_v4, %v74_v3  ;;  %v78_v9 = vld [vmem:[%s7328_s0 + $0x170] sm:$0xff] }
  0x12   :  { %4129 = vmatmul.mubr.msk.bf16.vlgmr.msra.gmra.mxu0 %vm167_vm0, %v97_v11  ;;  %v118_v8 = vpack.c.bf16 %v77_v6, %v76_v5  ;;  %v79_v10 = vld [vmem:[%s7328_s0 + $0x178] sm:$0xff]  ;;  %v80_v11 = vld [vmem:[%s7328_s0 + $0x180] sm:$0xff]  ;;  %v82_v15 = vld [vmem:[%s7328_s0 + $0x190] sm:$0xff] }
  0x13   :  { %4132 = vmatprep.mubr.msk.bf16.mxu0 %vm167_vm0, %v98_v12  ;;  %v81_v12 = vld [vmem:[%s7328_s0 + $0x188] sm:$0xff]  ;;  %v119_v13 = vpack.c.bf16 %v79_v10, %v78_v9  ;;  %v83_v16 = vld [vmem:[%s7328_s0 + $0x198] sm:$0xff]  ;;  %v86_v21 = vld [vmem:[%s7328_s0 + $0x1b0] sm:$0xff] }
  0x14   :  { %v120_v14 = vpack.c.bf16 %v81_v12, %v80_v11  ;;  %v121_v19 = vpack.c.bf16 %v83_v16, %v82_v15  ;;  %v87_v22 = vld [vmem:[%s7328_s0 + $0x1b8] sm:$0xff]  ;;  %v90_v27 = vld [vmem:[%s7328_s0 + $0x1d0] sm:$0xff] }
  0x15   :  { %v123_v25 = vpack.c.bf16 %v87_v22, %v86_v21  ;;  %v91_v28 = vld [vmem:[%s7328_s0 + $0x1d8] sm:$0xff]  ;;  %v94_v33 = vld [vmem:[%s7328_s0 + $0x1f0] sm:$0xff] }
  0x16   :  { %v125_v31 = vpack.c.bf16 %v91_v28, %v90_v27  ;;  %v95_v34 = vld [vmem:[%s7328_s0 + $0x1f8] sm:$0xff] }
  0x1a   :  { %4133 = vmatmul.mubr.msk.bf16.gmra.mxu0 %vm167_vm0, %v99_v17  ;;  %v84_v17 = vld [vmem:[%s7328_s0 + $0x1a0] sm:$0xff] }
  0x1b   :  { %4136 = vmatprep.mubr.msk.bf16.mxu0 %vm167_vm0, %v100_v18  ;;  %v85_v18 = vld [vmem:[%s7328_s0 + $0x1a8] sm:$0xff] }
  0x1c   :  { %v122_v20 = vpack.c.bf16 %v85_v18, %v84_v17 }
  0x22   :  { %4137 = vmatmul.mubr.msk.bf16.gmra.mxu0 %vm167_vm0, %v101_v23  ;;  %v88_v23 = vld [vmem:[%s7328_s0 + $0x1c0] sm:$0xff] }
  0x23   :  { %4140 = vmatprep.mubr.msk.bf16.mxu0 %vm167_vm0, %v102_v24  ;;  %v89_v24 = vld [vmem:[%s7328_s0 + $0x1c8] sm:$0xff] }
  0x24   :  { %v124_v26 = vpack.c.bf16 %v89_v24, %v88_v23 }
  0x2a   :  { %4141 = vmatmul.mubr.msk.bf16.gmra.mxu0 %vm167_vm0, %v103_v29  ;;  %v92_v29 = vld [vmem:[%s7328_s0 + $0x1e0] sm:$0xff] }
  0x2b   :  { %4144 = vmatprep.mubr.msk.bf16.mxu0 %vm167_vm0, %v104_v30  ;;  %v93_v30 = vld [vmem:[%s7328_s0 + $0x1e8] sm:$0xff] }
  0x2c   :  { %v126_v32 = vpack.c.bf16 %v93_v30, %v92_v29 }
  0x32   :  { %4145 = vmatmul.mubr.msk.bf16.gmra.mxu0 %vm167_vm0, %v105_v35  ;;  %v127_v35 = vpack.c.bf16 %v95_v34, %v94_v33 }
  0x33   :  { %4148 = vmatprep.mubr.msk.bf16.mxu0 %vm167_vm0, %v106_v36  ;;  %v4821_v36 = vld [vmem:[%s7329_s2] ss:$0 sm:$0xff] }
  0x3a   :  { %4149 = vmatmul.mubr.msk.bf16.gmra.mxu0 %vm167_vm0, %v107_v41 }
  0x3b   :  { %4152 = vmatprep.mubr.msk.bf16.mxu0 %vm167_vm0, %v108_v42 }
  0x42   :  { %4153 = vmatmul.mubr.msk.bf16.gmra.mxu0 %vm167_vm0, %v109_v47 }
  0x43   :  { %4156 = vmatprep.mubr.msk.bf16.mxu0 %vm167_vm0, %v110_v48 }
  0x4a   :  { %4157 = vmatmul.mubr.msk.bf16.gmra.mxu0 %vm167_vm0, %v111_v53 }
  0x4b   :  { %4160 = vmatprep.mubr.msk.bf16.mxu0 %vm167_vm0, %v112_v54 }
  0x52   :  { %4161 = vmatmul.mubr.msk.bf16.gmra.mxu0 %vm167_vm0, %v113_v59 }
  0x53   :  { %4164 = vmatprep.mubr.msk.bf16.mxu0 %vm167_vm0, %v114_v60 }
  0x5a   :  { %4165 = vmatmul.mubr.msk.bf16.gmra.mxu0 %vm167_vm0, %v115_v1 }
  0x5b   :  { %4168 = vmatprep.mubr.msk.bf16.mxu0 %vm167_vm0, %v116_v2 }
  0x62   :  { %4169 = vmatmul.mubr.msk.bf16.gmra.mxu0 %vm167_vm0, %v117_v7 }
  0x63   :  { %4172 = vmatprep.mubr.msk.bf16.mxu0 %vm167_vm0, %v118_v8 }
  0x6a   :  { %4173 = vmatmul.mubr.msk.bf16.gmra.mxu0 %vm167_vm0, %v119_v13 }
  0x6b   :  { %4176 = vmatprep.mubr.msk.bf16.mxu0 %vm167_vm0, %v120_v14 }
  0x72   :  { %4177 = vmatmul.mubr.msk.bf16.gmra.mxu0 %vm167_vm0, %v121_v19 }
  0x73   :  { %4180 = vmatprep.mubr.msk.bf16.mxu0 %vm167_vm0, %v122_v20 }
  0x7a   :  { %4181 = vmatmul.mubr.msk.bf16.gmra.mxu0 %vm167_vm0, %v123_v25 }
  0x7b   :  { %4184 = vmatprep.mubr.msk.bf16.mxu0 %vm167_vm0, %v124_v26 }
  0x82   :  { %4185 = vmatmul.mubr.msk.bf16.gmra.mxu0 %vm167_vm0, %v125_v31 }
  0x83   :  { %4188 = vmatprep.mubr.msk.bf16.mxu0 %vm167_vm0, %v126_v32 }
  0x8a   :  { %4189 = vmatmul.mubr.msk.bf16.gmra.mxu0 %vm167_vm0, %v127_v35 }
  0xd2   :  { %v4130_v37 = vpop.f32.mrf.mxu0 }
  0xd3   :  { %v4824_v38 = vadd.f32 %v4130_v37, %v4821_v36 }
  0xd4   :  { %v298_v39 = vpop.f32.mrf.mxu0 }
  0xd5   :  { %v4827_v40 = vadd.f32 %v4821_v36, %v298_v39  ;;  %v562_v41 = vsel %vm555_vm1, %v4824_v38, 0.0 }
  0xd6   :  { %563 = vadd.xlane.f32.xlu1 %v562_v41  ;;  %v4131_v42 = vpop.f32.mrf.mxu0 }
  0xd7   :  { %v4832_v43 = vadd.f32 %v4131_v42, %v4821_v36  ;;  %v556_v44 = vsel %vm555_vm1, %v4827_v40, 0.0 }
  0xd8   :  { %v301_v45 = vpop.f32.mrf.mxu0  ;;  %557 = vadd.xlane.f32.xlu0 %v556_v44 }
  0xd9   :  { %v4837_v46 = vadd.f32 %v4821_v36, %v301_v45  ;;  %v565_v47 = vsel %vm555_vm1, %v4832_v43, 0.0 }
  0xda   :  { %566 = vadd.xlane.f32.xlu1 %v565_v47  ;;  %v4134_v48 = vpop.f32.mrf.mxu0 }
  0xdb   :  { %v4842_v49 = vadd.f32 %v4134_v48, %v4821_v36  ;;  %v559_v50 = vsel %vm555_vm1, %v4837_v46, 0.0 }
  0xdc   :  { %v314_v51 = vpop.f32.mrf.mxu0  ;;  %560 = vadd.xlane.f32.xlu0 %v559_v50 }
  0xdd   :  { %v4847_v53 = vadd.f32 %v4821_v36, %v314_v51  ;;  %v574_v55 = vsel %vm555_vm1, %v4842_v49, 0.0 }
  0xde   :  { %v4135_v52 = vpop.f32.mrf.mxu0 }
  0xdf   :  { %v4850_v54 = vadd.f32 %v4135_v52, %v4821_v36  ;;  %v568_v61 = vsel %vm555_vm1, %v4847_v53, 0.0 }
  0xe0   :  { %v317_v56 = vpop.f32.mrf.mxu0  ;;  %575 = vadd.xlane.f32.xlu0 %v574_v55 }
  0xe1   :  { %v4855_v57 = vadd.f32 %v4821_v36, %v317_v56  ;;  %v577_v58 = vsel %vm555_vm1, %v4850_v54, 0.0 }
  0xe2   :  { %578 = vadd.xlane.f32.xlu1 %v577_v58  ;;  %v4138_v59 = vpop.f32.mrf.mxu0 }
  0xe3   :  { %v4860_v60 = vadd.f32 %v4138_v59, %v4821_v36  ;;  %v571_v63 = vsel %vm555_vm1, %v4855_v57, 0.0 }
  0xe4   :  { %v330_v62 = vpop.f32.mrf.mxu0  ;;  %569 = vadd.xlane.f32.xlu0 %v568_v61 }
  0xe5   :  { %v4867_v1 = vadd.f32 %v4821_v36, %v330_v62  ;;  %v586_v3 = vsel %vm555_vm1, %v4860_v60, 0.0 }
  0xe6   :  { %v4139_v0 = vpop.f32.mrf.mxu0  ;;  %572 = vadd.xlane.f32.xlu1 %v571_v63 }
  0xe7   :  { %v4870_v2 = vadd.f32 %v4139_v0, %v4821_v36  ;;  %v580_v9 = vsel %vm555_vm1, %v4867_v1, 0.0 }
  0xe8   :  { %v333_v4 = vpop.f32.mrf.mxu0  ;;  %587 = vadd.xlane.f32.xlu0 %v586_v3 }
  0xe9   :  { %v4875_v5 = vadd.f32 %v4821_v36, %v333_v4  ;;  %v589_v6 = vsel %vm555_vm1, %v4870_v2, 0.0 }
  0xea   :  { %v4142_v7 = vpop.f32.mrf.mxu0  ;;  %590 = vadd.xlane.f32.xlu1 %v589_v6 }
  0xeb   :  { %v4880_v8 = vadd.f32 %v4142_v7, %v4821_v36  ;;  %v583_v11 = vsel %vm555_vm1, %v4875_v5, 0.0 }
  0xec   :  { %v346_v10 = vpop.f32.mrf.mxu0  ;;  %581 = vadd.xlane.f32.xlu0 %v580_v9 }
  0xed   :  { %v4887_v13 = vadd.f32 %v4821_v36, %v346_v10  ;;  %v598_v15 = vsel %vm555_vm1, %v4880_v8, 0.0 }
  0xee   :  { %v4143_v12 = vpop.f32.mrf.mxu0  ;;  %584 = vadd.xlane.f32.xlu1 %v583_v11 }
  0xef   :  { %v4890_v14 = vadd.f32 %v4143_v12, %v4821_v36  ;;  %v592_v21 = vsel %vm555_vm1, %v4887_v13, 0.0 }
  0xf0   :  { %v349_v16 = vpop.f32.mrf.mxu0  ;;  %599 = vadd.xlane.f32.xlu0 %v598_v15 }
  0xf1   :  { %v4895_v17 = vadd.f32 %v4821_v36, %v349_v16  ;;  %v601_v18 = vsel %vm555_vm1, %v4890_v14, 0.0 }
  0xf2   :  { %v4146_v19 = vpop.f32.mrf.mxu0  ;;  %602 = vadd.xlane.f32.xlu1 %v601_v18 }
  0xf3   :  { %v4900_v20 = vadd.f32 %v4146_v19, %v4821_v36  ;;  %v595_v23 = vsel %vm555_vm1, %v4895_v17, 0.0 }
  0xf4   :  { %v362_v22 = vpop.f32.mrf.mxu0  ;;  %593 = vadd.xlane.f32.xlu0 %v592_v21 }
  0xf5   :  { %v4907_v25 = vadd.f32 %v4821_v36, %v362_v22  ;;  %v610_v27 = vsel %vm555_vm1, %v4900_v20, 0.0 }
  0xf6   :  { %v4147_v24 = vpop.f32.mrf.mxu0  ;;  %596 = vadd.xlane.f32.xlu1 %v595_v23 }
  0xf7   :  { %v4910_v26 = vadd.f32 %v4147_v24, %v4821_v36  ;;  %v604_v33 = vsel %vm555_vm1, %v4907_v25, 0.0 }
  0xf8   :  { %v365_v28 = vpop.f32.mrf.mxu0  ;;  %611 = vadd.xlane.f32.xlu0 %v610_v27 }
  0xf9   :  { %v4915_v29 = vadd.f32 %v4821_v36, %v365_v28  ;;  %v613_v30 = vsel %vm555_vm1, %v4910_v26, 0.0 }
  0xfa   :  { %v4150_v31 = vpop.f32.mrf.mxu0  ;;  %614 = vadd.xlane.f32.xlu1 %v613_v30 }
  0xfb   :  { %v4920_v32 = vadd.f32 %v4150_v31, %v4821_v36  ;;  %v607_v35 = vsel %vm555_vm1, %v4915_v29, 0.0 }
  0xfc   :  { %v378_v34 = vpop.f32.mrf.mxu0  ;;  %605 = vadd.xlane.f32.xlu0 %v604_v33 }
  0xfd   :  { %v4927_v39 = vadd.f32 %v4821_v36, %v378_v34  ;;  %v622_v42 = vsel %vm555_vm1, %v4920_v32, 0.0 }
  0xfe   :  { %v4151_v37 = vpop.f32.mrf.mxu0  ;;  %608 = vadd.xlane.f32.xlu1 %v607_v35 }
  0xff   :  { %v4930_v41 = vadd.f32 %v4151_v37, %v4821_v36  ;;  %v616_v51 = vsel %vm555_vm1, %v4927_v39, 0.0 }
 0x100   :  { %v381_v44 = vpop.f32.mrf.mxu0  ;;  %623 = vadd.xlane.f32.xlu0 %v622_v42 }
 0x101   :  { %v4935_v45 = vadd.f32 %v4821_v36, %v381_v44  ;;  %v625_v47 = vsel %vm555_vm1, %v4930_v41, 0.0 }
 0x102   :  { %v4154_v48 = vpop.f32.mrf.mxu0  ;;  %626 = vadd.xlane.f32.xlu1 %v625_v47 }
 0x103   :  { %v4940_v50 = vadd.f32 %v4154_v48, %v4821_v36  ;;  %v619_v56 = vsel %vm555_vm1, %v4935_v45, 0.0 }
 0x104   :  { %v394_v52 = vpop.f32.mrf.mxu0  ;;  %617 = vadd.xlane.f32.xlu0 %v616_v51 }
 0x105   :  { %v4945_v55 = vadd.f32 %v4821_v36, %v394_v52  ;;  %v634_v58 = vsel %vm555_vm1, %v4940_v50, 0.0 }
 0x106   :  { %v4155_v59 = vpop.f32.mrf.mxu0  ;;  %620 = vadd.xlane.f32.xlu1 %v619_v56 }
 0x107   :  { %v4952_v61 = vadd.f32 %v4155_v59, %v4821_v36  ;;  %v628_v3 = vsel %vm555_vm1, %v4945_v55, 0.0 }
 0x108   :  { %v397_v62 = vpop.f32.mrf.mxu0  ;;  %635 = vadd.xlane.f32.xlu0 %v634_v58 }
 0x109   :  { %v4955_v63 = vadd.f32 %v4821_v36, %v397_v62  ;;  %v637_v0 = vsel %vm555_vm1, %v4952_v61, 0.0 }
 0x10a   :  { %v4158_v4 = vpop.f32.mrf.mxu0  ;;  %638 = vadd.xlane.f32.xlu1 %v637_v0 }
 0x10b   :  { %v4962_v6 = vadd.f32 %v4158_v4, %v4821_v36  ;;  %v631_v7 = vsel %vm555_vm1, %v4955_v63, 0.0 }
 0x10c   :  { %v410_v9 = vpop.f32.mrf.mxu0  ;;  %629 = vadd.xlane.f32.xlu0 %v628_v3 }
 0x10d   :  { %v4967_v10 = vadd.f32 %v4821_v36, %v410_v9  ;;  %v646_v11 = vsel %vm555_vm1, %v4962_v6, 0.0 }
 0x10e   :  { %v4159_v12 = vpop.f32.mrf.mxu0  ;;  %632 = vadd.xlane.f32.xlu1 %v631_v7 }
 0x10f   :  { %v4972_v15 = vadd.f32 %v4159_v12, %v4821_v36  ;;  %v640_v21 = vsel %vm555_vm1, %v4967_v10, 0.0 }
 0x110   :  { %v413_v16 = vpop.f32.mrf.mxu0  ;;  %647 = vadd.xlane.f32.xlu0 %v646_v11 }
 0x111   :  { %v4975_v18 = vadd.f32 %v4821_v36, %v413_v16  ;;  %v649_v19 = vsel %vm555_vm1, %v4972_v15, 0.0 }
 0x112   :  { %v4162_v22 = vpop.f32.mrf.mxu0  ;;  %650 = vadd.xlane.f32.xlu1 %v649_v19 }
 0x113   :  { %v4982_v23 = vadd.f32 %v4162_v22, %v4821_v36  ;;  %v643_v24 = vsel %vm555_vm1, %v4975_v18, 0.0 }
 0x114   :  { %v426_v27 = vpop.f32.mrf.mxu0  ;;  %641 = vadd.xlane.f32.xlu0 %v640_v21 }
 0x115   :  { %v4987_v28 = vadd.f32 %v4821_v36, %v426_v27  ;;  %v658_v30 = vsel %vm555_vm1, %v4982_v23, 0.0 }
 0x116   :  { %v4163_v31 = vpop.f32.mrf.mxu0  ;;  %644 = vadd.xlane.f32.xlu1 %v643_v24 }
 0x117   :  { %v4992_v33 = vadd.f32 %v4163_v31, %v4821_v36  ;;  %v652_v42 = vsel %vm555_vm1, %v4987_v28, 0.0 }
 0x118   :  { %v429_v34 = vpop.f32.mrf.mxu0  ;;  %659 = vadd.xlane.f32.xlu0 %v658_v30 }
 0x119   :  { %v4995_v35 = vadd.f32 %v4821_v36, %v429_v34  ;;  %v661_v37 = vsel %vm555_vm1, %v4992_v33, 0.0 }
 0x11a   :  { %v4166_v44 = vpop.f32.mrf.mxu0  ;;  %662 = vadd.xlane.f32.xlu1 %v661_v37 }
 0x11b   :  { %v5002_v47 = vadd.f32 %v4166_v44, %v4821_v36  ;;  %v655_v48 = vsel %vm555_vm1, %v4995_v35, 0.0 }
 0x11c   :  { %v442_v51 = vpop.f32.mrf.mxu0  ;;  %653 = vadd.xlane.f32.xlu0 %v652_v42 }
 0x11d   :  { %v5007_v52 = vadd.f32 %v4821_v36, %v442_v51  ;;  %v670_v56 = vsel %vm555_vm1, %v5002_v47, 0.0 }
 0x11e   :  { %v4167_v58 = vpop.f32.mrf.mxu0  ;;  %656 = vadd.xlane.f32.xlu1 %v655_v48 }
 0x11f   :  { %v5012_v59 = vadd.f32 %v4167_v58, %v4821_v36  ;;  %v664_v4 = vsel %vm555_vm1, %v5007_v52, 0.0 }
 0x120   :  { %v445_v62 = vpop.f32.mrf.mxu0  ;;  %671 = vadd.xlane.f32.xlu0 %v670_v56 }
 0x121   :  { %v5015_v0 = vadd.f32 %v4821_v36, %v445_v62  ;;  %v673_v3 = vsel %vm555_vm1, %v5012_v59, 0.0 }
 0x122   :  { %v4170_v7 = vpop.f32.mrf.mxu0  ;;  %674 = vadd.xlane.f32.xlu1 %v673_v3 }
 0x123   :  { %v5022_v9 = vadd.f32 %v4170_v7, %v4821_v36  ;;  %v667_v11 = vsel %vm555_vm1, %v5015_v0, 0.0 }
 0x124   :  { %v458_v12 = vpop.f32.mrf.mxu0  ;;  %665 = vadd.xlane.f32.xlu0 %v664_v4 }
 0x125   :  { %v5027_v16 = vadd.f32 %v4821_v36, %v458_v12  ;;  %v682_v19 = vsel %vm555_vm1, %v5022_v9, 0.0 }
 0x126   :  { %v4171_v21 = vpop.f32.mrf.mxu0  ;;  %668 = vadd.xlane.f32.xlu1 %v667_v11 }
 0x127   :  { %v5032_v22 = vadd.f32 %v4171_v21, %v4821_v36  ;;  %v676_v31 = vsel %vm555_vm1, %v5027_v16, 0.0 }
 0x128   :  { %v461_v24 = vpop.f32.mrf.mxu0  ;;  %683 = vadd.xlane.f32.xlu0 %v682_v19 }
 0x129   :  { %v5035_v27 = vadd.f32 %v4821_v36, %v461_v24  ;;  %v685_v30 = vsel %vm555_vm1, %v5032_v22, 0.0 }
 0x12a   :  { %v4174_v34 = vpop.f32.mrf.mxu0  ;;  %686 = vadd.xlane.f32.xlu1 %v685_v30 }
 0x12b   :  { %v5042_v37 = vadd.f32 %v4174_v34, %v4821_v36  ;;  %v679_v42 = vsel %vm555_vm1, %v5035_v27, 0.0 }
 0x12c   :  { %v474_v44 = vpop.f32.mrf.mxu0  ;;  %677 = vadd.xlane.f32.xlu0 %v676_v31 }
 0x12d   :  { %v5047_v48 = vadd.f32 %v4821_v36, %v474_v44  ;;  %v694_v51 = vsel %vm555_vm1, %v5042_v37, 0.0 }
 0x12e   :  { %v4175_v56 = vpop.f32.mrf.mxu0  ;;  %680 = vadd.xlane.f32.xlu1 %v679_v42 }
 0x12f   :  { %v5052_v58 = vadd.f32 %v4175_v56, %v4821_v36  ;;  %v688_v7 = vsel %vm555_vm1, %v5047_v48, 0.0 }
 0x130   :  { %v477_v62 = vpop.f32.mrf.mxu0  ;;  %695 = vadd.xlane.f32.xlu0 %v694_v51 }
 0x131   :  { %v5055_v3 = vadd.f32 %v4821_v36, %v477_v62  ;;  %v697_v4 = vsel %vm555_vm1, %v5052_v58, 0.0 }
 0x132   :  { %v4178_v11 = vpop.f32.mrf.mxu0  ;;  %698 = vadd.xlane.f32.xlu1 %v697_v4 }
 0x133   :  { %v5062_v12 = vadd.f32 %v4178_v11, %v4821_v36  ;;  %v691_v19 = vsel %vm555_vm1, %v5055_v3, 0.0 }
 0x134   :  { %v490_v21 = vpop.f32.mrf.mxu0  ;;  %689 = vadd.xlane.f32.xlu0 %v688_v7 }
 0x135   :  { %7401 = vst [vmem:[#allocation2_spill] sm:$0xff] %v5062_v12  ;;  %v5067_v24 = vadd.f32 %v4821_v36, %v490_v21  ;;  %v706_v30 = vsel %vm555_vm1, %v5062_v12, 0.0 }
 0x136   :  { %v4179_v31 = vpop.f32.mrf.mxu0  ;;  %692 = vadd.xlane.f32.xlu1 %v691_v19 }
 0x137   :  { %7402 = vst [vmem:[#allocation3_spill] sm:$0xff] %v5067_v24  ;;  %v5072_v34 = vadd.f32 %v4179_v31, %v4821_v36  ;;  %v700_v56 = vsel %vm555_vm1, %v5067_v24, 0.0 }
 0x138   :  { %v493_v42 = vpop.f32.mrf.mxu0  ;;  %707 = vadd.xlane.f32.xlu0 %v706_v30 }
 0x139   :  { %7403 = vst [vmem:[#allocation4_spill] sm:$0xff] %v5072_v34  ;;  %v5075_v44 = vadd.f32 %v4821_v36, %v493_v42  ;;  %v709_v51 = vsel %vm555_vm1, %v5072_v34, 0.0 }
 0x13a   :  { %v4182_v62 = vpop.f32.mrf.mxu0  ;;  %710 = vadd.xlane.f32.xlu1 %v709_v51 }
 0x13b   :  { %7404 = vst [vmem:[#allocation5_spill] sm:$0xff] %v5075_v44  ;;  %v5082_v4 = vadd.f32 %v4182_v62, %v4821_v36  ;;  %v703_v7 = vsel %vm555_vm1, %v5075_v44, 0.0 }
 0x13c   :  { %v506_v11 = vpop.f32.mrf.mxu0  ;;  %701 = vadd.xlane.f32.xlu0 %v700_v56 }
 0x13d   :  { %7405 = vst [vmem:[#allocation6_spill] sm:$0xff] %v5082_v4  ;;  %v5087_v19 = vadd.f32 %v4821_v36, %v506_v11  ;;  %v718_v21 = vsel %vm555_vm1, %v5082_v4, 0.0 }
 0x13e   :  { %v4183_v30 = vpop.f32.mrf.mxu0  ;;  %704 = vadd.xlane.f32.xlu1 %v703_v7 }
 0x13f   :  { %7406 = vst [vmem:[#allocation7_spill] sm:$0xff] %v5087_v19  ;;  %v5092_v31 = vadd.f32 %v4183_v30, %v4821_v36  ;;  %v712_v56 = vsel %vm555_vm1, %v5087_v19, 0.0 }
 0x140   :  { %v509_v42 = vpop.f32.mrf.mxu0  ;;  %719 = vadd.xlane.f32.xlu0 %v718_v21 }
 0x141   :  { %7407 = vst [vmem:[#allocation8_spill] sm:$0xff] %v5092_v31  ;;  %v5095_v51 = vadd.f32 %v4821_v36, %v509_v42  ;;  %v721_v62 = vsel %vm555_vm1, %v5092_v31, 0.0 }
 0x142   :  { %v4186_v11 = vpop.f32.mrf.mxu0  ;;  %722 = vadd.xlane.f32.xlu1 %v721_v62 }
 0x143   :  { %7408 = vst [vmem:[#allocation9_spill] sm:$0xff] %v5095_v51  ;;  %v5102_v4 = vadd.f32 %v4186_v11, %v4821_v36  ;;  %v715_v7 = vsel %vm555_vm1, %v5095_v51, 0.0 }
 0x144   :  { %v522_v30 = vpop.f32.mrf.mxu0  ;;  %713 = vadd.xlane.f32.xlu0 %v712_v56 }
 0x145   :  { %7409 = vst [vmem:[#allocation10_spill] sm:$0xff] %v5102_v4  ;;  %v5107_v21 = vadd.f32 %v4821_v36, %v522_v30  ;;  %v730_v42 = vsel %vm555_vm1, %v5102_v4, 0.0 }
 0x146   :  { %v4187_v31 = vpop.f32.mrf.mxu0  ;;  %716 = vadd.xlane.f32.xlu1 %v715_v7 }
 0x147   :  { %7410 = vst [vmem:[#allocation11_spill] sm:$0xff] %v5107_v21  ;;  %v5112_v19 = vadd.f32 %v4187_v31, %v4821_v36  ;;  %v724_v56 = vsel %vm555_vm1, %v5107_v21, 0.0 }
 0x148   :  { %v525_v62 = vpop.f32.mrf.mxu0  ;;  %731 = vadd.xlane.f32.xlu0 %v730_v42 }
 0x149   :  { %7411 = vst [vmem:[#allocation12_spill] sm:$0xff] %v5112_v19  ;;  %v5115_v11 = vadd.f32 %v4821_v36, %v525_v62  ;;  %v733_v51 = vsel %vm555_vm1, %v5112_v19, 0.0 }
 0x14a   :  { %v5121_v30 = vpop.f32.mrf.mxu0  ;;  %734 = vadd.xlane.f32.xlu1 %v733_v51 }
 0x14b   :  { %7412 = vst [vmem:[#allocation13_spill] sm:$0xff] %v5115_v11  ;;  %v727_v7 = vsel %vm555_vm1, %v5115_v11, 0.0 }
 0x14c   :  { %v538_v4 = vpop.f32.mrf.mxu0  ;;  %725 = vadd.xlane.f32.xlu0 %v724_v56 }
 0x14d   :  { %v5126_v31 = vadd.f32 %v4821_v36, %v538_v4 }
 0x14e   :  { %v5128_v42 = vpop.f32.mrf.mxu0  ;;  %728 = vadd.xlane.f32.xlu1 %v727_v7 }
 0x14f   :  { %7413 = vst [vmem:[#allocation14_spill] sm:$0xff] %v5126_v31  ;;  %v736_v62 = vsel %vm555_vm1, %v5126_v31, 0.0 }
 0x150   :  { %v541_v19 = vpop.f32.mrf.mxu0  ;;  %737 = vadd.xlane.f32.xlu0 %v736_v62 }
 0x151   :  { %v5133_v21 = vadd.f32 %v4821_v36, %v541_v19 }
 0x153   :  { %v739_v51 = vsel %vm555_vm1, %v5133_v21, 0.0 }
 0x154   :  { %740 = vadd.xlane.f32.xlu1 %v739_v51 }
 0x15f   :  { %v564_v11 = vpop.xlane.xlu1 %563 }
 0x160   :  { %v751_v56 = vmul.f32 0.03125, %v564_v11 }
 0x161   :  { %v558_v44 = vpop.xlane.xlu0 %557 }
 0x162   :  { %v5138_v4 = vsub.f32 %v4824_v38, %v751_v56  ;;  %v749_v34 = vmul.f32 0.03125, %v558_v44 }
 0x163   :  { %v567_v7 = vpop.xlane.xlu1 %566 }
 0x164   :  { %7414 = vst [vmem:[#allocation15_spill] sm:$0xff] %v5138_v4  ;;  %v5141_v24 = vsub.f32 %v4827_v40, %v749_v34  ;;  %v752_v31 = vmul.f32 0.03125, %v567_v7  ;;  %v879_v19 = vmul.f32 %v5138_v4, %v5138_v4 }
 0x165   :  { %v561_v62 = vpop.xlane.xlu0 %560 }
 0x166   :  { %v5146_v12 = vsub.f32 %v4832_v43, %v752_v31  ;;  %v750_v51 = vmul.f32 0.03125, %v561_v62  ;;  %v947_v11 = vsel %vm555_vm1, %v879_v19, 0.0  ;;  %v877_v38 = vmul.f32 %v5141_v24, %v5141_v24 }
 0x167   :  { %948 = vadd.xlane.f32.xlu0 %v947_v11 }
 0x168   :  { %v5152_v44 = vsub.f32 %v4837_v46, %v750_v51  ;;  %v880_v40 = vmul.f32 %v5146_v12, %v5146_v12  ;;  %v941_v43 = vsel %vm555_vm1, %v877_v38, 0.0 }
 0x169   :  { %v576_v34 = vpop.xlane.xlu0 %575 }
 0x16a   :  { %7415 = vst [vmem:[#allocation16_spill] sm:$0xff] %v5152_v44  ;;  %v755_v56 = vmul.f32 0.03125, %v576_v34  ;;  %v950_v7 = vsel %vm555_vm1, %v880_v40, 0.0  ;;  %v878_v31 = vmul.f32 %v5152_v44, %v5152_v44 }
 0x16b   :  { %v579_v19 = vpop.xlane.xlu1 %578  ;;  %951 = vadd.xlane.f32.xlu1 %v950_v7  ;;  %942 = vadd.xlane.f32.xlu0 %v941_v43 }
 0x16c   :  { %v5161_v62 = vsub.f32 %v4842_v49, %v755_v56  ;;  %v756_v46 = vmul.f32 0.03125, %v579_v19  ;;  %v944_v34 = vsel %vm555_vm1, %v878_v31, 0.0 }
 0x16d   :  { %v570_v51 = vpop.xlane.xlu0 %569 }
 0x16e   :  { %v5164_v11 = vsub.f32 %v4850_v54, %v756_v46  ;;  %v753_v4 = vmul.f32 0.03125, %v570_v51  ;;  %v883_v38 = vmul.f32 %v5161_v62, %v5161_v62 }
 0x16f   :  { %v573_v40 = vpop.xlane.xlu1 %572  ;;  %945 = vadd.xlane.f32.xlu1 %v944_v34 }
 0x170   :  { %v5170_v44 = vsub.f32 %v4847_v53, %v753_v4  ;;  %v754_v7 = vmul.f32 0.03125, %v573_v40  ;;  %v959_v49 = vsel %vm555_vm1, %v883_v38, 0.0  ;;  %v884_v56 = vmul.f32 %v5164_v11, %v5164_v11 }
 0x171   :  { %960 = vadd.xlane.f32.xlu0 %v959_v49  ;;  %v588_v54 = vpop.xlane.xlu0 %587 }
 0x172   :  { %v5176_v43 = vsub.f32 %v4855_v57, %v754_v7  ;;  %v759_v31 = vmul.f32 0.03125, %v588_v54  ;;  %v962_v19 = vsel %vm555_vm1, %v884_v56, 0.0  ;;  %v881_v46 = vmul.f32 %v5170_v44, %v5170_v44 }
 0x173   :  { %v591_v51 = vpop.xlane.xlu1 %590  ;;  %963 = vadd.xlane.f32.xlu1 %v962_v19 }
 0x174   :  { %v5182_v53 = vsub.f32 %v4860_v60, %v759_v31  ;;  %v760_v4 = vmul.f32 0.03125, %v591_v51  ;;  %v953_v34 = vsel %vm555_vm1, %v881_v46, 0.0  ;;  %v882_v38 = vmul.f32 %v5176_v43, %v5176_v43 }
 0x175   :  { %954 = vadd.xlane.f32.xlu0 %v953_v34  ;;  %v582_v57 = vpop.xlane.xlu0 %581 }
 0x176   :  { %v5188_v40 = vsub.f32 %v4870_v2, %v760_v4  ;;  %v757_v7 = vmul.f32 0.03125, %v582_v57  ;;  %v956_v49 = vsel %vm555_vm1, %v882_v38, 0.0  ;;  %v887_v56 = vmul.f32 %v5182_v53, %v5182_v53 }
 0x177   :  { %v585_v54 = vpop.xlane.xlu1 %584  ;;  %957 = vadd.xlane.f32.xlu1 %v956_v49 }
 0x178   :  { %v5194_v60 = vsub.f32 %v4867_v1, %v757_v7  ;;  %v758_v31 = vmul.f32 0.03125, %v585_v54  ;;  %v971_v19 = vsel %vm555_vm1, %v887_v56, 0.0  ;;  %v888_v46 = vmul.f32 %v5188_v40, %v5188_v40 }
 0x179   :  { %972 = vadd.xlane.f32.xlu0 %v971_v19  ;;  %v600_v2 = vpop.xlane.xlu0 %599 }
 0x17a   :  { %v5200_v51 = vsub.f32 %v4875_v5, %v758_v31  ;;  %v763_v4 = vmul.f32 0.03125, %v600_v2  ;;  %v974_v34 = vsel %vm555_vm1, %v888_v46, 0.0  ;;  %v885_v38 = vmul.f32 %v5194_v60, %v5194_v60 }
 0x17b   :  { %v603_v57 = vpop.xlane.xlu1 %602  ;;  %975 = vadd.xlane.f32.xlu1 %v974_v34 }
 0x17c   :  { %v5206_v1 = vsub.f32 %v4880_v8, %v763_v4  ;;  %v764_v7 = vmul.f32 0.03125, %v603_v57  ;;  %v965_v49 = vsel %vm555_vm1, %v885_v38, 0.0  ;;  %v886_v56 = vmul.f32 %v5200_v51, %v5200_v51 }
 0x17d   :  { %966 = vadd.xlane.f32.xlu0 %v965_v49  ;;  %v594_v5 = vpop.xlane.xlu0 %593 }
 0x17e   :  { %v5212_v54 = vsub.f32 %v4890_v14, %v764_v7  ;;  %v761_v31 = vmul.f32 0.03125, %v594_v5  ;;  %v968_v19 = vsel %vm555_vm1, %v886_v56, 0.0  ;;  %v891_v46 = vmul.f32 %v5206_v1, %v5206_v1 }
 0x17f   :  { %v597_v2 = vpop.xlane.xlu1 %596  ;;  %969 = vadd.xlane.f32.xlu1 %v968_v19 }
 0x180   :  { %v5218_v8 = vsub.f32 %v4887_v13, %v761_v31  ;;  %v762_v4 = vmul.f32 0.03125, %v597_v2  ;;  %v983_v34 = vsel %vm555_vm1, %v891_v46, 0.0  ;;  %v892_v38 = vmul.f32 %v5212_v54, %v5212_v54 }
 0x181   :  { %984 = vadd.xlane.f32.xlu0 %v983_v34  ;;  %v612_v14 = vpop.xlane.xlu0 %611 }
 0x182   :  { %v5224_v57 = vsub.f32 %v4895_v17, %v762_v4  ;;  %v767_v7 = vmul.f32 0.03125, %v612_v14  ;;  %v986_v49 = vsel %vm555_vm1, %v892_v38, 0.0  ;;  %v889_v56 = vmul.f32 %v5218_v8, %v5218_v8 }
 0x183   :  { %v615_v5 = vpop.xlane.xlu1 %614  ;;  %987 = vadd.xlane.f32.xlu1 %v986_v49 }
 0x184   :  { %v5230_v13 = vsub.f32 %v4900_v20, %v767_v7  ;;  %v768_v31 = vmul.f32 0.03125, %v615_v5  ;;  %v977_v19 = vsel %vm555_vm1, %v889_v56, 0.0  ;;  %v890_v46 = vmul.f32 %v5224_v57, %v5224_v57 }
 0x185   :  { %978 = vadd.xlane.f32.xlu0 %v977_v19  ;;  %v606_v17 = vpop.xlane.xlu0 %605 }
 0x186   :  { %v5236_v2 = vsub.f32 %v4910_v26, %v768_v31  ;;  %v765_v4 = vmul.f32 0.03125, %v606_v17  ;;  %v980_v34 = vsel %vm555_vm1, %v890_v46, 0.0  ;;  %v895_v38 = vmul.f32 %v5230_v13, %v5230_v13 }
 0x187   :  { %v609_v14 = vpop.xlane.xlu1 %608  ;;  %981 = vadd.xlane.f32.xlu1 %v980_v34 }
 0x188   :  { %v5242_v20 = vsub.f32 %v4907_v25, %v765_v4  ;;  %v766_v7 = vmul.f32 0.03125, %v609_v14  ;;  %v995_v49 = vsel %vm555_vm1, %v895_v38, 0.0  ;;  %v896_v56 = vmul.f32 %v5236_v2, %v5236_v2  ;;  %v4397_v25 = vld [vmem:[%s7330_s5 + $0x8] sm:$0xff]  }
 0x189   :  { %996 = vadd.xlane.f32.xlu0 %v995_v49  ;;  %v624_v26 = vpop.xlane.xlu0 %623  ;;  %4192 = vmatprep.subr.bf16.mxu1 %v4397_v25 }
 0x18a   :  { %v5248_v5 = vsub.f32 %v4915_v29, %v766_v7  ;;  %v771_v31 = vmul.f32 0.03125, %v624_v26  ;;  %v998_v19 = vsel %vm555_vm1, %v896_v56, 0.0  ;;  %v893_v46 = vmul.f32 %v5242_v20, %v5242_v20  ;;  %4193 = vmatpush3.bf16.msra.mxu1 %v4397_v25 }
 0x18b   :  { %v627_v17 = vpop.xlane.xlu1 %626  ;;  %999 = vadd.xlane.f32.xlu1 %v998_v19 }
 0x18c   :  { %v5257_v4 = vsub.f32 %v4920_v32, %v771_v31  ;;  %v772_v34 = vmul.f32 0.03125, %v627_v17  ;;  %v989_v38 = vsel %vm555_vm1, %v893_v46, 0.0  ;;  %v894_v29 = vmul.f32 %v5248_v5, %v5248_v5  ;;  %v4398_v31 = vld [vmem:[%s7330_s5] sm:$0xff]  }
 0x18d   :  { %990 = vadd.xlane.f32.xlu0 %v989_v38  ;;  %v618_v14 = vpop.xlane.xlu0 %617  ;;  %4194 = vmatprep.subr.bf16.mxu1 %v4398_v31 }
 0x18e   :  { %v5263_v7 = vsub.f32 %v4930_v41, %v772_v34  ;;  %v769_v49 = vmul.f32 0.03125, %v618_v14  ;;  %v992_v56 = vsel %vm555_vm1, %v894_v29, 0.0  ;;  %v899_v26 = vmul.f32 %v5257_v4, %v5257_v4  ;;  %4195 = vmatpush3.bf16.msra.mxu1 %v4398_v31 }
 0x18f   :  { %v621_v32 = vpop.xlane.xlu1 %620  ;;  %993 = vadd.xlane.f32.xlu1 %v992_v56  ;;  %v5285_v14 = vadd.f32 %v5121_v30, %v4821_v36 }
 0x190   :  { %v5272_v19 = vsub.f32 %v4927_v39, %v769_v49  ;;  %v770_v46 = vmul.f32 0.03125, %v621_v32  ;;  %v1007_v41 = vsel %vm555_vm1, %v899_v26, 0.0  ;;  %v900_v17 = vmul.f32 %v5263_v7, %v5263_v7 }
 0x191   :  { %1008 = vadd.xlane.f32.xlu0 %v1007_v41  ;;  %v636_v34 = vpop.xlane.xlu0 %635  ;;  %v5292_v32 = vadd.f32 %v5128_v42, %v4821_v36 }
 0x192   :  { %v5278_v25 = vsub.f32 %v4935_v45, %v770_v46  ;;  %v1010_v38 = vsel %vm555_vm1, %v900_v17, 0.0  ;;  %v897_v29 = vmul.f32 %v5272_v19, %v5272_v19  ;;  %v775_v49 = vmul.f32 0.03125, %v636_v34 }
 0x193   :  { %v639_v39 = vpop.xlane.xlu1 %638  ;;  %1011 = vadd.xlane.f32.xlu1 %v1010_v38 }
 0x194   :  { %v1001_v56 = vsel %vm555_vm1, %v897_v29, 0.0  ;;  %v898_v26 = vmul.f32 %v5278_v25, %v5278_v25  ;;  %v776_v46 = vmul.f32 0.03125, %v639_v39  ;;  %v5296_v30 = vsub.f32 %v4940_v50, %v775_v49 }
 0x195   :  { %1002 = vadd.xlane.f32.xlu0 %v1001_v56  ;;  %v630_v45 = vpop.xlane.xlu0 %629  ;;  %v742_v29 = vsel %vm555_vm1, %v5285_v14, 0.0  ;;  %v745_v39 = vsel %vm555_vm1, %v5292_v32, 0.0 }
 0x196   :  { %v773_v31 = vmul.f32 0.03125, %v630_v45  ;;  %v1004_v41 = vsel %vm555_vm1, %v898_v26, 0.0  ;;  %v5304_v36 = vsub.f32 %v4952_v61, %v776_v46  ;;  %v903_v61 = vmul.f32 %v5296_v30, %v5296_v30 }
 0x197   :  { %v633_v17 = vpop.xlane.xlu1 %632  ;;  %1005 = vadd.xlane.f32.xlu1 %v1004_v41 }
 0x198   :  { %v5299_v34 = vsub.f32 %v4945_v55, %v773_v31  ;;  %v774_v38 = vmul.f32 0.03125, %v633_v17  ;;  %v904_v17 = vmul.f32 %v5304_v36, %v5304_v36 }
 0x199   :  { %743 = vadd.xlane.f32.xlu0 %v742_v29  ;;  %v648_v56 = vpop.xlane.xlu0 %647 }
 0x19a   :  { %v5307_v42 = vsub.f32 %v4955_v63, %v774_v38  ;;  %v901_v50 = vmul.f32 %v5299_v34, %v5299_v34  ;;  %v779_v49 = vmul.f32 0.03125, %v648_v56 }
 0x19b   :  { %v651_v55 = vpop.xlane.xlu1 %650  ;;  %746 = vadd.xlane.f32.xlu1 %v745_v39 }
 0x19c   :  { %v1013_v26 = vsel %vm555_vm1, %v901_v50, 0.0  ;;  %v902_v45 = vmul.f32 %v5307_v42, %v5307_v42  ;;  %v780_v46 = vmul.f32 0.03125, %v651_v55  ;;  %v5322_v29 = vsub.f32 %v4962_v6, %v779_v49 }
 0x19d   :  { %1014 = vadd.xlane.f32.xlu0 %v1013_v26  ;;  %v642_v63 = vpop.xlane.xlu0 %641  ;;  %v1019_v50 = vsel %vm555_vm1, %v903_v61, 0.0 }
 0x19e   :  { %v777_v31 = vmul.f32 0.03125, %v642_v63  ;;  %v1016_v41 = vsel %vm555_vm1, %v902_v45, 0.0  ;;  %v5329_v55 = vsub.f32 %v4972_v15, %v780_v46  ;;  %v1022_v63 = vsel %vm555_vm1, %v904_v17, 0.0 }
 0x19f   :  { %v645_v38 = vpop.xlane.xlu1 %644  ;;  %1017 = vadd.xlane.f32.xlu1 %v1016_v41  ;;  %v907_v15 = vmul.f32 %v5322_v29, %v5322_v29 }
 0x1a0   :  { %v5325_v56 = vsub.f32 %v4967_v10, %v777_v31  ;;  %v778_v39 = vmul.f32 0.03125, %v645_v38  ;;  %v908_v38 = vmul.f32 %v5329_v55, %v5329_v55 }
 0x1a1   :  { %1020 = vadd.xlane.f32.xlu0 %v1019_v50  ;;  %v660_v26 = vpop.xlane.xlu0 %659 }
 0x1a2   :  { %v5332_v45 = vsub.f32 %v4975_v18, %v778_v39  ;;  %v905_v6 = vmul.f32 %v5325_v56, %v5325_v56  ;;  %v783_v10 = vmul.f32 0.03125, %v660_v26 }
 0x1a3   :  { %v663_v49 = vpop.xlane.xlu1 %662  ;;  %1023 = vadd.xlane.f32.xlu1 %v1022_v63 }
 0x1a4   :  { %v1025_v31 = vsel %vm555_vm1, %v905_v6, 0.0  ;;  %v906_v61 = vmul.f32 %v5332_v45, %v5332_v45  ;;  %v784_v18 = vmul.f32 0.03125, %v663_v49  ;;  %v5346_v50 = vsub.f32 %v4982_v23, %v783_v10 }
 0x1a5   :  { %1026 = vadd.xlane.f32.xlu0 %v1025_v31  ;;  %v654_v46 = vpop.xlane.xlu0 %653  ;;  %v1031_v6 = vsel %vm555_vm1, %v907_v15, 0.0 }
 0x1a6   :  { %v781_v41 = vmul.f32 0.03125, %v654_v46  ;;  %v1028_v17 = vsel %vm555_vm1, %v906_v61, 0.0  ;;  %v5353_v49 = vsub.f32 %v4992_v33, %v784_v18  ;;  %v1034_v46 = vsel %vm555_vm1, %v908_v38, 0.0 }
 0x1a7   :  { %v657_v39 = vpop.xlane.xlu1 %656  ;;  %1029 = vadd.xlane.f32.xlu1 %v1028_v17  ;;  %v911_v33 = vmul.f32 %v5346_v50, %v5346_v50 }
 0x1a8   :  { %v5349_v26 = vsub.f32 %v4987_v28, %v781_v41  ;;  %v782_v63 = vmul.f32 0.03125, %v657_v39  ;;  %v912_v39 = vmul.f32 %v5353_v49, %v5353_v49 }
 0x1a9   :  { %1032 = vadd.xlane.f32.xlu0 %v1031_v6  ;;  %v672_v31 = vpop.xlane.xlu0 %671 }
 0x1aa   :  { %v5356_v61 = vsub.f32 %v4995_v35, %v782_v63  ;;  %v909_v23 = vmul.f32 %v5349_v26, %v5349_v26  ;;  %v787_v28 = vmul.f32 0.03125, %v672_v31 }
 0x1ab   :  { %v675_v10 = vpop.xlane.xlu1 %674  ;;  %1035 = vadd.xlane.f32.xlu1 %v1034_v46 }
 0x1ac   :  { %v1037_v41 = vsel %vm555_vm1, %v909_v23, 0.0  ;;  %v910_v15 = vmul.f32 %v5356_v61, %v5356_v61  ;;  %v788_v35 = vmul.f32 0.03125, %v675_v10  ;;  %v5370_v6 = vsub.f32 %v5002_v47, %v787_v28 }
 0x1ad   :  { %1038 = vadd.xlane.f32.xlu0 %v1037_v41  ;;  %v666_v18 = vpop.xlane.xlu0 %665  ;;  %v1043_v23 = vsel %vm555_vm1, %v911_v33, 0.0 }
 0x1ae   :  { %v785_v17 = vmul.f32 0.03125, %v666_v18  ;;  %v1040_v38 = vsel %vm555_vm1, %v910_v15, 0.0  ;;  %v5377_v10 = vsub.f32 %v5012_v59, %v788_v35  ;;  %v1046_v18 = vsel %vm555_vm1, %v912_v39, 0.0 }
 0x1af   :  { %v669_v63 = vpop.xlane.xlu1 %668  ;;  %1041 = vadd.xlane.f32.xlu1 %v1040_v38  ;;  %v915_v59 = vmul.f32 %v5370_v6, %v5370_v6 }
 0x1b0   :  { %v5373_v31 = vsub.f32 %v5007_v52, %v785_v17  ;;  %v786_v46 = vmul.f32 0.03125, %v669_v63  ;;  %v916_v63 = vmul.f32 %v5377_v10, %v5377_v10 }
 0x1b1   :  { %1044 = vadd.xlane.f32.xlu0 %v1043_v23  ;;  %v684_v41 = vpop.xlane.xlu0 %683 }
 0x1b2   :  { %v5380_v15 = vsub.f32 %v5015_v0, %v786_v46  ;;  %v913_v47 = vmul.f32 %v5373_v31, %v5373_v31  ;;  %v791_v52 = vmul.f32 0.03125, %v684_v41 }
 0x1b3   :  { %v687_v28 = vpop.xlane.xlu1 %686  ;;  %1047 = vadd.xlane.f32.xlu1 %v1046_v18 }
 0x1b4   :  { %v1049_v17 = vsel %vm555_vm1, %v913_v47, 0.0  ;;  %v914_v33 = vmul.f32 %v5380_v15, %v5380_v15  ;;  %v792_v0 = vmul.f32 0.03125, %v687_v28  ;;  %v5394_v23 = vsub.f32 %v5022_v9, %v791_v52 }
 0x1b5   :  { %1050 = vadd.xlane.f32.xlu0 %v1049_v17  ;;  %v678_v35 = vpop.xlane.xlu0 %677  ;;  %v1055_v47 = vsel %vm555_vm1, %v915_v59, 0.0 }
 0x1b6   :  { %v789_v38 = vmul.f32 0.03125, %v678_v35  ;;  %v1052_v39 = vsel %vm555_vm1, %v914_v33, 0.0  ;;  %v5401_v28 = vsub.f32 %v5032_v22, %v792_v0  ;;  %v1058_v35 = vsel %vm555_vm1, %v916_v63, 0.0 }
 0x1b7   :  { %v681_v46 = vpop.xlane.xlu1 %680  ;;  %1053 = vadd.xlane.f32.xlu1 %v1052_v39  ;;  %v919_v22 = vmul.f32 %v5394_v23, %v5394_v23 }
 0x1b8   :  { %v5397_v41 = vsub.f32 %v5027_v16, %v789_v38  ;;  %v790_v18 = vmul.f32 0.03125, %v681_v46  ;;  %7416 = vst [vmem:[#allocation17_spill] sm:$0xff] %v5401_v28  ;;  %v920_v46 = vmul.f32 %v5401_v28, %v5401_v28 }
 0x1b9   :  { %1056 = vadd.xlane.f32.xlu0 %v1055_v47  ;;  %v696_v17 = vpop.xlane.xlu0 %695 }
 0x1ba   :  { %v5404_v33 = vsub.f32 %v5035_v27, %v790_v18  ;;  %v917_v9 = vmul.f32 %v5397_v41, %v5397_v41  ;;  %v795_v16 = vmul.f32 0.03125, %v696_v17 }
 0x1bb   :  { %v699_v52 = vpop.xlane.xlu1 %698  ;;  %1059 = vadd.xlane.f32.xlu1 %v1058_v35 }
 0x1bc   :  { %v1061_v38 = vsel %vm555_vm1, %v917_v9, 0.0  ;;  %v918_v59 = vmul.f32 %v5404_v33, %v5404_v33  ;;  %v796_v27 = vmul.f32 0.03125, %v699_v52  ;;  %v5418_v47 = vsub.f32 %v5042_v37, %v795_v16 }
 0x1bd   :  { %1062 = vadd.xlane.f32.xlu0 %v1061_v38  ;;  %v690_v0 = vpop.xlane.xlu0 %689  ;;  %v1067_v9 = vsel %vm555_vm1, %v919_v22, 0.0 }
 0x1be   :  { %v793_v39 = vmul.f32 0.03125, %v690_v0  ;;  %v1064_v63 = vsel %vm555_vm1, %v918_v59, 0.0  ;;  %7417 = vst [vmem:[#allocation18_spill] sm:$0xff] %v5418_v47  ;;  %v5425_v52 = vsub.f32 %v5052_v58, %v796_v27  ;;  %v1070_v0 = vsel %vm555_vm1, %v920_v46, 0.0 }
 0x1bf   :  { %v693_v18 = vpop.xlane.xlu1 %692  ;;  %1065 = vadd.xlane.f32.xlu1 %v1064_v63  ;;  %v923_v58 = vmul.f32 %v5418_v47, %v5418_v47 }
 0x1c0   :  { %v5421_v17 = vsub.f32 %v5047_v48, %v793_v39  ;;  %v794_v35 = vmul.f32 0.03125, %v693_v18  ;;  %7419 = vst [vmem:[#allocation20_spill] sm:$0xff] %v5425_v52  ;;  %v924_v18 = vmul.f32 %v5425_v52, %v5425_v52 }
 0x1c1   :  { %1068 = vadd.xlane.f32.xlu0 %v1067_v9  ;;  %v708_v38 = vpop.xlane.xlu0 %707  ;;  %v7421_v9 = vld [vmem:[#allocation2_spill] sm:$0xff]  ;;  %v1079_v47 = vsel %vm555_vm1, %v923_v58, 0.0 }
 0x1c2   :  { %7418 = vst [vmem:[#allocation19_spill] sm:$0xff] %v5421_v17  ;;  %v5428_v59 = vsub.f32 %v5055_v3, %v794_v35  ;;  %v921_v37 = vmul.f32 %v5421_v17, %v5421_v17  ;;  %v799_v48 = vmul.f32 0.03125, %v708_v38  ;;  %v1082_v52 = vsel %vm555_vm1, %v924_v18, 0.0 }
 0x1c3   :  { %v711_v16 = vpop.xlane.xlu1 %710  ;;  %1071 = vadd.xlane.f32.xlu1 %v1070_v0  ;;  %v7423_v0 = vld [vmem:[#allocation3_spill] sm:$0xff] }
 0x1c4   :  { %7420 = vst [vmem:[#allocation21_spill] sm:$0xff] %v5428_v59  ;;  %v1073_v39 = vsel %vm555_vm1, %v921_v37, 0.0  ;;  %v922_v22 = vmul.f32 %v5428_v59, %v5428_v59  ;;  %v800_v3 = vmul.f32 0.03125, %v711_v16  ;;  %v5442_v38 = vsub.f32 %v7421_v9, %v799_v48  ;;  %v7425_v16 = vld [vmem:[#allocation4_spill] sm:$0xff] }
 0x1c5   :  { %1074 = vadd.xlane.f32.xlu0 %v1073_v39  ;;  %v702_v27 = vpop.xlane.xlu0 %701 }
 0x1c6   :  { %v797_v63 = vmul.f32 0.03125, %v702_v27  ;;  %v1076_v46 = vsel %vm555_vm1, %v922_v22, 0.0  ;;  %7422 = vst [vmem:[#allocation2_spill] sm:$0xff] %v5442_v38  ;;  %v5449_v27 = vsub.f32 %v7425_v16, %v800_v3  ;;  %v7427_v22 = vld [vmem:[#allocation5_spill] sm:$0xff]  ;;  %v927_v58 = vmul.f32 %v5442_v38, %v5442_v38 }
 0x1c7   :  { %v705_v35 = vpop.xlane.xlu1 %704  ;;  %1077 = vadd.xlane.f32.xlu1 %v1076_v46 }
 0x1c8   :  { %v5445_v37 = vsub.f32 %v7423_v0, %v797_v63  ;;  %v798_v59 = vmul.f32 0.03125, %v705_v35  ;;  %7426 = vst [vmem:[#allocation4_spill] sm:$0xff] %v5449_v27  ;;  %v928_v0 = vmul.f32 %v5449_v27, %v5449_v27  ;;  %v1091_v38 = vsel %vm555_vm1, %v927_v58, 0.0 }
 0x1c9   :  { %1080 = vadd.xlane.f32.xlu0 %v1079_v47  ;;  %v720_v39 = vpop.xlane.xlu0 %719 }
 0x1ca   :  { %7424 = vst [vmem:[#allocation3_spill] sm:$0xff] %v5445_v37  ;;  %v5452_v17 = vsub.f32 %v7427_v22, %v798_v59  ;;  %v925_v48 = vmul.f32 %v5445_v37, %v5445_v37  ;;  %v803_v63 = vmul.f32 0.03125, %v720_v39  ;;  %v7431_v22 = vld [vmem:[#allocation7_spill] sm:$0xff]  ;;  %v1094_v27 = vsel %vm555_vm1, %v928_v0, 0.0 }
 0x1cb   :  { %v723_v46 = vpop.xlane.xlu1 %722  ;;  %1083 = vadd.xlane.f32.xlu1 %v1082_v52  ;;  %v7429_v52 = vld [vmem:[#allocation6_spill] sm:$0xff] }
 0x1cc   :  { %7428 = vst [vmem:[#allocation5_spill] sm:$0xff] %v5452_v17  ;;  %v1085_v35 = vsel %vm555_vm1, %v925_v48, 0.0  ;;  %v926_v47 = vmul.f32 %v5452_v17, %v5452_v17  ;;  %v804_v3 = vmul.f32 0.03125, %v723_v46  ;;  %v5466_v39 = vsub.f32 %v7429_v52, %v803_v63  ;;  %v7433_v46 = vld [vmem:[#allocation8_spill] sm:$0xff] }
 0x1cd   :  { %1086 = vadd.xlane.f32.xlu0 %v1085_v35  ;;  %v714_v59 = vpop.xlane.xlu0 %713 }
 0x1ce   :  { %v801_v9 = vmul.f32 0.03125, %v714_v59  ;;  %v1088_v18 = vsel %vm555_vm1, %v926_v47, 0.0  ;;  %7430 = vst [vmem:[#allocation6_spill] sm:$0xff] %v5466_v39  ;;  %v5473_v35 = vsub.f32 %v7433_v46, %v804_v3  ;;  %v7435_v47 = vld [vmem:[#allocation9_spill] sm:$0xff] }
 0x1cf   :  { %v717_v16 = vpop.xlane.xlu1 %716  ;;  %1089 = vadd.xlane.f32.xlu1 %v1088_v18 }
 0x1d0   :  { %v5469_v48 = vsub.f32 %v7431_v22, %v801_v9  ;;  %v802_v17 = vmul.f32 0.03125, %v717_v16  ;;  %7434 = vst [vmem:[#allocation8_spill] sm:$0xff] %v5473_v35 }
 0x1d1   :  { %1092 = vadd.xlane.f32.xlu0 %v1091_v38  ;;  %v732_v59 = vpop.xlane.xlu0 %731  ;;  %v931_v38 = vmul.f32 %v5466_v39, %v5466_v39 }
 0x1d2   :  { %7432 = vst [vmem:[#allocation7_spill] sm:$0xff] %v5469_v48  ;;  %v5476_v37 = vsub.f32 %v7435_v47, %v802_v17  ;;  %v929_v63 = vmul.f32 %v5469_v48, %v5469_v48  ;;  %v807_v9 = vmul.f32 0.03125, %v732_v59  ;;  %v932_v17 = vmul.f32 %v5473_v35, %v5473_v35  ;;  %v7439_v47 = vld [vmem:[#allocation11_spill] sm:$0xff]  ;;  %v7441_v35 = vld [vmem:[#allocation12_spill] sm:$0xff] }
 0x1d3   :  { %v735_v18 = vpop.xlane.xlu1 %734  ;;  %1095 = vadd.xlane.f32.xlu1 %v1094_v27  ;;  %v7437_v27 = vld [vmem:[#allocation10_spill] sm:$0xff]  ;;  %v1103_v39 = vsel %vm555_vm1, %v931_v38, 0.0 }
 0x1d4   :  { %7436 = vst [vmem:[#allocation9_spill] sm:$0xff] %v5476_v37  ;;  %v1097_v16 = vsel %vm555_vm1, %v929_v63, 0.0  ;;  %v930_v58 = vmul.f32 %v5476_v37, %v5476_v37  ;;  %v808_v0 = vmul.f32 0.03125, %v735_v18  ;;  %v5490_v59 = vsub.f32 %v7437_v27, %v807_v9 }
 0x1d5   :  { %1098 = vadd.xlane.f32.xlu0 %v1097_v16  ;;  %v726_v3 = vpop.xlane.xlu0 %725  ;;  %v1106_v48 = vsel %vm555_vm1, %v932_v17, 0.0 }
 0x1d6   :  { %v805_v52 = vmul.f32 0.03125, %v726_v3  ;;  %v1100_v22 = vsel %vm555_vm1, %v930_v58, 0.0  ;;  %7438 = vst [vmem:[#allocation10_spill] sm:$0xff] %v5490_v59  ;;  %v5498_v18 = vsub.f32 %v7441_v35, %v808_v0  ;;  %v7443_v3 = vld [vmem:[#allocation13_spill] sm:$0xff]  ;;  %v935_v35 = vmul.f32 %v5490_v59, %v5490_v59 }
 0x1d7   :  { %v729_v46 = vpop.xlane.xlu1 %728  ;;  %1101 = vadd.xlane.f32.xlu1 %v1100_v22 }
 0x1d8   :  { %v5493_v63 = vsub.f32 %v7439_v47, %v805_v52  ;;  %v806_v37 = vmul.f32 0.03125, %v729_v46  ;;  %7442 = vst [vmem:[#allocation12_spill] sm:$0xff] %v5498_v18  ;;  %v7445_v52 = vld [vmem:[#allocation14_spill] sm:$0xff]  ;;  %v936_v46 = vmul.f32 %v5498_v18, %v5498_v18  ;;  %v1115_v47 = vsel %vm555_vm1, %v935_v35, 0.0 }
 0x1d9   :  { %1104 = vadd.xlane.f32.xlu0 %v1103_v39  ;;  %v738_v16 = vpop.xlane.xlu0 %737 }
 0x1da   :  { %7440 = vst [vmem:[#allocation11_spill] sm:$0xff] %v5493_v63  ;;  %v5501_v58 = vsub.f32 %v7443_v3, %v806_v37  ;;  %v809_v22 = vmul.f32 0.03125, %v738_v16  ;;  %v933_v9 = vmul.f32 %v5493_v63, %v5493_v63  ;;  %v1118_v3 = vsel %vm555_vm1, %v936_v46, 0.0 }
 0x1db   :  { %1107 = vadd.xlane.f32.xlu1 %v1106_v48 }
 0x1dc   :  { %7444 = vst [vmem:[#allocation13_spill] sm:$0xff] %v5501_v58  ;;  %v5506_v27 = vsub.f32 %v7445_v52, %v809_v22  ;;  %v1109_v38 = vsel %vm555_vm1, %v933_v9, 0.0  ;;  %v934_v39 = vmul.f32 %v5501_v58, %v5501_v58 }
 0x1dd   :  { %v741_v17 = vpop.xlane.xlu1 %740  ;;  %1110 = vadd.xlane.f32.xlu0 %v1109_v38 }
 0x1de   :  { %7446 = vst [vmem:[#allocation14_spill] sm:$0xff] %v5506_v27  ;;  %v810_v37 = vmul.f32 0.03125, %v741_v17  ;;  %v1112_v0 = vsel %vm555_vm1, %v934_v39, 0.0  ;;  %v937_v16 = vmul.f32 %v5506_v27, %v5506_v27 }
 0x1df   :  { %1113 = vadd.xlane.f32.xlu1 %v1112_v0 }
 0x1e0   :  { %v5517_v48 = vsub.f32 %v5133_v21, %v810_v37  ;;  %v1121_v9 = vsel %vm555_vm1, %v937_v16, 0.0 }
 0x1e1   :  { %1116 = vadd.xlane.f32.xlu0 %v1115_v47 }
 0x1e2   :  { %7447 = vst [vmem:[#allocation22_spill] sm:$0xff] %v5517_v48  ;;  %v938_v22 = vmul.f32 %v5517_v48, %v5517_v48 }
 0x1e3   :  { %1119 = vadd.xlane.f32.xlu1 %v1118_v3 }
 0x1e4   :  { %v1124_v52 = vsel %vm555_vm1, %v938_v22, 0.0 }
 0x1e5   :  { %1122 = vadd.xlane.f32.xlu0 %v1121_v9 }
 0x1e7   :  { %1125 = vadd.xlane.f32.xlu1 %v1124_v52 }
 0x1f0   :  { %v949_v21 = vpop.xlane.xlu0 %948 }
 0x1f1   :  { %v1135_v38 = vmul.f32 0.03125, %v949_v21 }
 0x1f3   :  { %v1199_v39 = vadd.f32 1e-05, %v1135_v38 }
 0x1f4   :  { %v952_v35 = vpop.xlane.xlu1 %951  ;;  %v943_v17 = vpop.xlane.xlu0 %942 }
 0x1f5   :  { %v1136_v37 = vmul.f32 0.03125, %v952_v35  ;;  %v1133_v0 = vmul.f32 0.03125, %v943_v17  ;;  %4401 = vrsqrt.f32 %v1199_v39 }
 0x1f7   :  { %v1200_v47 = vadd.f32 1e-05, %v1136_v37  ;;  %v1197_v27 = vadd.f32 1e-05, %v1133_v0 }
 0x1f8   :  { %v946_v46 = vpop.xlane.xlu1 %945 }
 0x1f9   :  { %4403 = vrsqrt.f32 %v1200_v47  ;;  %v1134_v48 = vmul.f32 0.03125, %v946_v46 }
 0x1fa   :  { %4405 = vrsqrt.f32 %v1197_v27  ;;  %v961_v3 = vpop.xlane.xlu0 %960 }
 0x1fb   :  { %v1198_v16 = vadd.f32 1e-05, %v1134_v48  ;;  %v1139_v9 = vmul.f32 0.03125, %v961_v3 }
 0x1fc   :  { %v964_v18 = vpop.xlane.xlu1 %963 }
 0x1fd   :  { %4407 = vrsqrt.f32 %v1198_v16  ;;  %v1203_v22 = vadd.f32 1e-05, %v1139_v9  ;;  %v1140_v52 = vmul.f32 0.03125, %v964_v18 }
 0x1fe   :  { %v955_v21 = vpop.xlane.xlu0 %954 }
 0x1ff   :  { %v1204_v38 = vadd.f32 1e-05, %v1140_v52  ;;  %v1137_v59 = vmul.f32 0.03125, %v955_v21  ;;  %4409 = vrsqrt.f32 %v1203_v22 }
 0x200   :  { %v958_v35 = vpop.xlane.xlu1 %957 }
 0x201   :  { %4411 = vrsqrt.f32 %v1204_v38  ;;  %v1201_v17 = vadd.f32 1e-05, %v1137_v59  ;;  %v1138_v37 = vmul.f32 0.03125, %v958_v35  ;;  %v7448_v38 = vld [vmem:[#allocation15_spill] sm:$0xff] }
 0x202   :  { %v973_v39 = vpop.xlane.xlu0 %972  ;;  %v4402_v46 = vpop.eup %4401 }
 0x203   :  { %4413 = vrsqrt.f32 %v1201_v17  ;;  %v1202_v0 = vadd.f32 1e-05, %v1138_v37  ;;  %v1143_v47 = vmul.f32 0.03125, %v973_v39  ;;  %v1327_v35 = vmul.f32 %v4402_v46, %v7448_v38  ;;  %v5533_v39 = vld [vmem:[%s7331_s3] ss:$0 sm:$0xff] }
 0x204   :  { %v976_v27 = vpop.xlane.xlu1 %975 }
 0x205   :  { %4415 = vrsqrt.f32 %v1202_v0  ;;  %v1207_v48 = vadd.f32 1e-05, %v1143_v47  ;;  %v1144_v3 = vmul.f32 0.03125, %v976_v27 }
 0x206   :  { %v4404_v16 = vpop.eup %4403  ;;  %v967_v9 = vpop.xlane.xlu0 %966 }
 0x207   :  { %v4406_v18 = vpop.eup %4405  ;;  %v1208_v58 = vadd.f32 1e-05, %v1144_v3  ;;  %v1141_v52 = vmul.f32 0.03125, %v967_v9  ;;  %v1328_v22 = vmul.f32 %v4404_v16, %v5146_v12  ;;  %4417 = vrsqrt.f32 %v1207_v48 }
 0x208   :  { %v970_v21 = vpop.xlane.xlu1 %969  ;;  %v1325_v59 = vmul.f32 %v4406_v18, %v5141_v24  ;;  %v7449_v24 = vld [vmem:[#allocation16_spill] sm:$0xff] }
 0x209   :  { %4419 = vrsqrt.f32 %v1208_v58  ;;  %v1205_v17 = vadd.f32 1e-05, %v1141_v52  ;;  %v1142_v37 = vmul.f32 0.03125, %v970_v21  ;;  %v1398_v12 = vmul.f32 %v5533_v39, %v1328_v22  ;;  %v5542_v21 = vld [vmem:[%s7332_s4] ss:$0 sm:$0xff] }
 0x20a   :  { %v4408_v0 = vpop.eup %4407  ;;  %v985_v47 = vpop.xlane.xlu0 %984  ;;  %v1395_v27 = vmul.f32 %v5533_v39, %v1325_v59  ;;  %v1397_v58 = vmul.f32 %v5533_v39, %v1327_v35 }
 0x20b   :  { %4421 = vrsqrt.f32 %v1205_v17  ;;  %v1206_v48 = vadd.f32 1e-05, %v1142_v37  ;;  %v1147_v3 = vmul.f32 0.03125, %v985_v47  ;;  %v1326_v16 = vmul.f32 %v4408_v0, %v7449_v24 }
 0x20c   :  { %v988_v46 = vpop.xlane.xlu1 %987  ;;  %v4410_v9 = vpop.eup %4409  ;;  %v5546_v17 = vadd.f32 %v5542_v21, %v1398_v12  ;;  %v5549_v35 = vadd.f32 %v5542_v21, %v1395_v27  ;;  %v5555_v24 = vadd.f32 %v5542_v21, %v1397_v58 }
 0x20d   :  { %4423 = vrsqrt.f32 %v1206_v48  ;;  %v1211_v18 = vadd.f32 1e-05, %v1147_v3  ;;  %v1148_v52 = vmul.f32 0.03125, %v988_v46  ;;  %v1396_v59 = vmul.f32 %v5533_v39, %v1326_v16 }
 0x20e   :  { %v4412_v22 = vpop.eup %4411  ;;  %v979_v38 = vpop.xlane.xlu0 %978  ;;  %v1331_v16 = vmul.f32 %v4410_v9, %v5161_v62 }
 0x20f   :  { %v1212_v37 = vadd.f32 1e-05, %v1148_v52  ;;  %v1145_v0 = vmul.f32 0.03125, %v979_v38  ;;  %v5552_v47 = vadd.f32 %v5542_v21, %v1396_v59  ;;  %4425 = vrsqrt.f32 %v1211_v18 }
 0x210   :  { %v4414_v48 = vpop.eup %4413  ;;  %v982_v3 = vpop.xlane.xlu1 %981  ;;  %v1332_v46 = vmul.f32 %v4412_v22, %v5164_v11  ;;  %v1530_v59 = vpack.c.bf16 %v5546_v17, %v5555_v24 }
 0x211   :  { %4427 = vrsqrt.f32 %v1212_v37  ;;  %v1209_v12 = vadd.f32 1e-05, %v1145_v0  ;;  %v1146_v52 = vmul.f32 0.03125, %v982_v3  ;;  %v1529_v27 = vpack.c.bf16 %v5552_v47, %v5549_v35 }
 0x212   :  { %v4416_v38 = vpop.eup %4415  ;;  %v997_v63 = vpop.xlane.xlu0 %996  ;;  %v1329_v18 = vmul.f32 %v4414_v48, %v5170_v44  ;;  %v1402_v58 = vmul.f32 %v5533_v39, %v1332_v46  ;;  %v1401_v37 = vmul.f32 %v5533_v39, %v1331_v16 }
 0x213   :  { %4429 = vrsqrt.f32 %v1209_v12  ;;  %v1210_v28 = vadd.f32 1e-05, %v1146_v52  ;;  %v1151_v62 = vmul.f32 0.03125, %v997_v63  ;;  %4196 = vmatprep.mubr.msk.bf16.mxu1 %vm555_vm1, %v1529_v27  ;;  %v1330_v11 = vmul.f32 %v4416_v38, %v5176_v43 }
 0x214   :  { %v1000_v9 = vpop.xlane.xlu1 %999  ;;  %4197 = vmatmul.mubr.msk.bf16.vlgmr.msra.gmra.mxu1 %vm555_vm1, %v1530_v59  ;;  %v1399_v22 = vmul.f32 %v5533_v39, %v1329_v18  ;;  %v4418_v0 = vpop.eup %4417  ;;  %v5572_v63 = vadd.f32 %v5542_v21, %v1402_v58  ;;  %v5581_v59 = vadd.f32 %v5542_v21, %v1401_v37 }
 0x215   :  { %4431 = vrsqrt.f32 %v1210_v28  ;;  %v1215_v3 = vadd.f32 1e-05, %v1151_v62  ;;  %v1152_v44 = vmul.f32 0.03125, %v1000_v9  ;;  %v1400_v48 = vmul.f32 %v5533_v39, %v1330_v11 }
 0x216   :  { %v4420_v46 = vpop.eup %4419  ;;  %v991_v12 = vpop.xlane.xlu0 %990  ;;  %v5575_v27 = vadd.f32 %v5542_v21, %v1399_v22  ;;  %v1335_v18 = vmul.f32 %v4418_v0, %v5182_v53 }
 0x217   :  { %v1216_v52 = vadd.f32 1e-05, %v1152_v44  ;;  %v1149_v43 = vmul.f32 0.03125, %v991_v12  ;;  %v5578_v38 = vadd.f32 %v5542_v21, %v1400_v48  ;;  %4433 = vrsqrt.f32 %v1215_v3 }
 0x218   :  { %v4422_v16 = vpop.eup %4421  ;;  %v994_v28 = vpop.xlane.xlu1 %993  ;;  %v1336_v62 = vmul.f32 %v4420_v46, %v5188_v40  ;;  %v1532_v48 = vpack.c.bf16 %v5572_v63, %v5581_v59 }
 0x219   :  { %4435 = vrsqrt.f32 %v1216_v52  ;;  %v1213_v58 = vadd.f32 1e-05, %v1149_v43  ;;  %v1150_v11 = vmul.f32 0.03125, %v994_v28  ;;  %v1531_v9 = vpack.c.bf16 %v5578_v38, %v5575_v27 }
 0x21a   :  { %v4424_v22 = vpop.eup %4423  ;;  %v1009_v44 = vpop.xlane.xlu0 %1008  ;;  %v1333_v3 = vmul.f32 %v4422_v16, %v5194_v60  ;;  %v1406_v37 = vmul.f32 %v5533_v39, %v1336_v62  ;;  %v1405_v52 = vmul.f32 %v5533_v39, %v1335_v18 }
 0x21b   :  { %4437 = vrsqrt.f32 %v1213_v58  ;;  %v1214_v12 = vadd.f32 1e-05, %v1150_v11  ;;  %v1155_v53 = vmul.f32 0.03125, %v1009_v44  ;;  %4200 = vmatprep.mubr.msk.bf16.mxu1 %vm555_vm1, %v1531_v9  ;;  %v1334_v40 = vmul.f32 %v4424_v22, %v5200_v51 }
 0x21c   :  { %v1012_v0 = vpop.xlane.xlu1 %1011  ;;  %4201 = vmatmul.mubr.msk.bf16.gmra.mxu1 %vm555_vm1, %v1532_v48  ;;  %v1403_v46 = vmul.f32 %v5533_v39, %v1333_v3  ;;  %v4426_v43 = vpop.eup %4425  ;;  %v5598_v11 = vadd.f32 %v5542_v21, %v1406_v37  ;;  %v5607_v3 = vadd.f32 %v5542_v21, %v1405_v52 }
 0x21d   :  { %4439 = vrsqrt.f32 %v1214_v12  ;;  %v1219_v28 = vadd.f32 1e-05, %v1155_v53  ;;  %v1156_v60 = vmul.f32 0.03125, %v1012_v0  ;;  %v1404_v16 = vmul.f32 %v5533_v39, %v1334_v40 }
 0x21e   :  { %v4428_v62 = vpop.eup %4427  ;;  %v1003_v58 = vpop.xlane.xlu0 %1002  ;;  %v5601_v22 = vadd.f32 %v5542_v21, %v1403_v46  ;;  %v1339_v12 = vmul.f32 %v4426_v43, %v5206_v1 }
 0x21f   :  { %v1220_v9 = vadd.f32 1e-05, %v1156_v60  ;;  %v1153_v51 = vmul.f32 0.03125, %v1003_v58  ;;  %v5604_v44 = vadd.f32 %v5542_v21, %v1404_v16  ;;  %4441 = vrsqrt.f32 %v1219_v28 }
 0x220   :  { %v4430_v18 = vpop.eup %4429  ;;  %v1006_v48 = vpop.xlane.xlu1 %1005  ;;  %v1340_v53 = vmul.f32 %v4428_v62, %v5212_v54  ;;  %v1534_v16 = vpack.c.bf16 %v5598_v11, %v5607_v3 }
 0x221   :  { %4443 = vrsqrt.f32 %v1220_v9  ;;  %v1217_v37 = vadd.f32 1e-05, %v1153_v51  ;;  %v1154_v40 = vmul.f32 0.03125, %v1006_v48  ;;  %v1533_v0 = vpack.c.bf16 %v5604_v44, %v5601_v22 }
 0x222   :  { %v4432_v46 = vpop.eup %4431  ;;  %v744_v60 = vpop.xlane.xlu0 %743  ;;  %v1337_v28 = vmul.f32 %v4430_v18, %v5218_v8  ;;  %v1410_v52 = vmul.f32 %v5533_v39, %v1340_v53  ;;  %v1409_v9 = vmul.f32 %v5533_v39, %v1339_v12 }
 0x223   :  { %4445 = vrsqrt.f32 %v1217_v37  ;;  %v1218_v58 = vadd.f32 1e-05, %v1154_v40  ;;  %v811_v1 = vmul.f32 0.03125, %v744_v60  ;;  %4204 = vmatprep.mubr.msk.bf16.mxu1 %vm555_vm1, %v1533_v0  ;;  %v1338_v54 = vmul.f32 %v4432_v46, %v5224_v57 }
 0x224   :  { %v747_v43 = vpop.xlane.xlu1 %746  ;;  %4205 = vmatmul.mubr.msk.bf16.gmra.mxu1 %vm555_vm1, %v1534_v16  ;;  %v1407_v62 = vmul.f32 %v5533_v39, %v1337_v28  ;;  %v4434_v51 = vpop.eup %4433  ;;  %v5630_v57 = vadd.f32 %v5542_v21, %v1410_v52  ;;  %v5641_v28 = vadd.f32 %v5542_v21, %v1409_v9 }
 0x225   :  { %4447 = vrsqrt.f32 %v1218_v58  ;;  %v5623_v8 = vsub.f32 %v5285_v14, %v811_v1  ;;  %v812_v18 = vmul.f32 0.03125, %v747_v43  ;;  %v1408_v48 = vmul.f32 %v5533_v39, %v1338_v54 }
 0x226   :  { %v4436_v53 = vpop.eup %4435  ;;  %v1015_v37 = vpop.xlane.xlu0 %1014  ;;  %v5627_v40 = vadd.f32 %v5542_v21, %v1407_v62  ;;  %v1343_v58 = vmul.f32 %v4434_v51, %v5230_v13  ;;  %v1536_v9 = vpack.c.bf16 %v5630_v57, %v5641_v28 }
 0x227   :  { %v5633_v0 = vsub.f32 %v5292_v32, %v812_v18  ;;  %v1157_v12 = vmul.f32 0.03125, %v1015_v37  ;;  %v939_v46 = vmul.f32 %v5623_v8, %v5623_v8  ;;  %v5638_v14 = vadd.f32 %v5542_v21, %v1408_v48 }
 0x228   :  { %v4438_v60 = vpop.eup %4437  ;;  %v1018_v16 = vpop.xlane.xlu1 %1017  ;;  %v1344_v52 = vmul.f32 %v4436_v53, %v5236_v2 }
 0x229   :  { %7450 = vst [vmem:[#allocation15_spill] sm:$0xff] %v5638_v14  ;;  %v1221_v1 = vadd.f32 1e-05, %v1157_v12  ;;  %v1158_v54 = vmul.f32 0.03125, %v1018_v16  ;;  %v1127_v32 = vsel %vm555_vm1, %v939_v46, 0.0  ;;  %v1535_v43 = vpack.c.bf16 %v5638_v14, %v5627_v40 }
 0x22a   :  { %v4440_v62 = vpop.eup %4439  ;;  %1128 = vadd.xlane.f32.xlu0 %v1127_v32  ;;  %v1021_v18 = vpop.xlane.xlu0 %1020  ;;  %v940_v48 = vmul.f32 %v5633_v0, %v5633_v0  ;;  %v1341_v13 = vmul.f32 %v4438_v60, %v5242_v20  ;;  %v1414_v2 = vmul.f32 %v5533_v39, %v1344_v52  ;;  %v1413_v32 = vmul.f32 %v5533_v39, %v1343_v58 }
 0x22b   :  { %4449 = vrsqrt.f32 %v1221_v1  ;;  %v1222_v51 = vadd.f32 1e-05, %v1158_v54  ;;  %v1159_v53 = vmul.f32 0.03125, %v1021_v18  ;;  %4208 = vmatprep.mubr.msk.bf16.mxu1 %vm555_vm1, %v1535_v43  ;;  %v1342_v37 = vmul.f32 %v4440_v62, %v5248_v5 }
 0x22c   :  { %v1130_v12 = vsel %vm555_vm1, %v940_v48, 0.0  ;;  %v1024_v46 = vpop.xlane.xlu1 %1023  ;;  %4209 = vmatmul.mubr.msk.bf16.gmra.mxu1 %vm555_vm1, %v1536_v9  ;;  %v1411_v16 = vmul.f32 %v5533_v39, %v1341_v13  ;;  %v4442_v14 = vpop.eup %4441  ;;  %v5665_v43 = vadd.f32 %v5542_v21, %v1414_v2  ;;  %v5671_v13 = vadd.f32 %v5542_v21, %v1413_v32 }
 0x22d   :  { %4451 = vrsqrt.f32 %v1222_v51  ;;  %v1223_v20 = vadd.f32 1e-05, %v1159_v53  ;;  %1131 = vadd.xlane.f32.xlu1 %v1130_v12  ;;  %v1160_v60 = vmul.f32 0.03125, %v1024_v46  ;;  %v1412_v52 = vmul.f32 %v5533_v39, %v1342_v37 }
 0x22e   :  { %v4444_v1 = vpop.eup %4443  ;;  %v1027_v54 = vpop.xlane.xlu0 %1026  ;;  %v5662_v5 = vadd.f32 %v5542_v21, %v1411_v16  ;;  %v1347_v51 = vmul.f32 %v4442_v14, %v5257_v4 }
 0x22f   :  { %4453 = vrsqrt.f32 %v1223_v20  ;;  %v1224_v62 = vadd.f32 1e-05, %v1160_v60  ;;  %v1161_v18 = vmul.f32 0.03125, %v1027_v54  ;;  %v5668_v58 = vadd.f32 %v5542_v21, %v1412_v52 }
 0x230   :  { %v4446_v48 = vpop.eup %4445  ;;  %v1030_v9 = vpop.xlane.xlu1 %1029  ;;  %v1348_v53 = vmul.f32 %v4444_v1, %v5263_v7  ;;  %v1538_v20 = vpack.c.bf16 %v5665_v43, %v5671_v13  ;;  %v1417_v54 = vmul.f32 %v5533_v39, %v1347_v51 }
 0x231   :  { %4455 = vrsqrt.f32 %v1224_v62  ;;  %v1225_v37 = vadd.f32 1e-05, %v1161_v18  ;;  %v1162_v12 = vmul.f32 0.03125, %v1030_v9  ;;  %v1537_v2 = vpack.c.bf16 %v5668_v58, %v5662_v5 }
 0x232   :  { %v4448_v46 = vpop.eup %4447  ;;  %v1033_v16 = vpop.xlane.xlu0 %1032  ;;  %v1345_v60 = vmul.f32 %v4446_v48, %v5272_v19  ;;  %v1418_v32 = vmul.f32 %v5533_v39, %v1348_v53 }
 0x233   :  { %4457 = vrsqrt.f32 %v1225_v37  ;;  %v1226_v52 = vadd.f32 1e-05, %v1162_v12  ;;  %v1163_v4 = vmul.f32 0.03125, %v1033_v16  ;;  %4212 = vmatprep.mubr.msk.bf16.mxu1 %vm555_vm1, %v1537_v2  ;;  %v1346_v7 = vmul.f32 %v4448_v46, %v5278_v25 }
 0x234   :  { %v1036_v14 = vpop.xlane.xlu1 %1035  ;;  %4213 = vmatmul.mubr.msk.bf16.gmra.mxu1 %vm555_vm1, %v1538_v20  ;;  %v1415_v1 = vmul.f32 %v5533_v39, %v1345_v60  ;;  %v5691_v53 = vadd.f32 %v5542_v21, %v1418_v32  ;;  %v5697_v46 = vadd.f32 %v5542_v21, %v1417_v54 }
 0x235   :  { %4459 = vrsqrt.f32 %v1226_v52  ;;  %v1227_v62 = vadd.f32 1e-05, %v1163_v4  ;;  %v1164_v18 = vmul.f32 0.03125, %v1036_v14  ;;  %v1416_v19 = vmul.f32 %v5533_v39, %v1346_v7 }
 0x236   :  { %v1039_v48 = vpop.xlane.xlu0 %1038  ;;  %v5688_v9 = vadd.f32 %v5542_v21, %v1415_v1  ;;  %v1540_v4 = vpack.c.bf16 %v5691_v53, %v5697_v46 }
 0x237   :  { %4461 = vrsqrt.f32 %v1227_v62  ;;  %v1228_v25 = vadd.f32 1e-05, %v1164_v18  ;;  %v1165_v37 = vmul.f32 0.03125, %v1039_v48  ;;  %v5694_v12 = vadd.f32 %v5542_v21, %v1416_v19 }
 0x238   :  { %v4450_v2 = vpop.eup %4449  ;;  %v1042_v51 = vpop.xlane.xlu1 %1041 }
 0x239   :  { %4463 = vrsqrt.f32 %v1228_v25  ;;  %v1229_v16 = vadd.f32 1e-05, %v1165_v37  ;;  %v1166_v20 = vmul.f32 0.03125, %v1042_v51  ;;  %v1539_v60 = vpack.c.bf16 %v5694_v12, %v5688_v9 }
 0x23a   :  { %v4452_v52 = vpop.eup %4451  ;;  %v1045_v32 = vpop.xlane.xlu0 %1044  ;;  %v1349_v7 = vmul.f32 %v4450_v2, %v5299_v34 }
 0x23b   :  { %4465 = vrsqrt.f32 %v1229_v16  ;;  %v1230_v14 = vadd.f32 1e-05, %v1166_v20  ;;  %v1167_v1 = vmul.f32 0.03125, %v1045_v32  ;;  %4216 = vmatprep.mubr.msk.bf16.mxu1 %vm555_vm1, %v1539_v60  ;;  %v1350_v54 = vmul.f32 %v4452_v52, %v5307_v42 }
 0x23c   :  { %v4454_v62 = vpop.eup %4453  ;;  %v1048_v18 = vpop.xlane.xlu1 %1047  ;;  %4217 = vmatmul.mubr.msk.bf16.gmra.mxu1 %vm555_vm1, %v1540_v4  ;;  %v1419_v19 = vmul.f32 %v5533_v39, %v1349_v7 }
 0x23d   :  { %4467 = vrsqrt.f32 %v1230_v14  ;;  %v1231_v48 = vadd.f32 1e-05, %v1167_v1  ;;  %v1168_v25 = vmul.f32 0.03125, %v1048_v18  ;;  %v1420_v37 = vmul.f32 %v5533_v39, %v1350_v54 }
 0x23e   :  { %v4456_v51 = vpop.eup %4455  ;;  %v1051_v34 = vpop.xlane.xlu0 %1050  ;;  %v5710_v2 = vadd.f32 %v5542_v21, %v1419_v19  ;;  %v1351_v16 = vmul.f32 %v4454_v62, %v5296_v30 }
 0x23f   :  { %4469 = vrsqrt.f32 %v1231_v48  ;;  %v1232_v42 = vadd.f32 1e-05, %v1168_v25  ;;  %v1169_v20 = vmul.f32 0.03125, %v1051_v34  ;;  %v5714_v60 = vadd.f32 %v5542_v21, %v1420_v37 }
 0x240   :  { %v4458_v52 = vpop.eup %4457  ;;  %v1054_v32 = vpop.xlane.xlu1 %1053  ;;  %v1352_v4 = vmul.f32 %v4456_v51, %v5304_v36  ;;  %v1421_v7 = vmul.f32 %v5533_v39, %v1351_v16 }
 0x241   :  { %4471 = vrsqrt.f32 %v1232_v42  ;;  %v1233_v14 = vadd.f32 1e-05, %v1169_v20  ;;  %v1170_v1 = vmul.f32 0.03125, %v1054_v32  ;;  %v1541_v54 = vpack.c.bf16 %v5714_v60, %v5710_v2 }
 0x242   :  { %v4460_v18 = vpop.eup %4459  ;;  %v1057_v30 = vpop.xlane.xlu0 %1056  ;;  %v1422_v62 = vmul.f32 %v5533_v39, %v1352_v4  ;;  %v1353_v19 = vmul.f32 %v4458_v52, %v5325_v56  ;;  %v5725_v34 = vadd.f32 %v5542_v21, %v1421_v7 }
 0x243   :  { %4473 = vrsqrt.f32 %v1233_v14  ;;  %v1234_v48 = vadd.f32 1e-05, %v1170_v1  ;;  %v1171_v25 = vmul.f32 0.03125, %v1057_v30  ;;  %4220 = vmatprep.mubr.msk.bf16.mxu1 %vm555_vm1, %v1541_v54  ;;  %v1354_v36 = vmul.f32 %v4460_v18, %v5332_v45 }
 0x244   :  { %v4462_v37 = vpop.eup %4461  ;;  %v1060_v51 = vpop.xlane.xlu1 %1059  ;;  %v5728_v16 = vadd.f32 %v5542_v21, %v1422_v62  ;;  %v1423_v42 = vmul.f32 %v5533_v39, %v1353_v19 }
 0x245   :  { %4475 = vrsqrt.f32 %v1234_v48  ;;  %v1235_v20 = vadd.f32 1e-05, %v1171_v25  ;;  %v1172_v56 = vmul.f32 0.03125, %v1060_v51  ;;  %v1424_v52 = vmul.f32 %v5533_v39, %v1354_v36 }
 0x246   :  { %v4464_v32 = vpop.eup %4463  ;;  %v1063_v4 = vpop.xlane.xlu0 %1062  ;;  %v1542_v45 = vpack.c.bf16 %v5728_v16, %v5725_v34  ;;  %v5735_v14 = vadd.f32 %v5542_v21, %v1423_v42  ;;  %v1355_v7 = vmul.f32 %v4462_v37, %v5322_v29 }
 0x247   :  { %4477 = vrsqrt.f32 %v1235_v20  ;;  %v1236_v1 = vadd.f32 1e-05, %v1172_v56  ;;  %v1173_v54 = vmul.f32 0.03125, %v1063_v4  ;;  %v5739_v18 = vadd.f32 %v5542_v21, %v1424_v52 }
 0x248   :  { %v4466_v30 = vpop.eup %4465  ;;  %4221 = vmatmul.mubr.msk.bf16.gmra.mxu1 %vm555_vm1, %v1542_v45  ;;  %v1066_v62 = vpop.xlane.xlu1 %1065  ;;  %v1356_v19 = vmul.f32 %v4464_v32, %v5329_v55  ;;  %v1425_v48 = vmul.f32 %v5533_v39, %v1355_v7 }
 0x249   :  { %4479 = vrsqrt.f32 %v1236_v1  ;;  %v1237_v25 = vadd.f32 1e-05, %v1173_v54  ;;  %v1174_v36 = vmul.f32 0.03125, %v1066_v62  ;;  %v1543_v29 = vpack.c.bf16 %v5739_v18, %v5735_v14 }
 0x24a   :  { %v4468_v37 = vpop.eup %4467  ;;  %v1069_v51 = vpop.xlane.xlu0 %1068  ;;  %v1426_v42 = vmul.f32 %v5533_v39, %v1356_v19  ;;  %v1357_v20 = vmul.f32 %v4466_v30, %v5349_v26  ;;  %v5751_v45 = vadd.f32 %v5542_v21, %v1425_v48 }
 0x24b   :  { %4481 = vrsqrt.f32 %v1237_v25  ;;  %v1238_v56 = vadd.f32 1e-05, %v1174_v36  ;;  %v1175_v52 = vmul.f32 0.03125, %v1069_v51  ;;  %4224 = vmatprep.mubr.msk.bf16.mxu1 %vm555_vm1, %v1543_v29  ;;  %v1358_v55 = vmul.f32 %v4468_v37, %v5356_v61 }
 0x24c   :  { %v4470_v32 = vpop.eup %4469  ;;  %v1072_v4 = vpop.xlane.xlu1 %1071  ;;  %v5754_v7 = vadd.f32 %v5542_v21, %v1426_v42  ;;  %v1427_v1 = vmul.f32 %v5533_v39, %v1357_v20 }
 0x24d   :  { %4483 = vrsqrt.f32 %v1238_v56  ;;  %v1239_v54 = vadd.f32 1e-05, %v1175_v52  ;;  %v1176_v26 = vmul.f32 0.03125, %v1072_v4  ;;  %v1428_v30 = vmul.f32 %v5533_v39, %v1358_v55 }
 0x24e   :  { %v4472_v62 = vpop.eup %4471  ;;  %v1075_v19 = vpop.xlane.xlu0 %1074  ;;  %v1544_v61 = vpack.c.bf16 %v5754_v7, %v5751_v45  ;;  %v5761_v25 = vadd.f32 %v5542_v21, %v1427_v1  ;;  %v1359_v48 = vmul.f32 %v4470_v32, %v5346_v50 }
 0x24f   :  { %4485 = vrsqrt.f32 %v1239_v54  ;;  %v1240_v36 = vadd.f32 1e-05, %v1176_v26  ;;  %v1177_v29 = vmul.f32 0.03125, %v1075_v19  ;;  %v5765_v37 = vadd.f32 %v5542_v21, %v1428_v30 }
 0x250   :  { %v4474_v51 = vpop.eup %4473  ;;  %4225 = vmatmul.mubr.msk.bf16.gmra.mxu1 %vm555_vm1, %v1544_v61  ;;  %v1078_v42 = vpop.xlane.xlu1 %1077  ;;  %v1360_v20 = vmul.f32 %v4472_v62, %v5353_v49  ;;  %v1429_v56 = vmul.f32 %v5533_v39, %v1359_v48 }
 0x251   :  { %4487 = vrsqrt.f32 %v1240_v36  ;;  %v1241_v52 = vadd.f32 1e-05, %v1177_v29  ;;  %v1178_v55 = vmul.f32 0.03125, %v1078_v42  ;;  %v1545_v50 = vpack.c.bf16 %v5765_v37, %v5761_v25 }
 0x252   :  { %v4476_v32 = vpop.eup %4475  ;;  %v1081_v4 = vpop.xlane.xlu0 %1080  ;;  %v1430_v1 = vmul.f32 %v5533_v39, %v1360_v20  ;;  %v1361_v54 = vmul.f32 %v4474_v51, %v5373_v31  ;;  %v5777_v61 = vadd.f32 %v5542_v21, %v1429_v56 }
 0x253   :  { %4489 = vrsqrt.f32 %v1241_v52  ;;  %v1242_v26 = vadd.f32 1e-05, %v1178_v55  ;;  %v1179_v30 = vmul.f32 0.03125, %v1081_v4  ;;  %4228 = vmatprep.mubr.msk.bf16.mxu1 %vm555_vm1, %v1545_v50  ;;  %v1362_v49 = vmul.f32 %v4476_v32, %v5380_v15 }
 0x254   :  { %v4478_v62 = vpop.eup %4477  ;;  %v1084_v19 = vpop.xlane.xlu1 %1083  ;;  %v5780_v48 = vadd.f32 %v5542_v21, %v1430_v1  ;;  %v1431_v36 = vmul.f32 %v5533_v39, %v1361_v54 }
 0x255   :  { %4491 = vrsqrt.f32 %v1242_v26  ;;  %v1243_v29 = vadd.f32 1e-05, %v1179_v30  ;;  %v1180_v31 = vmul.f32 0.03125, %v1084_v19  ;;  %v1432_v51 = vmul.f32 %v5533_v39, %v1362_v49 }
 0x256   :  { %v4480_v42 = vpop.eup %4479  ;;  %v1087_v20 = vpop.xlane.xlu0 %1086  ;;  %v1546_v15 = vpack.c.bf16 %v5780_v48, %v5777_v61  ;;  %v5787_v52 = vadd.f32 %v5542_v21, %v1431_v36  ;;  %v1363_v56 = vmul.f32 %v4478_v62, %v5370_v6 }
 0x257   :  { %4493 = vrsqrt.f32 %v1243_v29  ;;  %v1244_v55 = vadd.f32 1e-05, %v1180_v31  ;;  %v1181_v50 = vmul.f32 0.03125, %v1087_v20  ;;  %v5791_v32 = vadd.f32 %v5542_v21, %v1432_v51 }
 0x258   :  { %v4482_v4 = vpop.eup %4481  ;;  %4229 = vmatmul.mubr.msk.bf16.gmra.mxu1 %vm555_vm1, %v1546_v15  ;;  %v1090_v1 = vpop.xlane.xlu1 %1089  ;;  %v1364_v54 = vmul.f32 %v4480_v42, %v5377_v10  ;;  %v1433_v26 = vmul.f32 %v5533_v39, %v1363_v56 }
 0x259   :  { %4495 = vrsqrt.f32 %v1244_v55  ;;  %v1245_v30 = vadd.f32 1e-05, %v1181_v50  ;;  %v1182_v49 = vmul.f32 0.03125, %v1090_v1  ;;  %v1547_v6 = vpack.c.bf16 %v5791_v32, %v5787_v52 }
 0x25a   :  { %v4484_v62 = vpop.eup %4483  ;;  %v1093_v19 = vpop.xlane.xlu0 %1092  ;;  %v1434_v36 = vmul.f32 %v5533_v39, %v1364_v54  ;;  %v1365_v29 = vmul.f32 %v4482_v4, %v5397_v41  ;;  %v5803_v15 = vadd.f32 %v5542_v21, %v1433_v26  ;;  %v4399_v41 = vld [vmem:[%s7333_s6] sm:$0xff]  }
 0x25b   :  { %4497 = vrsqrt.f32 %v1245_v30  ;;  %v1246_v31 = vadd.f32 1e-05, %v1182_v49  ;;  %v1183_v51 = vmul.f32 0.03125, %v1093_v19  ;;  %4232 = vmatprep.mubr.msk.bf16.mxu1 %vm555_vm1, %v1547_v6  ;;  %v1366_v10 = vmul.f32 %v4484_v62, %v5404_v33  ;;  %4260 = vmatprep.subr.bf16.mxu1 %v4399_v41 }
 0x25c   :  { %v4486_v42 = vpop.eup %4485  ;;  %v1096_v20 = vpop.xlane.xlu1 %1095  ;;  %v5806_v56 = vadd.f32 %v5542_v21, %v1434_v36  ;;  %v1435_v55 = vmul.f32 %v5533_v39, %v1365_v29  ;;  %4261 = vmatpush3.bf16.msra.mxu1 %v4399_v41 }
 0x25d   :  { %4499 = vrsqrt.f32 %v1246_v31  ;;  %v1247_v50 = vadd.f32 1e-05, %v1183_v51  ;;  %v1184_v4 = vmul.f32 0.03125, %v1096_v20  ;;  %v1436_v1 = vmul.f32 %v5533_v39, %v1366_v10  ;;  %v7453_v31 = vld [vmem:[#allocation17_spill] sm:$0xff] }
 0x25e   :  { %v4488_v33 = vpop.eup %4487  ;;  %v1099_v54 = vpop.xlane.xlu0 %1098  ;;  %v1548_v26 = vpack.c.bf16 %v5806_v56, %v5803_v15  ;;  %v5816_v30 = vadd.f32 %v5542_v21, %v1435_v55  ;;  %v1367_v49 = vmul.f32 %v4486_v42, %v5394_v23 }
 0x25f   :  { %4501 = vrsqrt.f32 %v1247_v50  ;;  %v1248_v6 = vadd.f32 1e-05, %v1184_v4  ;;  %v1185_v62 = vmul.f32 0.03125, %v1099_v54  ;;  %v5820_v19 = vadd.f32 %v5542_v21, %v1436_v1  ;;  %v7454_v1 = vld [vmem:[#allocation19_spill] sm:$0xff] }
 0x260   :  { %7451 = vst [vmem:[#allocation16_spill] sm:$0xff] %v5816_v30  ;;  %v4490_v36 = vpop.eup %4489  ;;  %4233 = vmatmul.mubr.msk.bf16.gmra.mxu1 %vm555_vm1, %v1548_v26  ;;  %v1102_v29 = vpop.xlane.xlu1 %1101  ;;  %v1368_v51 = vmul.f32 %v4488_v33, %v7453_v31  ;;  %v1437_v10 = vmul.f32 %v5533_v39, %v1367_v49  ;;  %v7455_v33 = vld [vmem:[#allocation21_spill] sm:$0xff] }
 0x261   :  { %7452 = vst [vmem:[#allocation23_spill] sm:$0xff] %v5820_v19  ;;  %4503 = vrsqrt.f32 %v1248_v6  ;;  %v1249_v20 = vadd.f32 1e-05, %v1185_v62  ;;  %v1186_v55 = vmul.f32 0.03125, %v1102_v29  ;;  %v1549_v23 = vpack.c.bf16 %v5820_v19, %v5816_v30 }
 0x262   :  { %v4492_v42 = vpop.eup %4491  ;;  %v1105_v50 = vpop.xlane.xlu0 %1104  ;;  %v1438_v4 = vmul.f32 %v5533_v39, %v1368_v51  ;;  %v1369_v41 = vmul.f32 %v4490_v36, %v7454_v1  ;;  %v5832_v62 = vadd.f32 %v5542_v21, %v1437_v10  ;;  %v7459_v10 = vld [vmem:[#allocation18_spill] sm:$0xff] }
 0x263   :  { %4505 = vrsqrt.f32 %v1249_v20  ;;  %v1250_v54 = vadd.f32 1e-05, %v1186_v55  ;;  %v1187_v26 = vmul.f32 0.03125, %v1105_v50  ;;  %4236 = vmatprep.mubr.msk.bf16.mxu1 %vm555_vm1, %v1549_v23  ;;  %v1370_v31 = vmul.f32 %v4492_v42, %v7455_v33 }
 0x264   :  { %v4494_v49 = vpop.eup %4493  ;;  %v1108_v6 = vpop.xlane.xlu1 %1107  ;;  %7456 = vst [vmem:[#allocation17_spill] sm:$0xff] %v5832_v62  ;;  %v5835_v29 = vadd.f32 %v5542_v21, %v1438_v4  ;;  %v1439_v19 = vmul.f32 %v5533_v39, %v1369_v41 }
 0x265   :  { %4507 = vrsqrt.f32 %v1250_v54  ;;  %v1251_v51 = vadd.f32 1e-05, %v1187_v26  ;;  %v1188_v36 = vmul.f32 0.03125, %v1108_v6  ;;  %v1440_v20 = vmul.f32 %v5533_v39, %v1370_v31  ;;  %v7461_v31 = vld [vmem:[#allocation20_spill] sm:$0xff] }
 0x266   :  { %7457 = vst [vmem:[#allocation19_spill] sm:$0xff] %v5835_v29  ;;  %v4496_v55 = vpop.eup %4495  ;;  %v1111_v50 = vpop.xlane.xlu0 %1110  ;;  %v1550_v23 = vpack.c.bf16 %v5835_v29, %v5832_v62  ;;  %v5842_v42 = vadd.f32 %v5542_v21, %v1439_v19  ;;  %v1371_v1 = vmul.f32 %v4494_v49, %v7459_v10 }
 0x267   :  { %4509 = vrsqrt.f32 %v1251_v51  ;;  %v1252_v4 = vadd.f32 1e-05, %v1188_v36  ;;  %v1189_v33 = vmul.f32 0.03125, %v1111_v50  ;;  %v5846_v41 = vadd.f32 %v5542_v21, %v1440_v20  ;;  %v7462_v20 = vld [vmem:[#allocation3_spill] sm:$0xff] }
 0x268   :  { %7458 = vst [vmem:[#allocation21_spill] sm:$0xff] %v5842_v42  ;;  %v4498_v54 = vpop.eup %4497  ;;  %4237 = vmatmul.mubr.msk.bf16.gmra.mxu1 %vm555_vm1, %v1550_v23  ;;  %v1114_v26 = vpop.xlane.xlu1 %1113  ;;  %v1372_v6 = vmul.f32 %v4496_v55, %v7461_v31  ;;  %v1441_v30 = vmul.f32 %v5533_v39, %v1371_v1  ;;  %v7463_v55 = vld [vmem:[#allocation5_spill] sm:$0xff] }
 0x269   :  { %7460 = vst [vmem:[#allocation18_spill] sm:$0xff] %v5846_v41  ;;  %4511 = vrsqrt.f32 %v1252_v4  ;;  %v1253_v29 = vadd.f32 1e-05, %v1189_v33  ;;  %v1190_v19 = vmul.f32 0.03125, %v1114_v26  ;;  %v1551_v49 = vpack.c.bf16 %v5846_v41, %v5842_v42 }
 0x26a   :  { %v4500_v51 = vpop.eup %4499  ;;  %v1117_v36 = vpop.xlane.xlu0 %1116  ;;  %v1442_v50 = vmul.f32 %v5533_v39, %v1372_v6  ;;  %v1373_v10 = vmul.f32 %v4498_v54, %v7462_v20  ;;  %v5858_v33 = vadd.f32 %v5542_v21, %v1441_v30  ;;  %v7466_v30 = vld [vmem:[#allocation2_spill] sm:$0xff] }
 0x26b   :  { %4513 = vrsqrt.f32 %v1253_v29  ;;  %v1254_v62 = vadd.f32 1e-05, %v1190_v19  ;;  %v1191_v23 = vmul.f32 0.03125, %v1117_v36  ;;  %4240 = vmatprep.mubr.msk.bf16.mxu1 %vm555_vm1, %v1551_v49  ;;  %v1374_v31 = vmul.f32 %v4500_v51, %v7463_v55 }
 0x26c   :  { %v4502_v1 = vpop.eup %4501  ;;  %v1120_v4 = vpop.xlane.xlu1 %1119  ;;  %7464 = vst [vmem:[#allocation20_spill] sm:$0xff] %v5858_v33  ;;  %v5861_v26 = vadd.f32 %v5542_v21, %v1442_v50  ;;  %v1443_v41 = vmul.f32 %v5533_v39, %v1373_v10 }
 0x26d   :  { %4515 = vrsqrt.f32 %v1254_v62  ;;  %v1255_v6 = vadd.f32 1e-05, %v1191_v23  ;;  %v1192_v54 = vmul.f32 0.03125, %v1120_v4  ;;  %v1444_v29 = vmul.f32 %v5533_v39, %v1374_v31  ;;  %v7467_v31 = vld [vmem:[#allocation4_spill] sm:$0xff] }
 0x26e   :  { %7465 = vst [vmem:[#allocation3_spill] sm:$0xff] %v5861_v26  ;;  %v4504_v19 = vpop.eup %4503  ;;  %v1123_v36 = vpop.xlane.xlu0 %1122  ;;  %v1552_v49 = vpack.c.bf16 %v5861_v26, %v5858_v33  ;;  %v5868_v51 = vadd.f32 %v5542_v21, %v1443_v41  ;;  %v1375_v20 = vmul.f32 %v4502_v1, %v7466_v30 }
 0x26f   :  { %4517 = vrsqrt.f32 %v1255_v6  ;;  %v1256_v50 = vadd.f32 1e-05, %v1192_v54  ;;  %v1193_v55 = vmul.f32 0.03125, %v1123_v36  ;;  %v5872_v10 = vadd.f32 %v5542_v21, %v1444_v29  ;;  %v7468_v36 = vld [vmem:[#allocation7_spill] sm:$0xff] }
 0x270   :  { %v4506_v62 = vpop.eup %4505  ;;  %4241 = vmatmul.mubr.msk.bf16.gmra.mxu1 %vm555_vm1, %v1552_v49  ;;  %v1126_v23 = vpop.xlane.xlu1 %1125  ;;  %v1376_v4 = vmul.f32 %v4504_v19, %v7467_v31  ;;  %v1445_v42 = vmul.f32 %v5533_v39, %v1375_v20  ;;  %v7469_v49 = vld [vmem:[#allocation9_spill] sm:$0xff]  ;;  %v7470_v31 = vld [vmem:[#allocation6_spill] sm:$0xff] }
 0x271   :  { %4519 = vrsqrt.f32 %v1256_v50  ;;  %v1257_v26 = vadd.f32 1e-05, %v1193_v55  ;;  %v1194_v41 = vmul.f32 0.03125, %v1126_v23  ;;  %v1553_v1 = vpack.c.bf16 %v5872_v10, %v5868_v51 }
 0x272   :  { %v4508_v6 = vpop.eup %4507  ;;  %v1446_v54 = vmul.f32 %v5533_v39, %v1376_v4  ;;  %v1377_v29 = vmul.f32 %v4506_v62, %v7468_v36  ;;  %v5884_v20 = vadd.f32 %v5542_v21, %v1445_v42 }
 0x273   :  { %4521 = vrsqrt.f32 %v1257_v26  ;;  %v1258_v30 = vadd.f32 1e-05, %v1194_v41  ;;  %4244 = vmatprep.mubr.msk.bf16.mxu1 %vm555_vm1, %v1553_v1  ;;  %v1378_v33 = vmul.f32 %v4508_v6, %v7469_v49  ;;  %v7473_v1 = vld [vmem:[#allocation8_spill] sm:$0xff] }
 0x274   :  { %v4510_v19 = vpop.eup %4509  ;;  %v5887_v50 = vadd.f32 %v5542_v21, %v1446_v54  ;;  %v1447_v55 = vmul.f32 %v5533_v39, %v1377_v29 }
 0x275   :  { %4523 = vrsqrt.f32 %v1258_v30  ;;  %v1448_v23 = vmul.f32 %v5533_v39, %v1378_v33  ;;  %v1379_v62 = vmul.f32 %v4510_v19, %v7470_v31  ;;  %v7474_v30 = vld [vmem:[#allocation11_spill] sm:$0xff]  ;;  %v7476_v31 = vld [vmem:[#allocation13_spill] sm:$0xff] }
 0x276   :  { %v4512_v26 = vpop.eup %4511  ;;  %v1554_v4 = vpack.c.bf16 %v5887_v50, %v5884_v20  ;;  %v5895_v41 = vadd.f32 %v5542_v21, %v1447_v55 }
 0x277   :  { %v5898_v42 = vadd.f32 %v5542_v21, %v1448_v23  ;;  %v1380_v6 = vmul.f32 %v4512_v26, %v7473_v1  ;;  %v1449_v54 = vmul.f32 %v5533_v39, %v1379_v62 }
 0x278   :  { %7471 = vst [vmem:[#allocation5_spill] sm:$0xff] %v5895_v41  ;;  %v4514_v36 = vpop.eup %4513  ;;  %4245 = vmatmul.mubr.msk.bf16.gmra.mxu1 %vm555_vm1, %v1554_v4 }
 0x279   :  { %7472 = vst [vmem:[#allocation2_spill] sm:$0xff] %v5898_v42  ;;  %v1555_v33 = vpack.c.bf16 %v5898_v42, %v5895_v41  ;;  %v1450_v29 = vmul.f32 %v5533_v39, %v1380_v6  ;;  %v1381_v49 = vmul.f32 %v4514_v36, %v7474_v30  ;;  %v5909_v55 = vadd.f32 %v5542_v21, %v1449_v54  ;;  %v7477_v36 = vld [vmem:[#allocation10_spill] sm:$0xff] }
 0x27a   :  { %v4516_v19 = vpop.eup %4515 }
 0x27b   :  { %4248 = vmatprep.mubr.msk.bf16.mxu1 %vm555_vm1, %v1555_v33  ;;  %v5912_v23 = vadd.f32 %v5542_v21, %v1450_v29  ;;  %v1382_v62 = vmul.f32 %v4516_v19, %v7476_v31  ;;  %v1451_v26 = vmul.f32 %v5533_v39, %v1381_v49  ;;  %v7480_v29 = vld [vmem:[#allocation12_spill] sm:$0xff] }
 0x27c   :  { %v4518_v4 = vpop.eup %4517 }
 0x27d   :  { %7475 = vst [vmem:[#allocation4_spill] sm:$0xff] %v5912_v23  ;;  %v1556_v1 = vpack.c.bf16 %v5912_v23, %v5909_v55  ;;  %v1452_v6 = vmul.f32 %v5533_v39, %v1382_v62  ;;  %v1383_v30 = vmul.f32 %v4518_v4, %v7477_v36  ;;  %v5921_v33 = vadd.f32 %v5542_v21, %v1451_v26  ;;  %v4529_v62 = vld [vmem:[%s7331_s3] ss:$0 sm:$0xff] }
 0x27e   :  { %v4520_v42 = vpop.eup %4519  ;;  %v7481_v26 = vld [vmem:[#allocation14_spill] sm:$0xff] }
 0x27f   :  { %7478 = vst [vmem:[#allocation7_spill] sm:$0xff] %v5921_v33  ;;  %v5924_v54 = vadd.f32 %v5542_v21, %v1452_v6  ;;  %v1384_v41 = vmul.f32 %v4520_v42, %v7480_v29  ;;  %v1453_v19 = vmul.f32 %v5533_v39, %v1383_v30 }
 0x280   :  { %v4522_v49 = vpop.eup %4521  ;;  %4249 = vmatmul.mubr.msk.bf16.gmra.mxu1 %vm555_vm1, %v1556_v1  ;;  %v7483_v1 = vld [vmem:[#allocation22_spill] sm:$0xff] }
 0x281   :  { %7479 = vst [vmem:[#allocation9_spill] sm:$0xff] %v5924_v54  ;;  %v1557_v31 = vpack.c.bf16 %v5924_v54, %v5921_v33  ;;  %v1454_v4 = vmul.f32 %v4529_v62, %v1384_v41  ;;  %v1385_v36 = vmul.f32 %v4522_v49, %v7481_v26  ;;  %v5937_v42 = vadd.f32 %v5542_v21, %v1453_v19 }
 0x282   :  { %v4524_v23 = vpop.eup %4523 }
 0x283   :  { %4252 = vmatprep.mubr.msk.bf16.mxu1 %vm555_vm1, %v1557_v31  ;;  %v5940_v39 = vadd.f32 %v5542_v21, %v1454_v4  ;;  %v1386_v6 = vmul.f32 %v4524_v23, %v7483_v1  ;;  %v1455_v30 = vmul.f32 %v4529_v62, %v1385_v36  ;;  %v4400_v23 = vld [vmem:[%s7334_s7] sm:$0xff]  }
 0x284   :  { %4326 = vmatprep.subr.bf16.mxu0 %v4400_v23 }
 0x285   :  { %7482 = vst [vmem:[#allocation6_spill] sm:$0xff] %v5940_v39  ;;  %v1558_v29 = vpack.c.bf16 %v5940_v39, %v5937_v42  ;;  %v1456_v54 = vmul.f32 %v4529_v62, %v1386_v6  ;;  %v5946_v41 = vadd.f32 %v5542_v21, %v1455_v30  ;;  %4327 = vmatpush3.bf16.msra.mxu0 %v4400_v23  ;;  %v4530_v23 = vld [vmem:[%s7332_s4] ss:$0 sm:$0xff] }
 0x287   :  { %7484 = vst [vmem:[#allocation8_spill] sm:$0xff] %v5946_v41  ;;  %v5949_v49 = vadd.f32 %v5542_v21, %v1456_v54 }
 0x288   :  { %4253 = vmatmul.mubr.msk.bf16.gmra.mxu1 %vm555_vm1, %v1558_v29 }
 0x289   :  { %7485 = vst [vmem:[#allocation11_spill] sm:$0xff] %v5949_v49  ;;  %v1559_v19 = vpack.c.bf16 %v5949_v49, %v5946_v41 }
 0x28b   :  { %4256 = vmatprep.mubr.msk.bf16.mxu1 %vm555_vm1, %v1559_v19 }
 0x2b3   :  { %v1129_v31 = vpop.xlane.xlu0 %1128 }
 0x2b4   :  { %v1195_v4 = vmul.f32 0.03125, %v1129_v31 }
 0x2b6   :  { %v1259_v26 = vadd.f32 1e-05, %v1195_v4  ;;  %v1132_v36 = vpop.xlane.xlu1 %1131 }
 0x2b7   :  { %v1196_v1 = vmul.f32 0.03125, %v1132_v36 }
 0x2b8   :  { %4525 = vrsqrt.f32 %v1259_v26 }
 0x2b9   :  { %v1260_v21 = vadd.f32 1e-05, %v1196_v1 }
 0x2bb   :  { %4527 = vrsqrt.f32 %v1260_v21 }
 0x2c5   :  { %v4526_v54 = vpop.eup %4525 }
 0x2c6   :  { %v1387_v6 = vmul.f32 %v4526_v54, %v5623_v8 }
 0x2c8   :  { %v4528_v30 = vpop.eup %4527  ;;  %v1457_v19 = vmul.f32 %v4529_v62, %v1387_v6 }
 0x2c9   :  { %v1388_v29 = vmul.f32 %v4528_v30, %v5633_v0 }
 0x2ca   :  { %v5963_v41 = vadd.f32 %v4530_v23, %v1457_v19 }
 0x2cb   :  { %v1458_v49 = vmul.f32 %v4529_v62, %v1388_v29 }
 0x2cc   :  { %7486 = vst [vmem:[#allocation13_spill] sm:$0xff] %v5963_v41 }
 0x2cd   :  { %v5965_v31 = vadd.f32 %v4530_v23, %v1458_v49 }
 0x2cf   :  { %7487 = vst [vmem:[#allocation10_spill] sm:$0xff] %v5965_v31  ;;  %v1560_v4 = vpack.c.bf16 %v5965_v31, %v5963_v41 }
 0x2d1   :  { %4257 = vmatmul.mubr.msk.bf16.gmra.mxu1 %vm555_vm1, %v1560_v4 }
 0x2d4   :  { %v4198_v26 = vpop.f32.mrf.mxu1 }
 0x2d5   :  { %vm1964_vm2 = vcmp.ge.f32.partialorder %v4198_v26, 0.0  ;;  %v2028_v8 = vmul.f32 0.01, %v4198_v26 }
 0x2d6   :  { %v1707_v36 = vpop.f32.mrf.mxu1 }
 0x2d7   :  { %v2092_v0 = vsel %vm1964_vm2, %v4198_v26, %v2028_v8  ;;  %vm1962_vm3 = vcmp.ge.f32.partialorder %v1707_v36, 0.0  ;;  %v2026_v62 = vmul.f32 0.01, %v1707_v36 }
 0x2d8   :  { %3711 = vst.msk [vmem:[%s7335_s8 + $0x10] sm:$0xff] %vm555_vm1, %v2092_v0  ;;  %v4199_v1 = vpop.f32.mrf.mxu1 }
 0x2d9   :  { %v2090_v49 = vsel %vm1962_vm3, %v1707_v36, %v2026_v62  ;;  %vm1965_vm4 = vcmp.ge.f32.partialorder %v4199_v1, 0.0  ;;  %v2029_v21 = vmul.f32 0.01, %v4199_v1 }
 0x2da   :  { %3709 = vst.msk [vmem:[%s7335_s8] sm:$0xff] %vm555_vm1, %v2090_v49  ;;  %v1710_v54 = vpop.f32.mrf.mxu1 }
 0x2db   :  { %v2093_v6 = vsel %vm1965_vm4, %v4199_v1, %v2029_v21  ;;  %vm1963_vm5 = vcmp.ge.f32.partialorder %v1710_v54, 0.0  ;;  %v2027_v30 = vmul.f32 0.01, %v1710_v54 }
 0x2dc   :  { %v2155_v29 = vpack.c.bf16 %v2093_v6, %v2092_v0  ;;  %3712 = vst.msk [vmem:[%s7335_s8 + $0x18] sm:$0xff] %vm555_vm1, %v2093_v6  ;;  %v4202_v19 = vpop.f32.mrf.mxu1 }
 0x2dd   :  { %v2091_v23 = vsel %vm1963_vm5, %v1710_v54, %v2027_v30  ;;  %vm1968_vm6 = vcmp.ge.f32.partialorder %v4202_v19, 0.0  ;;  %v2032_v4 = vmul.f32 0.01, %v4202_v19 }
 0x2de   :  { %v2154_v26 = vpack.c.bf16 %v2091_v23, %v2090_v49  ;;  %3710 = vst.msk [vmem:[%s7335_s8 + $0x8] sm:$0xff] %vm555_vm1, %v2091_v23  ;;  %2808 = vrot.lane.b32.xlu1 %v2155_v29, %s4531_s10  ;;  %v1723_v8 = vpop.f32.mrf.mxu1 }
 0x2df   :  { %v2096_v36 = vsel %vm1968_vm6, %v4202_v19, %v2032_v4  ;;  %vm1966_vm8 = vcmp.ge.f32.partialorder %v1723_v8, 0.0  ;;  %v2030_v0 = vmul.f32 0.01, %v1723_v8 }
 0x2e0   :  { %3715 = vst.msk [vmem:[%s7335_s8 + $0x30] sm:$0xff] %vm555_vm1, %v2096_v36  ;;  %v4203_v62 = vpop.f32.mrf.mxu1  ;;  %2806 = vrot.lane.b32.xlu0 %v2154_v26, %s4531_s10  ;;  %4262 = vmatprep.mubr.msk.bf16.mxu1 %vm2194_vm7, %v2154_v26 }
 0x2e1   :  { %v2094_v1 = vsel %vm1966_vm8, %v1723_v8, %v2030_v0  ;;  %vm1969_vm9 = vcmp.ge.f32.partialorder %v4203_v62, 0.0  ;;  %v2033_v49 = vmul.f32 0.01, %v4203_v62  ;;  %4263 = vmatmul.mubr.msk.bf16.vlgmr.msra.gmra.mxu1 %vm2194_vm7, %v2155_v29 }
 0x2e2   :  { %3713 = vst.msk [vmem:[%s7335_s8 + $0x20] sm:$0xff] %vm555_vm1, %v2094_v1  ;;  %v1726_v21 = vpop.f32.mrf.mxu1 }
 0x2e3   :  { %v2097_v54 = vsel %vm1969_vm9, %v4203_v62, %v2033_v49  ;;  %vm1967_vm10 = vcmp.ge.f32.partialorder %v1726_v21, 0.0  ;;  %v2031_v6 = vmul.f32 0.01, %v1726_v21 }
 0x2e4   :  { %3716 = vst.msk [vmem:[%s7335_s8 + $0x38] sm:$0xff] %vm555_vm1, %v2097_v54  ;;  %v4206_v30 = vpop.f32.mrf.mxu1  ;;  %v2157_v26 = vpack.c.bf16 %v2097_v54, %v2096_v36 }
 0x2e5   :  { %v2095_v19 = vsel %vm1967_vm10, %v1726_v21, %v2031_v6  ;;  %vm1972_vm11 = vcmp.ge.f32.partialorder %v4206_v30, 0.0  ;;  %v2036_v23 = vmul.f32 0.01, %v4206_v30 }
 0x2e6   :  { %v2156_v4 = vpack.c.bf16 %v2095_v19, %v2094_v1  ;;  %3714 = vst.msk [vmem:[%s7335_s8 + $0x28] sm:$0xff] %vm555_vm1, %v2095_v19  ;;  %v1739_v29 = vpop.f32.mrf.mxu1 }
 0x2e7   :  { %v2100_v8 = vsel %vm1972_vm11, %v4206_v30, %v2036_v23  ;;  %vm1970_vm12 = vcmp.ge.f32.partialorder %v1739_v29, 0.0  ;;  %v2034_v0 = vmul.f32 0.01, %v1739_v29 }
 0x2e8   :  { %3719 = vst.msk [vmem:[%s7335_s8 + $0x50] sm:$0xff] %vm555_vm1, %v2100_v8  ;;  %2810 = vrot.lane.b32.xlu1 %v2156_v4, %s4531_s10  ;;  %v4207_v62 = vpop.f32.mrf.mxu1  ;;  %4266 = vmatprep.mubr.msk.bf16.mxu1 %vm2194_vm7, %v2156_v4 }
 0x2e9   :  { %v2098_v1 = vsel %vm1970_vm12, %v1739_v29, %v2034_v0  ;;  %vm1973_vm13 = vcmp.ge.f32.partialorder %v4207_v62, 0.0  ;;  %v2037_v49 = vmul.f32 0.01, %v4207_v62  ;;  %4267 = vmatmul.mubr.msk.bf16.gmra.mxu1 %vm2194_vm7, %v2157_v26 }
 0x2ea   :  { %3717 = vst.msk [vmem:[%s7335_s8 + $0x40] sm:$0xff] %vm555_vm1, %v2098_v1  ;;  %v1742_v36 = vpop.f32.mrf.mxu1 }
 0x2eb   :  { %v2101_v21 = vsel %vm1973_vm13, %v4207_v62, %v2037_v49  ;;  %vm1971_vm14 = vcmp.ge.f32.partialorder %v1742_v36, 0.0  ;;  %v2035_v54 = vmul.f32 0.01, %v1742_v36 }
 0x2ec   :  { %3720 = vst.msk [vmem:[%s7335_s8 + $0x58] sm:$0xff] %vm555_vm1, %v2101_v21  ;;  %2812 = vrot.lane.b32.xlu1 %v2157_v26, %s4531_s10  ;;  %v4210_v6 = vpop.f32.mrf.mxu1  ;;  %v2159_v23 = vpack.c.bf16 %v2101_v21, %v2100_v8 }
 0x2ed   :  { %v2099_v30 = vsel %vm1971_vm14, %v1742_v36, %v2035_v54  ;;  %vm1976_vm15 = vcmp.ge.f32.partialorder %v4210_v6, 0.0  ;;  %v2040_v19 = vmul.f32 0.01, %v4210_v6 }
 0x2ee   :  { %v2158_v4 = vpack.c.bf16 %v2099_v30, %v2098_v1  ;;  %3718 = vst.msk [vmem:[%s7335_s8 + $0x48] sm:$0xff] %vm555_vm1, %v2099_v30  ;;  %v1755_v29 = vpop.f32.mrf.mxu1 }
 0x2ef   :  { %v2104_v0 = vsel %vm1976_vm15, %v4210_v6, %v2040_v19  ;;  %vm1974_vm0 = vcmp.ge.f32.partialorder %v1755_v29, 0.0  ;;  %v2038_v62 = vmul.f32 0.01, %v1755_v29 }
 0x2f0   :  { %3723 = vst.msk [vmem:[%s7335_s8 + $0x70] sm:$0xff] %vm555_vm1, %v2104_v0  ;;  %2816 = vrot.lane.b32.xlu1 %v2159_v23, %s4531_s10  ;;  %v4211_v26 = vpop.f32.mrf.mxu1  ;;  %2814 = vrot.lane.b32.xlu0 %v2158_v4, %s4531_s10 }
 0x2f1   :  { %v2102_v8 = vsel %vm1974_vm0, %v1755_v29, %v2038_v62  ;;  %vm1977_vm2 = vcmp.ge.f32.partialorder %v4211_v26, 0.0  ;;  %v2041_v1 = vmul.f32 0.01, %v4211_v26  ;;  %4270 = vmatprep.mubr.msk.bf16.mxu1 %vm2194_vm7, %v2158_v4 }
 0x2f2   :  { %3721 = vst.msk [vmem:[%s7335_s8 + $0x60] sm:$0xff] %vm555_vm1, %v2102_v8  ;;  %4271 = vmatmul.mubr.msk.bf16.gmra.mxu1 %vm2194_vm7, %v2159_v23  ;;  %v1758_v49 = vpop.f32.mrf.mxu1 }
 0x2f3   :  { %v2105_v36 = vsel %vm1977_vm2, %v4211_v26, %v2041_v1  ;;  %vm1975_vm3 = vcmp.ge.f32.partialorder %v1758_v49, 0.0  ;;  %v2039_v21 = vmul.f32 0.01, %v1758_v49 }
 0x2f4   :  { %v2161_v54 = vpack.c.bf16 %v2105_v36, %v2104_v0  ;;  %3724 = vst.msk [vmem:[%s7335_s8 + $0x78] sm:$0xff] %vm555_vm1, %v2105_v36  ;;  %v4214_v6 = vpop.f32.mrf.mxu1 }
 0x2f5   :  { %v2103_v30 = vsel %vm1975_vm3, %v1758_v49, %v2039_v21  ;;  %vm1980_vm4 = vcmp.ge.f32.partialorder %v4214_v6, 0.0  ;;  %v2044_v19 = vmul.f32 0.01, %v4214_v6 }
 0x2f6   :  { %v2160_v4 = vpack.c.bf16 %v2103_v30, %v2102_v8  ;;  %3722 = vst.msk [vmem:[%s7335_s8 + $0x68] sm:$0xff] %vm555_vm1, %v2103_v30  ;;  %2820 = vrot.lane.b32.xlu1 %v2161_v54, %s4531_s10  ;;  %v1771_v23 = vpop.f32.mrf.mxu1 }
 0x2f7   :  { %v2108_v29 = vsel %vm1980_vm4, %v4214_v6, %v2044_v19  ;;  %vm1978_vm5 = vcmp.ge.f32.partialorder %v1771_v23, 0.0  ;;  %v2042_v0 = vmul.f32 0.01, %v1771_v23 }
 0x2f8   :  { %3727 = vst.msk [vmem:[%s7335_s8 + $0x90] sm:$0xff] %vm555_vm1, %v2108_v29  ;;  %v4215_v62 = vpop.f32.mrf.mxu1  ;;  %2818 = vrot.lane.b32.xlu0 %v2160_v4, %s4531_s10  ;;  %4274 = vmatprep.mubr.msk.bf16.mxu1 %vm2194_vm7, %v2160_v4 }
 0x2f9   :  { %v2106_v26 = vsel %vm1978_vm5, %v1771_v23, %v2042_v0  ;;  %vm1981_vm6 = vcmp.ge.f32.partialorder %v4215_v62, 0.0  ;;  %v2045_v8 = vmul.f32 0.01, %v4215_v62 }
 0x2fa   :  { %3725 = vst.msk [vmem:[%s7335_s8 + $0x80] sm:$0xff] %vm555_vm1, %v2106_v26  ;;  %4275 = vmatmul.mubr.msk.bf16.gmra.mxu1 %vm2194_vm7, %v2161_v54  ;;  %v1774_v1 = vpop.f32.mrf.mxu1 }
 0x2fb   :  { %v2109_v49 = vsel %vm1981_vm6, %v4215_v62, %v2045_v8  ;;  %vm1979_vm8 = vcmp.ge.f32.partialorder %v1774_v1, 0.0  ;;  %v2043_v36 = vmul.f32 0.01, %v1774_v1 }
 0x2fc   :  { %v2163_v21 = vpack.c.bf16 %v2109_v49, %v2108_v29  ;;  %3728 = vst.msk [vmem:[%s7335_s8 + $0x98] sm:$0xff] %vm555_vm1, %v2109_v49  ;;  %v4218_v6 = vpop.f32.mrf.mxu1 }
 0x2fd   :  { %v2107_v30 = vsel %vm1979_vm8, %v1774_v1, %v2043_v36  ;;  %vm1984_vm9 = vcmp.ge.f32.partialorder %v4218_v6, 0.0  ;;  %v2048_v19 = vmul.f32 0.01, %v4218_v6 }
 0x2fe   :  { %v2162_v4 = vpack.c.bf16 %v2107_v30, %v2106_v26  ;;  %3726 = vst.msk [vmem:[%s7335_s8 + $0x88] sm:$0xff] %vm555_vm1, %v2107_v30  ;;  %2824 = vrot.lane.b32.xlu1 %v2163_v21, %s4531_s10  ;;  %v1787_v54 = vpop.f32.mrf.mxu1 }
 0x2ff   :  { %v2112_v23 = vsel %vm1984_vm9, %v4218_v6, %v2048_v19  ;;  %vm1982_vm10 = vcmp.ge.f32.partialorder %v1787_v54, 0.0  ;;  %v2046_v29 = vmul.f32 0.01, %v1787_v54 }
 0x300   :  { %3731 = vst.msk [vmem:[%s7335_s8 + $0xb0] sm:$0xff] %vm555_vm1, %v2112_v23  ;;  %v4219_v0 = vpop.f32.mrf.mxu1  ;;  %2822 = vrot.lane.b32.xlu0 %v2162_v4, %s4531_s10  ;;  %4278 = vmatprep.mubr.msk.bf16.mxu1 %vm2194_vm7, %v2162_v4 }
 0x301   :  { %v2110_v62 = vsel %vm1982_vm10, %v1787_v54, %v2046_v29  ;;  %vm1985_vm11 = vcmp.ge.f32.partialorder %v4219_v0, 0.0  ;;  %v2049_v26 = vmul.f32 0.01, %v4219_v0 }
 0x302   :  { %3729 = vst.msk [vmem:[%s7335_s8 + $0xa0] sm:$0xff] %vm555_vm1, %v2110_v62  ;;  %4279 = vmatmul.mubr.msk.bf16.gmra.mxu1 %vm2194_vm7, %v2163_v21  ;;  %v1790_v8 = vpop.f32.mrf.mxu1 }
 0x303   :  { %v2113_v1 = vsel %vm1985_vm11, %v4219_v0, %v2049_v26  ;;  %vm1983_vm12 = vcmp.ge.f32.partialorder %v1790_v8, 0.0  ;;  %v2047_v49 = vmul.f32 0.01, %v1790_v8 }
 0x304   :  { %v2165_v36 = vpack.c.bf16 %v2113_v1, %v2112_v23  ;;  %3732 = vst.msk [vmem:[%s7335_s8 + $0xb8] sm:$0xff] %vm555_vm1, %v2113_v1 }
 0x305   :  { %v2111_v6 = vsel %vm1983_vm12, %v1790_v8, %v2047_v49 }
 0x306   :  { %v2164_v30 = vpack.c.bf16 %v2111_v6, %v2110_v62  ;;  %3730 = vst.msk [vmem:[%s7335_s8 + $0xa8] sm:$0xff] %vm555_vm1, %v2111_v6  ;;  %2828 = vrot.lane.b32.xlu1 %v2165_v36, %s4531_s10 }
 0x308   :  { %v4222_v21 = vpop.f32.mrf.mxu1  ;;  %2826 = vrot.lane.b32.xlu0 %v2164_v30, %s4531_s10  ;;  %4282 = vmatprep.mubr.msk.bf16.mxu1 %vm2194_vm7, %v2164_v30 }
 0x309   :  { %vm1988_vm13 = vcmp.ge.f32.partialorder %v4222_v21, 0.0  ;;  %v2052_v19 = vmul.f32 0.01, %v4222_v21 }
 0x30a   :  { %v1803_v4 = vpop.f32.mrf.mxu1  ;;  %4283 = vmatmul.mubr.msk.bf16.gmra.mxu1 %vm2194_vm7, %v2165_v36 }
 0x30b   :  { %v2116_v54 = vsel %vm1988_vm13, %v4222_v21, %v2052_v19  ;;  %vm1986_vm14 = vcmp.ge.f32.partialorder %v1803_v4, 0.0  ;;  %v2050_v23 = vmul.f32 0.01, %v1803_v4 }
 0x30c   :  { %3735 = vst.msk [vmem:[%s7335_s8 + $0xd0] sm:$0xff] %vm555_vm1, %v2116_v54  ;;  %v4223_v29 = vpop.f32.mrf.mxu1 }
 0x30d   :  { %v2114_v0 = vsel %vm1986_vm14, %v1803_v4, %v2050_v23  ;;  %vm1989_vm15 = vcmp.ge.f32.partialorder %v4223_v29, 0.0  ;;  %v2053_v62 = vmul.f32 0.01, %v4223_v29 }
 0x30e   :  { %3733 = vst.msk [vmem:[%s7335_s8 + $0xc0] sm:$0xff] %vm555_vm1, %v2114_v0  ;;  %v1806_v26 = vpop.f32.mrf.mxu1 }
 0x30f   :  { %v2117_v8 = vsel %vm1989_vm15, %v4223_v29, %v2053_v62  ;;  %vm1987_vm0 = vcmp.ge.f32.partialorder %v1806_v26, 0.0  ;;  %v2051_v1 = vmul.f32 0.01, %v1806_v26 }
 0x310   :  { %v2167_v49 = vpack.c.bf16 %v2117_v8, %v2116_v54  ;;  %3736 = vst.msk [vmem:[%s7335_s8 + $0xd8] sm:$0xff] %vm555_vm1, %v2117_v8  ;;  %v4226_v36 = vpop.f32.mrf.mxu1 }
 0x311   :  { %v2115_v6 = vsel %vm1987_vm0, %v1806_v26, %v2051_v1  ;;  %vm1992_vm2 = vcmp.ge.f32.partialorder %v4226_v36, 0.0  ;;  %v2056_v30 = vmul.f32 0.01, %v4226_v36 }
 0x312   :  { %v2166_v21 = vpack.c.bf16 %v2115_v6, %v2114_v0  ;;  %3734 = vst.msk [vmem:[%s7335_s8 + $0xc8] sm:$0xff] %vm555_vm1, %v2115_v6  ;;  %2832 = vrot.lane.b32.xlu1 %v2167_v49, %s4531_s10  ;;  %v1819_v19 = vpop.f32.mrf.mxu1 }
 0x313   :  { %v2120_v4 = vsel %vm1992_vm2, %v4226_v36, %v2056_v30  ;;  %vm1990_vm3 = vcmp.ge.f32.partialorder %v1819_v19, 0.0  ;;  %v2054_v54 = vmul.f32 0.01, %v1819_v19 }
 0x314   :  { %3739 = vst.msk [vmem:[%s7335_s8 + $0xf0] sm:$0xff] %vm555_vm1, %v2120_v4  ;;  %2830 = vrot.lane.b32.xlu0 %v2166_v21, %s4531_s10  ;;  %v4227_v23 = vpop.f32.mrf.mxu1  ;;  %4286 = vmatprep.mubr.msk.bf16.mxu1 %vm2194_vm7, %v2166_v21 }
 0x315   :  { %v2118_v29 = vsel %vm1990_vm3, %v1819_v19, %v2054_v54  ;;  %vm1993_vm4 = vcmp.ge.f32.partialorder %v4227_v23, 0.0  ;;  %v2057_v0 = vmul.f32 0.01, %v4227_v23  ;;  %4287 = vmatmul.mubr.msk.bf16.gmra.mxu1 %vm2194_vm7, %v2167_v49 }
 0x316   :  { %3737 = vst.msk [vmem:[%s7335_s8 + $0xe0] sm:$0xff] %vm555_vm1, %v2118_v29  ;;  %v1822_v62 = vpop.f32.mrf.mxu1 }
 0x317   :  { %v2121_v26 = vsel %vm1993_vm4, %v4227_v23, %v2057_v0  ;;  %vm1991_vm5 = vcmp.ge.f32.partialorder %v1822_v62, 0.0  ;;  %v2055_v8 = vmul.f32 0.01, %v1822_v62 }
 0x318   :  { %v2169_v1 = vpack.c.bf16 %v2121_v26, %v2120_v4  ;;  %3740 = vst.msk [vmem:[%s7335_s8 + $0xf8] sm:$0xff] %vm555_vm1, %v2121_v26  ;;  %v4230_v36 = vpop.f32.mrf.mxu1 }
 0x319   :  { %v2119_v6 = vsel %vm1991_vm5, %v1822_v62, %v2055_v8  ;;  %vm1996_vm6 = vcmp.ge.f32.partialorder %v4230_v36, 0.0  ;;  %v2060_v30 = vmul.f32 0.01, %v4230_v36 }
 0x31a   :  { %v2168_v49 = vpack.c.bf16 %v2119_v6, %v2118_v29  ;;  %3738 = vst.msk [vmem:[%s7335_s8 + $0xe8] sm:$0xff] %vm555_vm1, %v2119_v6  ;;  %2836 = vrot.lane.b32.xlu1 %v2169_v1, %s4531_s10  ;;  %v1835_v21 = vpop.f32.mrf.mxu1 }
 0x31b   :  { %v2124_v19 = vsel %vm1996_vm6, %v4230_v36, %v2060_v30  ;;  %vm1994_vm8 = vcmp.ge.f32.partialorder %v1835_v21, 0.0  ;;  %v2058_v4 = vmul.f32 0.01, %v1835_v21 }
 0x31c   :  { %3743 = vst.msk [vmem:[%s7335_s8 + $0x110] sm:$0xff] %vm555_vm1, %v2124_v19  ;;  %2834 = vrot.lane.b32.xlu0 %v2168_v49, %s4531_s10  ;;  %v4231_v54 = vpop.f32.mrf.mxu1  ;;  %4290 = vmatprep.mubr.msk.bf16.mxu1 %vm2194_vm7, %v2168_v49 }
 0x31d   :  { %v2122_v23 = vsel %vm1994_vm8, %v1835_v21, %v2058_v4  ;;  %vm1997_vm9 = vcmp.ge.f32.partialorder %v4231_v54, 0.0  ;;  %v2061_v29 = vmul.f32 0.01, %v4231_v54  ;;  %4291 = vmatmul.mubr.msk.bf16.gmra.mxu1 %vm2194_vm7, %v2169_v1 }
 0x31e   :  { %3741 = vst.msk [vmem:[%s7335_s8 + $0x100] sm:$0xff] %vm555_vm1, %v2122_v23  ;;  %v1838_v0 = vpop.f32.mrf.mxu1 }
 0x31f   :  { %v2125_v62 = vsel %vm1997_vm9, %v4231_v54, %v2061_v29  ;;  %vm1995_vm10 = vcmp.ge.f32.partialorder %v1838_v0, 0.0  ;;  %v2059_v26 = vmul.f32 0.01, %v1838_v0 }
 0x320   :  { %v2171_v8 = vpack.c.bf16 %v2125_v62, %v2124_v19  ;;  %3744 = vst.msk [vmem:[%s7335_s8 + $0x118] sm:$0xff] %vm555_vm1, %v2125_v62  ;;  %v4234_v36 = vpop.f32.mrf.mxu1 }
 0x321   :  { %v2123_v6 = vsel %vm1995_vm10, %v1838_v0, %v2059_v26  ;;  %vm2000_vm11 = vcmp.ge.f32.partialorder %v4234_v36, 0.0  ;;  %v2064_v30 = vmul.f32 0.01, %v4234_v36 }
 0x322   :  { %v2170_v1 = vpack.c.bf16 %v2123_v6, %v2122_v23  ;;  %3742 = vst.msk [vmem:[%s7335_s8 + $0x108] sm:$0xff] %vm555_vm1, %v2123_v6  ;;  %2840 = vrot.lane.b32.xlu1 %v2171_v8, %s4531_s10  ;;  %v1851_v49 = vpop.f32.mrf.mxu1 }
 0x323   :  { %v2128_v21 = vsel %vm2000_vm11, %v4234_v36, %v2064_v30  ;;  %vm1998_vm12 = vcmp.ge.f32.partialorder %v1851_v49, 0.0  ;;  %v2062_v19 = vmul.f32 0.01, %v1851_v49 }
 0x324   :  { %3747 = vst.msk [vmem:[%s7335_s8 + $0x130] sm:$0xff] %vm555_vm1, %v2128_v21  ;;  %2838 = vrot.lane.b32.xlu0 %v2170_v1, %s4531_s10  ;;  %v4235_v4 = vpop.f32.mrf.mxu1  ;;  %4294 = vmatprep.mubr.msk.bf16.mxu1 %vm2194_vm7, %v2170_v1 }
 0x325   :  { %v2126_v54 = vsel %vm1998_vm12, %v1851_v49, %v2062_v19  ;;  %vm2001_vm13 = vcmp.ge.f32.partialorder %v4235_v4, 0.0  ;;  %v2065_v23 = vmul.f32 0.01, %v4235_v4  ;;  %4295 = vmatmul.mubr.msk.bf16.gmra.mxu1 %vm2194_vm7, %v2171_v8 }
 0x326   :  { %3745 = vst.msk [vmem:[%s7335_s8 + $0x120] sm:$0xff] %vm555_vm1, %v2126_v54  ;;  %v1854_v29 = vpop.f32.mrf.mxu1 }
 0x327   :  { %v2129_v0 = vsel %vm2001_vm13, %v4235_v4, %v2065_v23  ;;  %vm1999_vm14 = vcmp.ge.f32.partialorder %v1854_v29, 0.0  ;;  %v2063_v62 = vmul.f32 0.01, %v1854_v29 }
 0x328   :  { %v2173_v26 = vpack.c.bf16 %v2129_v0, %v2128_v21  ;;  %3748 = vst.msk [vmem:[%s7335_s8 + $0x138] sm:$0xff] %vm555_vm1, %v2129_v0  ;;  %v4238_v36 = vpop.f32.mrf.mxu1 }
 0x329   :  { %v2127_v6 = vsel %vm1999_vm14, %v1854_v29, %v2063_v62  ;;  %vm2004_vm15 = vcmp.ge.f32.partialorder %v4238_v36, 0.0  ;;  %v2068_v30 = vmul.f32 0.01, %v4238_v36 }
 0x32a   :  { %v2172_v8 = vpack.c.bf16 %v2127_v6, %v2126_v54  ;;  %3746 = vst.msk [vmem:[%s7335_s8 + $0x128] sm:$0xff] %vm555_vm1, %v2127_v6  ;;  %2844 = vrot.lane.b32.xlu1 %v2173_v26, %s4531_s10  ;;  %v1867_v1 = vpop.f32.mrf.mxu1 }
 0x32b   :  { %v2132_v49 = vsel %vm2004_vm15, %v4238_v36, %v2068_v30  ;;  %vm2002_vm0 = vcmp.ge.f32.partialorder %v1867_v1, 0.0  ;;  %v2066_v21 = vmul.f32 0.01, %v1867_v1 }
 0x32c   :  { %3751 = vst.msk [vmem:[%s7335_s8 + $0x150] sm:$0xff] %vm555_vm1, %v2132_v49  ;;  %2842 = vrot.lane.b32.xlu0 %v2172_v8, %s4531_s10  ;;  %v4239_v19 = vpop.f32.mrf.mxu1  ;;  %4298 = vmatprep.mubr.msk.bf16.mxu1 %vm2194_vm7, %v2172_v8 }
 0x32d   :  { %v2130_v4 = vsel %vm2002_vm0, %v1867_v1, %v2066_v21  ;;  %vm2005_vm2 = vcmp.ge.f32.partialorder %v4239_v19, 0.0  ;;  %v2069_v54 = vmul.f32 0.01, %v4239_v19  ;;  %4299 = vmatmul.mubr.msk.bf16.gmra.mxu1 %vm2194_vm7, %v2173_v26 }
 0x32e   :  { %3749 = vst.msk [vmem:[%s7335_s8 + $0x140] sm:$0xff] %vm555_vm1, %v2130_v4  ;;  %v1870_v23 = vpop.f32.mrf.mxu1 }
 0x32f   :  { %v2133_v29 = vsel %vm2005_vm2, %v4239_v19, %v2069_v54  ;;  %vm2003_vm3 = vcmp.ge.f32.partialorder %v1870_v23, 0.0  ;;  %v2067_v0 = vmul.f32 0.01, %v1870_v23 }
 0x330   :  { %v2175_v62 = vpack.c.bf16 %v2133_v29, %v2132_v49  ;;  %3752 = vst.msk [vmem:[%s7335_s8 + $0x158] sm:$0xff] %vm555_vm1, %v2133_v29  ;;  %v4242_v36 = vpop.f32.mrf.mxu1 }
 0x331   :  { %v2131_v6 = vsel %vm2003_vm3, %v1870_v23, %v2067_v0  ;;  %vm2008_vm4 = vcmp.ge.f32.partialorder %v4242_v36, 0.0  ;;  %v2072_v30 = vmul.f32 0.01, %v4242_v36 }
 0x332   :  { %v2174_v26 = vpack.c.bf16 %v2131_v6, %v2130_v4  ;;  %3750 = vst.msk [vmem:[%s7335_s8 + $0x148] sm:$0xff] %vm555_vm1, %v2131_v6  ;;  %2848 = vrot.lane.b32.xlu1 %v2175_v62, %s4531_s10  ;;  %v1883_v8 = vpop.f32.mrf.mxu1 }
 0x333   :  { %v2136_v1 = vsel %vm2008_vm4, %v4242_v36, %v2072_v30  ;;  %vm2006_vm5 = vcmp.ge.f32.partialorder %v1883_v8, 0.0  ;;  %v2070_v49 = vmul.f32 0.01, %v1883_v8 }
 0x334   :  { %3755 = vst.msk [vmem:[%s7335_s8 + $0x170] sm:$0xff] %vm555_vm1, %v2136_v1  ;;  %2846 = vrot.lane.b32.xlu0 %v2174_v26, %s4531_s10  ;;  %v4243_v21 = vpop.f32.mrf.mxu1  ;;  %4302 = vmatprep.mubr.msk.bf16.mxu1 %vm2194_vm7, %v2174_v26 }
 0x335   :  { %v2134_v19 = vsel %vm2006_vm5, %v1883_v8, %v2070_v49  ;;  %vm2009_vm6 = vcmp.ge.f32.partialorder %v4243_v21, 0.0  ;;  %v2073_v4 = vmul.f32 0.01, %v4243_v21  ;;  %4303 = vmatmul.mubr.msk.bf16.gmra.mxu1 %vm2194_vm7, %v2175_v62 }
 0x336   :  { %3753 = vst.msk [vmem:[%s7335_s8 + $0x160] sm:$0xff] %vm555_vm1, %v2134_v19  ;;  %v1886_v54 = vpop.f32.mrf.mxu1 }
 0x337   :  { %v2137_v23 = vsel %vm2009_vm6, %v4243_v21, %v2073_v4  ;;  %vm2007_vm8 = vcmp.ge.f32.partialorder %v1886_v54, 0.0  ;;  %v2071_v29 = vmul.f32 0.01, %v1886_v54 }
 0x338   :  { %v2177_v0 = vpack.c.bf16 %v2137_v23, %v2136_v1  ;;  %3756 = vst.msk [vmem:[%s7335_s8 + $0x178] sm:$0xff] %vm555_vm1, %v2137_v23  ;;  %v4246_v36 = vpop.f32.mrf.mxu1 }
 0x339   :  { %v2135_v6 = vsel %vm2007_vm8, %v1886_v54, %v2071_v29  ;;  %vm2012_vm9 = vcmp.ge.f32.partialorder %v4246_v36, 0.0  ;;  %v2076_v30 = vmul.f32 0.01, %v4246_v36 }
 0x33a   :  { %v2176_v62 = vpack.c.bf16 %v2135_v6, %v2134_v19  ;;  %3754 = vst.msk [vmem:[%s7335_s8 + $0x168] sm:$0xff] %vm555_vm1, %v2135_v6  ;;  %2852 = vrot.lane.b32.xlu1 %v2177_v0, %s4531_s10  ;;  %v1899_v26 = vpop.f32.mrf.mxu1 }
 0x33b   :  { %v2140_v8 = vsel %vm2012_vm9, %v4246_v36, %v2076_v30  ;;  %vm2010_vm10 = vcmp.ge.f32.partialorder %v1899_v26, 0.0  ;;  %v2074_v1 = vmul.f32 0.01, %v1899_v26 }
 0x33c   :  { %3759 = vst.msk [vmem:[%s7335_s8 + $0x190] sm:$0xff] %vm555_vm1, %v2140_v8  ;;  %2850 = vrot.lane.b32.xlu0 %v2176_v62, %s4531_s10  ;;  %v4247_v49 = vpop.f32.mrf.mxu1  ;;  %4306 = vmatprep.mubr.msk.bf16.mxu1 %vm2194_vm7, %v2176_v62 }
 0x33d   :  { %v2138_v21 = vsel %vm2010_vm10, %v1899_v26, %v2074_v1  ;;  %vm2013_vm11 = vcmp.ge.f32.partialorder %v4247_v49, 0.0  ;;  %v2077_v19 = vmul.f32 0.01, %v4247_v49  ;;  %4307 = vmatmul.mubr.msk.bf16.gmra.mxu1 %vm2194_vm7, %v2177_v0 }
 0x33e   :  { %3757 = vst.msk [vmem:[%s7335_s8 + $0x180] sm:$0xff] %vm555_vm1, %v2138_v21  ;;  %v1902_v4 = vpop.f32.mrf.mxu1 }
 0x33f   :  { %v2141_v54 = vsel %vm2013_vm11, %v4247_v49, %v2077_v19  ;;  %vm2011_vm12 = vcmp.ge.f32.partialorder %v1902_v4, 0.0  ;;  %v2075_v23 = vmul.f32 0.01, %v1902_v4 }
 0x340   :  { %v2179_v29 = vpack.c.bf16 %v2141_v54, %v2140_v8  ;;  %3760 = vst.msk [vmem:[%s7335_s8 + $0x198] sm:$0xff] %vm555_vm1, %v2141_v54  ;;  %v4250_v36 = vpop.f32.mrf.mxu1 }
 0x341   :  { %v2139_v6 = vsel %vm2011_vm12, %v1902_v4, %v2075_v23  ;;  %vm2016_vm13 = vcmp.ge.f32.partialorder %v4250_v36, 0.0  ;;  %v2080_v30 = vmul.f32 0.01, %v4250_v36 }
 0x342   :  { %v2178_v0 = vpack.c.bf16 %v2139_v6, %v2138_v21  ;;  %3758 = vst.msk [vmem:[%s7335_s8 + $0x188] sm:$0xff] %vm555_vm1, %v2139_v6  ;;  %2856 = vrot.lane.b32.xlu1 %v2179_v29, %s4531_s10  ;;  %v1915_v62 = vpop.f32.mrf.mxu1 }
 0x343   :  { %v2144_v26 = vsel %vm2016_vm13, %v4250_v36, %v2080_v30  ;;  %vm2014_vm14 = vcmp.ge.f32.partialorder %v1915_v62, 0.0  ;;  %v2078_v8 = vmul.f32 0.01, %v1915_v62 }
 0x344   :  { %3763 = vst.msk [vmem:[%s7335_s8 + $0x1b0] sm:$0xff] %vm555_vm1, %v2144_v26  ;;  %2854 = vrot.lane.b32.xlu0 %v2178_v0, %s4531_s10  ;;  %v4251_v1 = vpop.f32.mrf.mxu1  ;;  %4310 = vmatprep.mubr.msk.bf16.mxu1 %vm2194_vm7, %v2178_v0 }
 0x345   :  { %v2142_v49 = vsel %vm2014_vm14, %v1915_v62, %v2078_v8  ;;  %vm2017_vm15 = vcmp.ge.f32.partialorder %v4251_v1, 0.0  ;;  %v2081_v21 = vmul.f32 0.01, %v4251_v1  ;;  %4311 = vmatmul.mubr.msk.bf16.gmra.mxu1 %vm2194_vm7, %v2179_v29 }
 0x346   :  { %3761 = vst.msk [vmem:[%s7335_s8 + $0x1a0] sm:$0xff] %vm555_vm1, %v2142_v49  ;;  %v1918_v19 = vpop.f32.mrf.mxu1 }
 0x347   :  { %v2145_v4 = vsel %vm2017_vm15, %v4251_v1, %v2081_v21  ;;  %vm2015_vm0 = vcmp.ge.f32.partialorder %v1918_v19, 0.0  ;;  %v2079_v54 = vmul.f32 0.01, %v1918_v19 }
 0x348   :  { %v2181_v23 = vpack.c.bf16 %v2145_v4, %v2144_v26  ;;  %3764 = vst.msk [vmem:[%s7335_s8 + $0x1b8] sm:$0xff] %vm555_vm1, %v2145_v4  ;;  %v4254_v36 = vpop.f32.mrf.mxu1 }
 0x349   :  { %v2143_v6 = vsel %vm2015_vm0, %v1918_v19, %v2079_v54  ;;  %vm2020_vm2 = vcmp.ge.f32.partialorder %v4254_v36, 0.0  ;;  %v2084_v30 = vmul.f32 0.01, %v4254_v36 }
 0x34a   :  { %v2180_v29 = vpack.c.bf16 %v2143_v6, %v2142_v49  ;;  %3762 = vst.msk [vmem:[%s7335_s8 + $0x1a8] sm:$0xff] %vm555_vm1, %v2143_v6  ;;  %2860 = vrot.lane.b32.xlu1 %v2181_v23, %s4531_s10  ;;  %v1931_v0 = vpop.f32.mrf.mxu1 }
 0x34b   :  { %v2148_v62 = vsel %vm2020_vm2, %v4254_v36, %v2084_v30  ;;  %vm2018_vm3 = vcmp.ge.f32.partialorder %v1931_v0, 0.0  ;;  %v2082_v26 = vmul.f32 0.01, %v1931_v0 }
 0x34c   :  { %3767 = vst.msk [vmem:[%s7335_s8 + $0x1d0] sm:$0xff] %vm555_vm1, %v2148_v62  ;;  %2858 = vrot.lane.b32.xlu0 %v2180_v29, %s4531_s10  ;;  %v4255_v8 = vpop.f32.mrf.mxu1  ;;  %4314 = vmatprep.mubr.msk.bf16.mxu1 %vm2194_vm7, %v2180_v29 }
 0x34d   :  { %v2146_v1 = vsel %vm2018_vm3, %v1931_v0, %v2082_v26  ;;  %vm2021_vm4 = vcmp.ge.f32.partialorder %v4255_v8, 0.0  ;;  %v2085_v49 = vmul.f32 0.01, %v4255_v8  ;;  %4315 = vmatmul.mubr.msk.bf16.gmra.mxu1 %vm2194_vm7, %v2181_v23 }
 0x34e   :  { %3765 = vst.msk [vmem:[%s7335_s8 + $0x1c0] sm:$0xff] %vm555_vm1, %v2146_v1  ;;  %v1934_v21 = vpop.f32.mrf.mxu1 }
 0x34f   :  { %v2149_v19 = vsel %vm2021_vm4, %v4255_v8, %v2085_v49  ;;  %vm2019_vm5 = vcmp.ge.f32.partialorder %v1934_v21, 0.0  ;;  %v2083_v4 = vmul.f32 0.01, %v1934_v21 }
 0x350   :  { %v2183_v54 = vpack.c.bf16 %v2149_v19, %v2148_v62  ;;  %3768 = vst.msk [vmem:[%s7335_s8 + $0x1d8] sm:$0xff] %vm555_vm1, %v2149_v19  ;;  %v2809_v30 = vpop.permute.xlu1 %2808 }
 0x351   :  { %v2147_v36 = vsel %vm2019_vm5, %v1934_v21, %v2083_v4 }
 0x352   :  { %v2182_v6 = vpack.c.bf16 %v2147_v36, %v2146_v1  ;;  %3766 = vst.msk [vmem:[%s7335_s8 + $0x1c8] sm:$0xff] %vm555_vm1, %v2147_v36  ;;  %2864 = vrot.lane.b32.xlu1 %v2183_v54, %s4531_s10  ;;  %v2807_v23 = vpop.permute.xlu0 %2806 }
 0x353   :  { %4328 = vmatprep.mubr.msk.bf16.mxu0 %vm2194_vm7, %v2807_v23 }
 0x354   :  { %2862 = vrot.lane.b32.xlu0 %v2182_v6, %s4531_s10  ;;  %4318 = vmatprep.mubr.msk.bf16.mxu1 %vm2194_vm7, %v2182_v6 }
 0x355   :  { %4319 = vmatmul.mubr.msk.bf16.gmra.mxu1 %vm2194_vm7, %v2183_v54  ;;  %4329 = vmatmul.mubr.msk.bf16.vlgmr.msra.gmra.mxu0 %vm2194_vm7, %v2809_v30 }
 0x35a   :  { %v2811_v29 = vpop.permute.xlu1 %2810 }
 0x35b   :  { %4332 = vmatprep.mubr.msk.bf16.mxu0 %vm2194_vm7, %v2811_v29 }
 0x35e   :  { %v2813_v0 = vpop.permute.xlu1 %2812 }
 0x35f   :  { %4333 = vmatmul.mubr.msk.bf16.gmra.mxu0 %vm2194_vm7, %v2813_v0 }
 0x362   :  { %v2815_v62 = vpop.permute.xlu0 %2814  ;;  %v2817_v26 = vpop.permute.xlu1 %2816 }
 0x363   :  { %4336 = vmatprep.mubr.msk.bf16.mxu0 %vm2194_vm7, %v2815_v62 }
 0x367   :  { %4337 = vmatmul.mubr.msk.bf16.gmra.mxu0 %vm2194_vm7, %v2817_v26 }
 0x368   :  { %v2821_v1 = vpop.permute.xlu1 %2820 }
 0x36a   :  { %v2819_v8 = vpop.permute.xlu0 %2818 }
 0x36b   :  { %4340 = vmatprep.mubr.msk.bf16.mxu0 %vm2194_vm7, %v2819_v8 }
 0x36f   :  { %4341 = vmatmul.mubr.msk.bf16.gmra.mxu0 %vm2194_vm7, %v2821_v1 }
 0x370   :  { %v2825_v21 = vpop.permute.xlu1 %2824 }
 0x372   :  { %v2823_v49 = vpop.permute.xlu0 %2822 }
 0x373   :  { %4344 = vmatprep.mubr.msk.bf16.mxu0 %vm2194_vm7, %v2823_v49 }
 0x377   :  { %4345 = vmatmul.mubr.msk.bf16.gmra.mxu0 %vm2194_vm7, %v2825_v21 }
 0x378   :  { %v2829_v4 = vpop.permute.xlu1 %2828 }
 0x37a   :  { %v2827_v19 = vpop.permute.xlu0 %2826 }
 0x37b   :  { %4348 = vmatprep.mubr.msk.bf16.mxu0 %vm2194_vm7, %v2827_v19 }
 0x37f   :  { %4349 = vmatmul.mubr.msk.bf16.gmra.mxu0 %vm2194_vm7, %v2829_v4 }
 0x384   :  { %v2833_v36 = vpop.permute.xlu1 %2832 }
 0x386   :  { %v2831_v54 = vpop.permute.xlu0 %2830 }
 0x387   :  { %4352 = vmatprep.mubr.msk.bf16.mxu0 %vm2194_vm7, %v2831_v54 }
 0x388   :  { %4353 = vmatmul.mubr.msk.bf16.gmra.mxu0 %vm2194_vm7, %v2833_v36 }
 0x38c   :  { %v2837_v23 = vpop.permute.xlu1 %2836 }
 0x38e   :  { %v2835_v6 = vpop.permute.xlu0 %2834 }
 0x38f   :  { %4356 = vmatprep.mubr.msk.bf16.mxu0 %vm2194_vm7, %v2835_v6 }
 0x390   :  { %4357 = vmatmul.mubr.msk.bf16.gmra.mxu0 %vm2194_vm7, %v2837_v23 }
 0x391   :  { %v4258_v30 = vpop.f32.mrf.mxu1 }
 0x392   :  { %vm2024_vm6 = vcmp.ge.f32.partialorder %v4258_v30, 0.0  ;;  %v2088_v29 = vmul.f32 0.01, %v4258_v30 }
 0x393   :  { %v1947_v0 = vpop.f32.mrf.mxu1 }
 0x394   :  { %v2152_v62 = vsel %vm2024_vm6, %v4258_v30, %v2088_v29  ;;  %vm2022_vm8 = vcmp.ge.f32.partialorder %v1947_v0, 0.0  ;;  %v2086_v26 = vmul.f32 0.01, %v1947_v0  ;;  %v2841_v19 = vpop.permute.xlu1 %2840 }
 0x395   :  { %3771 = vst.msk [vmem:[%s7335_s8 + $0x1f0] sm:$0xff] %vm555_vm1, %v2152_v62  ;;  %v4259_v8 = vpop.f32.mrf.mxu1 }
 0x396   :  { %v2150_v1 = vsel %vm2022_vm8, %v1947_v0, %v2086_v26  ;;  %vm2025_vm9 = vcmp.ge.f32.partialorder %v4259_v8, 0.0  ;;  %v2089_v49 = vmul.f32 0.01, %v4259_v8  ;;  %v2839_v21 = vpop.permute.xlu0 %2838 }
 0x397   :  { %3769 = vst.msk [vmem:[%s7335_s8 + $0x1e0] sm:$0xff] %vm555_vm1, %v2150_v1  ;;  %v1950_v4 = vpop.f32.mrf.mxu1  ;;  %4360 = vmatprep.mubr.msk.bf16.mxu0 %vm2194_vm7, %v2839_v21 }
 0x398   :  { %v2153_v54 = vsel %vm2025_vm9, %v4259_v8, %v2089_v49  ;;  %vm2023_vm10 = vcmp.ge.f32.partialorder %v1950_v4, 0.0  ;;  %v2087_v36 = vmul.f32 0.01, %v1950_v4  ;;  %4361 = vmatmul.mubr.msk.bf16.gmra.mxu0 %vm2194_vm7, %v2841_v19 }
 0x399   :  { %v2185_v6 = vpack.c.bf16 %v2153_v54, %v2152_v62  ;;  %3772 = vst.msk [vmem:[%s7335_s8 + $0x1f8] sm:$0xff] %vm555_vm1, %v2153_v54 }
 0x39a   :  { %v2151_v23 = vsel %vm2023_vm10, %v1950_v4, %v2087_v36 }
 0x39b   :  { %v2184_v30 = vpack.c.bf16 %v2151_v23, %v2150_v1  ;;  %3770 = vst.msk [vmem:[%s7335_s8 + $0x1e8] sm:$0xff] %vm555_vm1, %v2151_v23  ;;  %2868 = vrot.lane.b32.xlu1 %v2185_v6, %s4531_s10 }
 0x39c   :  { %v2845_v0 = vpop.permute.xlu1 %2844 }
 0x39d   :  { %2866 = vrot.lane.b32.xlu0 %v2184_v30, %s4531_s10  ;;  %4322 = vmatprep.mubr.msk.bf16.mxu1 %vm2194_vm7, %v2184_v30 }
 0x39e   :  { %4323 = vmatmul.mubr.msk.bf16.gmra.mxu1 %vm2194_vm7, %v2185_v6  ;;  %v2843_v29 = vpop.permute.xlu0 %2842 }
 0x39f   :  { %4364 = vmatprep.mubr.msk.bf16.mxu0 %vm2194_vm7, %v2843_v29 }
 0x3a0   :  { %4365 = vmatmul.mubr.msk.bf16.gmra.mxu0 %vm2194_vm7, %v2845_v0 }
 0x3a1   :  { %v6310_v62 = vpop.f32.mrf.mxu1 }
 0x3a2   :  { %vm2582_vm11 = vcmp.ge.f32.partialorder %v6310_v62, 0.0 }
 0x3a3   :  { %v6312_v26 = vpop.f32.mrf.mxu1 }
 0x3a4   :  { %v2849_v1 = vpop.permute.xlu1 %2848  ;;  %vm2580_vm12 = vcmp.ge.f32.partialorder %v6312_v26, 0.0 }
 0x3a5   :  { %v6316_v49 = vpop.f32.mrf.mxu1 }
 0x3a6   :  { %v2847_v8 = vpop.permute.xlu0 %2846  ;;  %vm2583_vm13 = vcmp.ge.f32.partialorder %v6316_v49, 0.0 }
 0x3a7   :  { %4368 = vmatprep.mubr.msk.bf16.mxu0 %vm2194_vm7, %v2847_v8  ;;  %v6318_v21 = vpop.f32.mrf.mxu1 }
 0x3a8   :  { %4369 = vmatmul.mubr.msk.bf16.gmra.mxu0 %vm2194_vm7, %v2849_v1  ;;  %vm2581_vm14 = vcmp.ge.f32.partialorder %v6318_v21, 0.0 }
 0x3a9   :  { %v6322_v54 = vpop.f32.mrf.mxu1 }
 0x3aa   :  { %vm2586_vm15 = vcmp.ge.f32.partialorder %v6322_v54, 0.0 }
 0x3ab   :  { %v6324_v36 = vpop.f32.mrf.mxu1 }
 0x3ac   :  { %v2853_v4 = vpop.permute.xlu1 %2852  ;;  %vm2584_vm0 = vcmp.ge.f32.partialorder %v6324_v36, 0.0 }
 0x3ad   :  { %v6328_v30 = vpop.f32.mrf.mxu1 }
 0x3ae   :  { %v2851_v19 = vpop.permute.xlu0 %2850  ;;  %vm2587_vm2 = vcmp.ge.f32.partialorder %v6328_v30, 0.0 }
 0x3af   :  { %4372 = vmatprep.mubr.msk.bf16.mxu0 %vm2194_vm7, %v2851_v19  ;;  %v6330_v29 = vpop.f32.mrf.mxu1 }
 0x3b0   :  { %4373 = vmatmul.mubr.msk.bf16.gmra.mxu0 %vm2194_vm7, %v2853_v4  ;;  %vm2585_vm3 = vcmp.ge.f32.partialorder %v6330_v29, 0.0 }
 0x3b2   :  { %v6334_v1 = vpop.f32.mrf.mxu1 }
 0x3b3   :  { %7488 = vst [vmem:[#allocation12_spill] sm:$0xff] %v6334_v1 }
 0x3b4   :  { %v2857_v23 = vpop.permute.xlu1 %2856  ;;  %v6336_v19 = vpop.f32.mrf.mxu1 }
 0x3b5   :  { %7489 = vst [vmem:[#allocation14_spill] sm:$0xff] %v6336_v19 }
 0x3b6   :  { %v2855_v6 = vpop.permute.xlu0 %2854 }
 0x3b7   :  { %4376 = vmatprep.mubr.msk.bf16.mxu0 %vm2194_vm7, %v2855_v6  ;;  %v6340_v6 = vpop.f32.mrf.mxu1 }
 0x3b8   :  { %4377 = vmatmul.mubr.msk.bf16.gmra.mxu0 %vm2194_vm7, %v2857_v23  ;;  %7490 = vst [vmem:[#allocation22_spill] sm:$0xff] %v6340_v6 }
 0x3b9   :  { %v6342_v23 = vpop.f32.mrf.mxu1 }
 0x3ba   :  { %7491 = vst [vmem:[#allocation24_spill] sm:$0xff] %v6342_v23 }
 0x3bb   :  { %v6344_v41 = vpop.f32.mrf.mxu1 }
 0x3bc   :  { %v2861_v8 = vpop.permute.xlu1 %2860  ;;  %vm2594_vm8 = vcmp.ge.f32.partialorder %v6344_v41, 0.0 }
 0x3bd   :  { %v6346_v39 = vpop.f32.mrf.mxu1 }
 0x3be   :  { %v2859_v0 = vpop.permute.xlu0 %2858  ;;  %7492 = vst [vmem:[#allocation25_spill] sm:$0xff] %v6346_v39  ;;  %v6367_v39 = vmul.f32 0.6, %v5555_v24  ;;  %v6388_v24 = vmul.f32 0.6, %v5578_v38 }
 0x3bf   :  { %4380 = vmatprep.mubr.msk.bf16.mxu0 %vm2194_vm7, %v2859_v0  ;;  %v6348_v0 = vpop.f32.mrf.mxu1  ;;  %v6408_v38 = vmul.f32 0.6, %v5627_v40  ;;  %v6428_v40 = vmul.f32 0.6, %v5668_v58  ;;  %v6449_v58 = vmul.f32 0.6, %v5728_v16 }
 0x3c0   :  { %4381 = vmatmul.mubr.msk.bf16.gmra.mxu0 %vm2194_vm7, %v2861_v8  ;;  %7493 = vst [vmem:[#allocation26_spill] sm:$0xff] %v6348_v0  ;;  %v6370_v0 = vmul.f32 0.6, %v5549_v35  ;;  %v6391_v35 = vmul.f32 0.6, %v5607_v3 }
 0x3c1   :  { %v6350_v8 = vpop.f32.mrf.mxu1  ;;  %v6411_v3 = vmul.f32 0.6, %v5630_v57  ;;  %7504 = vst [vmem:[#allocation35_spill] sm:$0xff] %v6428_v40  ;;  %v6431_v57 = vmul.f32 0.6, %v5697_v46  ;;  %7511 = vst [vmem:[#allocation42_spill] sm:$0xff] %v6449_v58 }
 0x3c2   :  { %7499 = vst [vmem:[#allocation32_spill] sm:$0xff] %v6391_v35  ;;  %v7501_v35 = vld [vmem:[#allocation15_spill] sm:$0xff]  ;;  %v6452_v46 = vmul.f32 0.6, %v5714_v60  ;;  %v6469_v16 = vmul.f32 0.6, %v5761_v25 }
 0x3c3   :  { %v6352_v33 = vpop.f32.mrf.mxu1  ;;  %7505 = vst [vmem:[#allocation36_spill] sm:$0xff] %v6431_v57  ;;  %v6472_v60 = vmul.f32 0.6, %v5765_v37  ;;  %v6490_v25 = vmul.f32 0.6, %v5791_v32 }
 0x3c4   :  { %v2865_v31 = vpop.permute.xlu1 %2864  ;;  %7494 = vst [vmem:[#allocation27_spill] sm:$0xff] %v6352_v33  ;;  %v6373_v33 = vmul.f32 0.6, %v5552_v47  ;;  %v6394_v47 = vmul.f32 0.6, %v5598_v11  ;;  %7512 = vst [vmem:[#allocation43_spill] sm:$0xff] %v6452_v46 }
 0x3c5   :  { %v6354_v19 = vpop.f32.mrf.mxu1  ;;  %v6414_v11 = vmul.f32 0.6, %v7501_v35  ;;  %v6434_v35 = vmul.f32 0.6, %v5691_v53  ;;  %7517 = vst [vmem:[#allocation48_spill] sm:$0xff] %v6469_v16  ;;  %7518 = vst [vmem:[#allocation49_spill] sm:$0xff] %v6472_v60 }
 0x3c6   :  { %v2863_v4 = vpop.permute.xlu0 %2862  ;;  %7495 = vst [vmem:[#allocation28_spill] sm:$0xff] %v6354_v19  ;;  %v6376_v19 = vmul.f32 0.6, %v5546_v17  ;;  %7500 = vst [vmem:[#allocation33_spill] sm:$0xff] %v6394_v47  ;;  %v6475_v46 = vmul.f32 0.6, %v5777_v61 }
 0x3c7   :  { %4384 = vmatprep.mubr.msk.bf16.mxu0 %vm2194_vm7, %v2863_v4  ;;  %v6356_v1 = vpop.f32.mrf.mxu1  ;;  %7502 = vst [vmem:[#allocation15_spill] sm:$0xff] %v6414_v11  ;;  %7506 = vst [vmem:[#allocation37_spill] sm:$0xff] %v6434_v35  ;;  %v6437_v11 = vmul.f32 0.6, %v5688_v9  ;;  %v6457_v9 = vmul.f32 0.6, %v5751_v45 }
 0x3c8   :  { %4385 = vmatmul.mubr.msk.bf16.gmra.mxu0 %vm2194_vm7, %v2865_v31  ;;  %7519 = vst [vmem:[#allocation50_spill] sm:$0xff] %v6475_v46  ;;  %v6478_v45 = vmul.f32 0.6, %v5780_v48  ;;  %7524 = vst [vmem:[#allocation55_spill] sm:$0xff] %v6490_v25  ;;  %v7525_v60 = vld [vmem:[#allocation17_spill] sm:$0xff]  ;;  %v7527_v16 = vld [vmem:[#allocation16_spill] sm:$0xff] }
 0x3c9   :  { %v6358_v4 = vpop.f32.mrf.mxu1  ;;  %7507 = vst [vmem:[#allocation38_spill] sm:$0xff] %v6437_v11  ;;  %7513 = vst [vmem:[#allocation44_spill] sm:$0xff] %v6457_v9  ;;  %v6495_v61 = vmul.f32 0.6, %v7525_v60  ;;  %v6498_v48 = vmul.f32 0.6, %v7527_v16 }
 0x3ca   :  { %7496 = vst [vmem:[#allocation29_spill] sm:$0xff] %v6358_v4  ;;  %v6379_v4 = vmul.f32 0.6, %v5581_v59  ;;  %v6399_v59 = vmul.f32 0.6, %v5601_v22  ;;  %7520 = vst [vmem:[#allocation51_spill] sm:$0xff] %v6478_v45 }
 0x3cb   :  { %v6360_v31 = vpop.f32.mrf.mxu1  ;;  %v6419_v22 = vmul.f32 0.6, %v5671_v13  ;;  %v6440_v13 = vmul.f32 0.6, %v5694_v12  ;;  %v6460_v12 = vmul.f32 0.6, %v5735_v14 }
 0x3cc   :  { %7497 = vst [vmem:[#allocation30_spill] sm:$0xff] %v6360_v31  ;;  %v6382_v31 = vmul.f32 0.6, %v5575_v27  ;;  %v6402_v27 = vmul.f32 0.6, %v5604_v44  ;;  %7526 = vst [vmem:[#allocation17_spill] sm:$0xff] %v6495_v61 }
 0x3cd   :  { %v6362_v6 = vpop.f32.mrf.mxu1  ;;  %v6422_v44 = vmul.f32 0.6, %v5662_v5  ;;  %7508 = vst [vmem:[#allocation39_spill] sm:$0xff] %v6440_v13  ;;  %v6443_v5 = vmul.f32 0.6, %v5710_v2  ;;  %7514 = vst [vmem:[#allocation45_spill] sm:$0xff] %v6460_v12 }
 0x3ce   :  { %v6463_v2 = vmul.f32 0.6, %v5739_v18  ;;  %v6481_v14 = vmul.f32 0.6, %v5787_v52  ;;  %v6484_v18 = vmul.f32 0.6, %v5803_v15 }
 0x3cf   :  { %v6364_v23 = vpop.f32.mrf.mxu1  ;;  %7509 = vst [vmem:[#allocation40_spill] sm:$0xff] %v6443_v5  ;;  %7528 = vst [vmem:[#allocation16_spill] sm:$0xff] %v6498_v48  ;;  %v7529_v45 = vld [vmem:[#allocation23_spill] sm:$0xff]  ;;  %v7537_v25 = vld [vmem:[#allocation20_spill] sm:$0xff]  ;;  %v6519_v16 = vmul.f32 0.6, %v5868_v51 }
 0x3d0   :  { %7498 = vst [vmem:[#allocation31_spill] sm:$0xff] %v6364_v23  ;;  %v6385_v23 = vmul.f32 0.6, %v5572_v63  ;;  %v6405_v63 = vmul.f32 0.6, %v5641_v28  ;;  %7515 = vst [vmem:[#allocation46_spill] sm:$0xff] %v6463_v2 }
 0x3d1   :  { %v6396_v17 = vpop.f32.mrf.mxu1  ;;  %v6425_v28 = vmul.f32 0.6, %v5665_v43  ;;  %v6446_v43 = vmul.f32 0.6, %v5725_v34  ;;  %v6466_v34 = vmul.f32 0.6, %v5754_v7 }
 0x3d2   :  { %7521 = vst [vmem:[#allocation52_spill] sm:$0xff] %v6481_v14  ;;  %7522 = vst [vmem:[#allocation53_spill] sm:$0xff] %v6484_v18  ;;  %v6487_v7 = vmul.f32 0.6, %v5806_v56  ;;  %v6501_v52 = vmul.f32 0.6, %v7529_v45 }
 0x3d3   :  { %7503 = vst [vmem:[#allocation34_spill] sm:$0xff] %v6425_v28  ;;  %7510 = vst [vmem:[#allocation41_spill] sm:$0xff] %v6446_v43  ;;  %v7531_v14 = vld [vmem:[#allocation19_spill] sm:$0xff]  ;;  %v7533_v18 = vld [vmem:[#allocation21_spill] sm:$0xff]  ;;  %v6513_v46 = vmul.f32 0.6, %v7537_v25 }
 0x3d4   :  { %7516 = vst [vmem:[#allocation47_spill] sm:$0xff] %v6466_v34  ;;  %7523 = vst [vmem:[#allocation54_spill] sm:$0xff] %v6487_v7  ;;  %v6504_v15 = vmul.f32 0.6, %v7531_v14  ;;  %v6507_v56 = vmul.f32 0.6, %v7533_v18 }
 0x3d5   :  { %v6416_v47 = vpop.f32.mrf.mxu1  ;;  %7530 = vst [vmem:[#allocation23_spill] sm:$0xff] %v6501_v52  ;;  %v7535_v7 = vld [vmem:[#allocation18_spill] sm:$0xff]  ;;  %7538 = vst [vmem:[#allocation20_spill] sm:$0xff] %v6513_v46  ;;  %v7539_v60 = vld [vmem:[#allocation3_spill] sm:$0xff]  ;;  %v2646_v45 = vmul.f32 0.01, %v6310_v62 }
 0x3d6   :  { %7532 = vst [vmem:[#allocation19_spill] sm:$0xff] %v6504_v15  ;;  %7534 = vst [vmem:[#allocation21_spill] sm:$0xff] %v6507_v56  ;;  %v6510_v32 = vmul.f32 0.6, %v7535_v7  ;;  %v6516_v61 = vmul.f32 0.6, %v7539_v60 }
 0x3d7   :  { %v6454_v53 = vpop.f32.mrf.mxu1  ;;  %7541 = vst [vmem:[#allocation56_spill] sm:$0xff] %v6519_v16  ;;  %v2644_v14 = vmul.f32 0.01, %v6312_v26  ;;  %v6524_v52 = vmul.f32 0.6, %v5872_v10  ;;  %v2710_v56 = vsel %vm2582_vm11, %v6310_v62, %v2646_v45  ;;  %v7550_v15 = vld [vmem:[#allocation4_spill] sm:$0xff] }
 0x3d8   :  { %7536 = vst [vmem:[#allocation18_spill] sm:$0xff] %v6510_v32  ;;  %7540 = vst [vmem:[#allocation3_spill] sm:$0xff] %v6516_v61  ;;  %v2647_v18 = vmul.f32 0.01, %v6316_v49  ;;  %v2645_v7 = vmul.f32 0.01, %v6318_v21 }
 0x3d9   :  { %v6492_v37 = vpop.f32.mrf.mxu1  ;;  %7542 = vst [vmem:[#allocation57_spill] sm:$0xff] %v6524_v52  ;;  %v6535_v51 = vmul.f32 0.6, %v5884_v20  ;;  %v6538_v10 = vmul.f32 0.6, %v5887_v50  ;;  %v7546_v52 = vld [vmem:[#allocation5_spill] sm:$0xff]  ;;  %v6551_v46 = vsel %vm2580_vm12, %v6312_v26, %v2644_v14 }
 0x3da   :  { %v6541_v60 = vmul.f32 0.6, %v5909_v55  ;;  %v6544_v16 = vmul.f32 0.6, %v7546_v52  ;;  %v7548_v32 = vld [vmem:[#allocation2_spill] sm:$0xff]  ;;  %v6560_v55 = vsel %vm2583_vm13, %v6316_v49, %v2647_v18  ;;  %v6563_v52 = vsel %vm2581_vm14, %v6318_v21, %v2645_v7  ;;  %v7553_v45 = vld [vmem:[#allocation12_spill] sm:$0xff] }
 0x3db   :  { %v6530_v25 = vpop.f32.mrf.mxu1  ;;  %7543 = vst [vmem:[#allocation58_spill] sm:$0xff] %v6535_v51  ;;  %7544 = vst [vmem:[#allocation59_spill] sm:$0xff] %v6538_v10  ;;  %v6547_v61 = vmul.f32 0.6, %v7548_v32  ;;  %v6554_v20 = vmul.f32 0.6, %v7550_v15 }
 0x3dc   :  { %7545 = vst [vmem:[#allocation60_spill] sm:$0xff] %v6541_v60  ;;  %7547 = vst [vmem:[#allocation5_spill] sm:$0xff] %v6544_v16  ;;  %v6557_v50 = vmul.f32 0.6, %v5937_v42  ;;  %v2650_v32 = vmul.f32 0.01, %v6322_v54 }
 0x3dd   :  { %7549 = vst [vmem:[#allocation2_spill] sm:$0xff] %v6547_v61  ;;  %7551 = vst [vmem:[#allocation4_spill] sm:$0xff] %v6554_v20  ;;  %v6567_v62 = vpop.f32.mrf.mxu1  ;;  %v2648_v15 = vmul.f32 0.01, %v6324_v36  ;;  %v2651_v42 = vmul.f32 0.01, %v6328_v30 }
 0x3de   :  { %7552 = vst [vmem:[#allocation61_spill] sm:$0xff] %v6557_v50  ;;  %v2649_v21 = vmul.f32 0.01, %v6330_v29  ;;  %vm2590_vm4 = vcmp.ge.f32.partialorder %v7553_v45, 0.0  ;;  %v2654_v14 = vmul.f32 0.01, %v7553_v45 }
 0x3df   :  { %v7554_v18 = vld [vmem:[#allocation14_spill] sm:$0xff]  ;;  %v7556_v20 = vld [vmem:[#allocation24_spill] sm:$0xff]  ;;  %v2658_v60 = vmul.f32 0.01, %v6344_v41  ;;  %v7557_v10 = vld [vmem:[#allocation25_spill] sm:$0xff]  ;;  %vm2593_vm12 = vcmp.ge.f32.partialorder %v6350_v8, 0.0 }
 0x3e0   :  { %vm2588_vm5 = vcmp.ge.f32.partialorder %v7554_v18, 0.0  ;;  %v2652_v7 = vmul.f32 0.01, %v7554_v18  ;;  %v7555_v50 = vld [vmem:[#allocation22_spill] sm:$0xff]  ;;  %v2653_v16 = vmul.f32 0.01, %v7556_v20  ;;  %v6610_v34 = vsel %vm2585_vm3, %v6330_v29, %v2649_v21 }
 0x3e1   :  { %vm2591_vm6 = vcmp.ge.f32.partialorder %v7555_v50, 0.0  ;;  %v2655_v61 = vmul.f32 0.01, %v7555_v50  ;;  %v2656_v51 = vmul.f32 0.01, %v7557_v10  ;;  %vm2592_vm9 = vcmp.ge.f32.partialorder %v7557_v10, 0.0 }
 0x3e2   :  { %v7558_v48 = vld [vmem:[#allocation26_spill] sm:$0xff]  ;;  %v6616_v9 = vsel %vm2590_vm4, %v7553_v45, %v2654_v14  ;;  %v7561_v13 = vld [vmem:[#allocation29_spill] sm:$0xff] }
 0x3e3   :  { %v2659_v2 = vmul.f32 0.01, %v7558_v48  ;;  %vm2595_vm10 = vcmp.ge.f32.partialorder %v7558_v48, 0.0  ;;  %vm2597_vm3 = vcmp.ge.f32.partialorder %v7561_v13, 0.0  ;;  %v7562_v11 = vld [vmem:[#allocation30_spill] sm:$0xff] }
 0x3e4   :  { %v2666_v57 = vmul.f32 0.01, %v7562_v11 }
 0x40d   :  { %v2869_v49 = vpop.permute.xlu1 %2868 }
 0x40f   :  { %v2867_v26 = vpop.permute.xlu0 %2866 }
 0x410   :  { %4388 = vmatprep.mubr.msk.bf16.mxu0 %vm2194_vm7, %v2867_v26  ;;  %v6586_v26 = vsel %vm2586_vm15, %v6322_v54, %v2650_v32  ;;  %v6600_v54 = vsel %vm2584_vm0, %v6324_v36, %v2648_v15  ;;  %v6605_v32 = vsel %vm2587_vm2, %v6328_v30, %v2651_v42  ;;  %v6621_v36 = vsel %vm2588_vm5, %v7554_v18, %v2652_v7 }
 0x411   :  { %4389 = vmatmul.mubr.msk.bf16.gmra.mxu0 %vm2194_vm7, %v2869_v49  ;;  %v6591_v49 = vpop.f32.mrf.mxu1  ;;  %vm2589_vm7 = vcmp.ge.f32.partialorder %v7556_v20, 0.0  ;;  %v6626_v30 = vsel %vm2591_vm6, %v7555_v50, %v2655_v61  ;;  %v6632_v15 = vsel %vm2594_vm8, %v6344_v41, %v2658_v60  ;;  %v6635_v42 = vsel %vm2592_vm9, %v7557_v10, %v2656_v51  ;;  %v7560_v10 = vld [vmem:[#allocation28_spill] sm:$0xff] }
 0x412   :  { %v6629_v29 = vsel %vm2589_vm7, %v7556_v20, %v2653_v16  ;;  %v6640_v18 = vsel %vm2595_vm10, %v7558_v48, %v2659_v2  ;;  %v2657_v61 = vmul.f32 0.01, %v6350_v8  ;;  %v7559_v16 = vld [vmem:[#allocation27_spill] sm:$0xff]  ;;  %vm2596_vm15 = vcmp.ge.f32.partialorder %v7560_v10, 0.0 }
 0x413   :  { %v6637_v21 = vpop.f32.mrf.mxu1  ;;  %vm2598_vm14 = vcmp.ge.f32.partialorder %v7559_v16, 0.0  ;;  %v2662_v41 = vmul.f32 0.01, %v7559_v16  ;;  %v2660_v50 = vmul.f32 0.01, %v7560_v10  ;;  %vm2599_vm0 = vcmp.ge.f32.partialorder %v6356_v1, 0.0 }
 0x414   :  { %v2663_v48 = vmul.f32 0.01, %v6356_v1  ;;  %vm2602_vm5 = vcmp.ge.f32.partialorder %v7562_v11, 0.0  ;;  %v6662_v28 = vsel %vm2593_vm12, %v6350_v8, %v2657_v61  ;;  %vm2600_vm8 = vcmp.ge.f32.partialorder %v6362_v6, 0.0 }
 0x415   :  { %v4330_v12 = vpop.f32.mrf.mxu0  ;;  %v6650_v7 = vpop.f32.mrf.mxu1 }
 0x416   :  { %vm3263_vm11 = vcmp.ge.f32.partialorder %v4330_v12, 0.0  ;;  %v3327_v45 = vmul.f32 0.01, %v4330_v12  ;;  %v6685_v61 = vsel %vm2599_vm0, %v6356_v1, %v2663_v48 }
 0x417   :  { %v3006_v14 = vpop.f32.mrf.mxu0 }
 0x418   :  { %vm3261_vm13 = vcmp.ge.f32.partialorder %v3006_v14, 0.0  ;;  %v3391_v60 = vsel %vm3263_vm11, %v4330_v12, %v3327_v45  ;;  %v3325_v20 = vmul.f32 0.01, %v3006_v14  ;;  %v2661_v12 = vmul.f32 0.01, %v7561_v13 }
 0x419   :  { %v4331_v51 = vpop.f32.mrf.mxu0  ;;  %v3519_v2 = vadd.f32 %v3391_v60, %v2710_v56  ;;  %vm2601_vm11 = vcmp.ge.f32.partialorder %v6396_v17, 0.0 }
 0x41a   :  { %v3389_v58 = vsel %vm3261_vm13, %v3006_v14, %v3325_v20  ;;  %vm3264_vm2 = vcmp.ge.f32.partialorder %v4331_v51, 0.0  ;;  %v3328_v5 = vmul.f32 0.01, %v4331_v51  ;;  %vm2606_vm13 = vcmp.ge.f32.partialorder %v6416_v47, 0.0 }
 0x41b   :  { %v3009_v43 = vpop.f32.mrf.mxu0  ;;  %v3583_v45 = vmul.f32 0.2, %v3519_v2  ;;  %v3517_v35 = vadd.f32 %v3389_v58, %v6551_v46  ;;  %v6667_v58 = vsel %vm2598_vm14, %v7559_v16, %v2662_v41  ;;  %v6674_v46 = vpop.f32.mrf.mxu1  ;;  %v6695_v16 = vsel %vm2602_vm5, %v7562_v11, %v2666_v57 }
 0x41c   :  { %v3392_v40 = vsel %vm3264_vm2, %v4331_v51, %v3328_v5  ;;  %vm3262_vm4 = vcmp.ge.f32.partialorder %v3009_v43, 0.0  ;;  %v3326_v56 = vmul.f32 0.01, %v3009_v43  ;;  %v6672_v5 = vsel %vm2596_vm15, %v7560_v10, %v2660_v50  ;;  %v7563_v10 = vld [vmem:[#allocation31_spill] sm:$0xff] }
 0x41d   :  { %v3647_v60 = vadd.f32 %v3583_v45, %v6367_v39  ;;  %v3581_v14 = vmul.f32 0.2, %v3517_v35  ;;  %v3520_v20 = vadd.f32 %v3392_v40, %v6560_v55  ;;  %vm2603_vm9 = vcmp.ge.f32.partialorder %v7563_v10, 0.0  ;;  %v6705_v11 = vpop.f32.mrf.mxu1 }
 0x41e   :  { %v3390_v39 = vsel %vm3262_vm4, %v3009_v43, %v3326_v56  ;;  %v6690_v43 = vsel %vm2597_vm3, %v7561_v13, %v2661_v12  ;;  %v2664_v13 = vmul.f32 0.01, %v6362_v6  ;;  %v2667_v12 = vmul.f32 0.01, %v7563_v10 }
 0x41f   :  { %v4334_v35 = vpop.f32.mrf.mxu0  ;;  %3775 = vst.msk [vmem:[%s7336_s9 + $0x10] sm:$0xff] %vm555_vm1, %v3647_v60  ;;  %v3645_v8 = vadd.f32 %v3581_v14, %v6370_v0  ;;  %v3584_v40 = vmul.f32 0.2, %v3520_v20  ;;  %v3518_v55 = vadd.f32 %v3390_v39, %v6563_v52  ;;  %v2665_v45 = vmul.f32 0.01, %v6396_v17  ;;  %v6723_v39 = vpop.f32.mrf.mxu1 }
 0x420   :  { %vm3267_vm6 = vcmp.ge.f32.partialorder %v4334_v35, 0.0  ;;  %v3331_v0 = vmul.f32 0.01, %v4334_v35  ;;  %v2670_v20 = vmul.f32 0.01, %v6416_v47  ;;  %vm2604_vm2 = vcmp.ge.f32.partialorder %v6454_v53, 0.0 }
 0x421   :  { %v3022_v41 = vpop.f32.mrf.mxu0  ;;  %3773 = vst.msk [vmem:[%s7336_s9] sm:$0xff] %vm555_vm1, %v3645_v8  ;;  %v3648_v1 = vadd.f32 %v3584_v40, %v6376_v19  ;;  %v3582_v52 = vmul.f32 0.2, %v3518_v55  ;;  %vm2607_vm4 = vcmp.ge.f32.partialorder %v6492_v37, 0.0 }
 0x422   :  { %vm3265_vm7 = vcmp.ge.f32.partialorder %v3022_v41, 0.0  ;;  %v3329_v51 = vmul.f32 0.01, %v3022_v41  ;;  %v3395_v57 = vsel %vm3267_vm6, %v4334_v35, %v3331_v0  ;;  %vm2605_vm6 = vcmp.ge.f32.partialorder %v6530_v25, 0.0 }
 0x423   :  { %v4335_v50 = vpop.f32.mrf.mxu0  ;;  %3776 = vst.msk [vmem:[%s7336_s9 + $0x18] sm:$0xff] %vm555_vm1, %v3648_v1  ;;  %v3646_v19 = vadd.f32 %v3582_v52, %v6373_v33  ;;  %v3523_v2 = vadd.f32 %v3395_v57, %v6586_v26 }
 0x424   :  { %v3393_v48 = vsel %vm3265_vm7, %v3022_v41, %v3329_v51  ;;  %vm3268_vm10 = vcmp.ge.f32.partialorder %v4335_v50, 0.0  ;;  %v3332_v60 = vmul.f32 0.01, %v4335_v50  ;;  %v6730_v41 = vsel %vm2600_vm8, %v6362_v6, %v2664_v13 }
 0x425   :  { %v3521_v56 = vadd.f32 %v3393_v48, %v6600_v54  ;;  %v3025_v14 = vpop.f32.mrf.mxu0  ;;  %3774 = vst.msk [vmem:[%s7336_s9 + $0x8] sm:$0xff] %vm555_vm1, %v3646_v19  ;;  %v3587_v33 = vmul.f32 0.2, %v3523_v2 }
 0x426   :  { %vm3266_vm12 = vcmp.ge.f32.partialorder %v3025_v14, 0.0  ;;  %v3330_v26 = vmul.f32 0.01, %v3025_v14  ;;  %v3396_v54 = vsel %vm3268_vm10, %v4335_v50, %v3332_v60  ;;  %v6737_v50 = vsel %vm2603_vm9, %v7563_v10, %v2667_v12 }
 0x427   :  { %v3585_v35 = vmul.f32 0.2, %v3521_v56  ;;  %v4338_v8 = vpop.f32.mrf.mxu0  ;;  %v3651_v40 = vadd.f32 %v3587_v33, %v6379_v4  ;;  %v3524_v55 = vadd.f32 %v3396_v54, %v6605_v32  ;;  %v6753_v32 = vpop.f32.mrf.mxu1  ;;  %vm2610_vm9 = vcmp.ge.f32.partialorder %v6567_v62, 0.0 }
 0x428   :  { %v3394_v0 = vsel %vm3266_vm12, %v3025_v14, %v3330_v26  ;;  %vm3271_vm14 = vcmp.ge.f32.partialorder %v4338_v8, 0.0  ;;  %v3335_v51 = vmul.f32 0.01, %v4338_v8  ;;  %v2671_v14 = vmul.f32 0.01, %v6492_v37 }
 0x429   :  { %v3649_v1 = vadd.f32 %v3585_v35, %v6382_v31  ;;  %v3522_v52 = vadd.f32 %v3394_v0, %v6610_v34  ;;  %v3038_v57 = vpop.f32.mrf.mxu0  ;;  %3779 = vst.msk [vmem:[%s7336_s9 + $0x30] sm:$0xff] %vm555_vm1, %v3651_v40  ;;  %v3588_v4 = vmul.f32 0.2, %v3524_v55  ;;  %v6746_v31 = vsel %vm2601_vm11, %v6396_v17, %v2665_v45  ;;  %v6772_v33 = vpop.f32.mrf.mxu1 }
 0x42a   :  { %vm3269_vm15 = vcmp.ge.f32.partialorder %v3038_v57, 0.0  ;;  %v3333_v6 = vmul.f32 0.01, %v3038_v57  ;;  %v6751_v34 = vsel %vm2606_vm13, %v6416_v47, %v2670_v20  ;;  %v3399_v10 = vsel %vm3271_vm14, %v4338_v8, %v3335_v51  ;;  %v7564_v20 = vld [vmem:[#allocation32_spill] sm:$0xff] }
 0x42b   :  { %3777 = vst.msk [vmem:[%s7336_s9 + $0x20] sm:$0xff] %vm555_vm1, %v3649_v1  ;;  %v3586_v13 = vmul.f32 0.2, %v3522_v52  ;;  %v4339_v19 = vpop.f32.mrf.mxu0  ;;  %v3652_v2 = vadd.f32 %v3588_v4, %v6385_v23  ;;  %v3527_v17 = vadd.f32 %v3399_v10, %v6616_v9  ;;  %v2668_v47 = vmul.f32 0.01, %v6454_v53  ;;  %v7565_v10 = vld [vmem:[#allocation33_spill] sm:$0xff] }
 0x42c   :  { %v3397_v48 = vsel %vm3269_vm15, %v3038_v57, %v3333_v6  ;;  %vm3272_vm0 = vcmp.ge.f32.partialorder %v4339_v19, 0.0  ;;  %v3336_v56 = vmul.f32 0.01, %v4339_v19  ;;  %v2669_v40 = vmul.f32 0.01, %v6530_v25 }
 0x42d   :  { %v3650_v12 = vadd.f32 %v3586_v13, %v6388_v24  ;;  %v3525_v45 = vadd.f32 %v3397_v48, %v6621_v36  ;;  %v3041_v60 = vpop.f32.mrf.mxu0  ;;  %3780 = vst.msk [vmem:[%s7336_s9 + $0x38] sm:$0xff] %vm555_vm1, %v3652_v2  ;;  %v3591_v23 = vmul.f32 0.2, %v3527_v17  ;;  %v6792_v57 = vsel %vm2604_vm2, %v6454_v53, %v2668_v47 }
 0x42e   :  { %vm3270_vm3 = vcmp.ge.f32.partialorder %v3041_v60, 0.0  ;;  %v3334_v9 = vmul.f32 0.01, %v3041_v60  ;;  %v3400_v36 = vsel %vm3272_vm0, %v4339_v19, %v3336_v56  ;;  %v2674_v56 = vmul.f32 0.01, %v6567_v62 }
 0x42f   :  { %3778 = vst.msk [vmem:[%s7336_s9 + $0x28] sm:$0xff] %vm555_vm1, %v3650_v12  ;;  %v3589_v24 = vmul.f32 0.2, %v3525_v45  ;;  %v4342_v26 = vpop.f32.mrf.mxu0  ;;  %v3655_v35 = vadd.f32 %v3591_v23, %v7564_v20  ;;  %v3528_v54 = vadd.f32 %v3400_v36, %v6626_v30  ;;  %v2675_v36 = vmul.f32 0.01, %v6637_v21 }
 0x430   :  { %v3398_v8 = vsel %vm3270_vm3, %v3041_v60, %v3334_v9  ;;  %vm3275_vm5 = vcmp.ge.f32.partialorder %v4342_v26, 0.0  ;;  %v3339_v1 = vmul.f32 0.01, %v4342_v26  ;;  %vm2608_vm12 = vcmp.ge.f32.partialorder %v6591_v49, 0.0 }
 0x431   :  { %v3653_v55 = vadd.f32 %v3589_v24, %v6399_v59  ;;  %v3526_v0 = vadd.f32 %v3398_v8, %v6629_v29  ;;  %v3054_v52 = vpop.f32.mrf.mxu0  ;;  %3783 = vst.msk [vmem:[%s7336_s9 + $0x50] sm:$0xff] %vm555_vm1, %v3655_v35  ;;  %v3592_v51 = vmul.f32 0.2, %v3528_v54  ;;  %v6797_v59 = vsel %vm2607_vm4, %v6492_v37, %v2671_v14  ;;  %v6799_v29 = vpop.f32.mrf.mxu1 }
 0x432   :  { %vm3273_vm7 = vcmp.ge.f32.partialorder %v3054_v52, 0.0  ;;  %v3337_v30 = vmul.f32 0.01, %v3054_v52  ;;  %v3403_v6 = vsel %vm3275_vm5, %v4342_v26, %v3339_v1  ;;  %v6811_v37 = vsel %vm2605_vm6, %v6530_v25, %v2669_v40 }
 0x433   :  { %3781 = vst.msk [vmem:[%s7336_s9 + $0x40] sm:$0xff] %vm555_vm1, %v3653_v55  ;;  %v3590_v4 = vmul.f32 0.2, %v3526_v0  ;;  %v4343_v13 = vpop.f32.mrf.mxu0  ;;  %v3656_v19 = vadd.f32 %v3592_v51, %v7565_v10  ;;  %v3531_v53 = vadd.f32 %v3403_v6, %v6632_v15  ;;  %v2672_v25 = vmul.f32 0.01, %v6591_v49  ;;  %v6822_v60 = vpop.f32.mrf.mxu1  ;;  %v7566_v51 = vld [vmem:[#allocation15_spill] sm:$0xff] }
 0x434   :  { %v3401_v2 = vsel %vm3273_vm7, %v3054_v52, %v3337_v30  ;;  %vm3276_vm8 = vcmp.ge.f32.partialorder %v4343_v13, 0.0  ;;  %v3340_v47 = vmul.f32 0.01, %v4343_v13  ;;  %v6842_v8 = vsel %vm2610_vm9, %v6567_v62, %v2674_v56 }
 0x435   :  { %v3654_v17 = vadd.f32 %v3590_v4, %v6402_v27  ;;  %v3529_v48 = vadd.f32 %v3401_v2, %v6635_v42  ;;  %v3057_v12 = vpop.f32.mrf.mxu0  ;;  %3784 = vst.msk [vmem:[%s7336_s9 + $0x58] sm:$0xff] %vm555_vm1, %v3656_v19  ;;  %v3595_v15 = vmul.f32 0.2, %v3531_v53  ;;  %vm2611_vm14 = vcmp.ge.f32.partialorder %v6637_v21, 0.0 }
 0x436   :  { %vm3274_vm10 = vcmp.ge.f32.partialorder %v3057_v12, 0.0  ;;  %v3338_v45 = vmul.f32 0.01, %v3057_v12  ;;  %v3404_v42 = vsel %vm3276_vm8, %v4343_v13, %v3340_v47  ;;  %v6857_v62 = vsel %vm2608_vm12, %v6591_v49, %v2672_v25 }
 0x437   :  { %3782 = vst.msk [vmem:[%s7336_s9 + $0x48] sm:$0xff] %vm555_vm1, %v3654_v17  ;;  %v3593_v27 = vmul.f32 0.2, %v3529_v48  ;;  %v4346_v23 = vpop.f32.mrf.mxu0  ;;  %v3659_v9 = vadd.f32 %v3595_v15, %v6405_v63  ;;  %v3532_v14 = vadd.f32 %v3404_v42, %v6640_v18  ;;  %v6862_v10 = vsel %vm2611_vm14, %v6637_v21, %v2675_v36 }
 0x438   :  { %v3402_v24 = vsel %vm3274_vm10, %v3057_v12, %v3338_v45  ;;  %vm3279_vm11 = vcmp.ge.f32.partialorder %v4346_v23, 0.0  ;;  %v3343_v35 = vmul.f32 0.01, %v4346_v23  ;;  %vm2609_vm2 = vcmp.ge.f32.partialorder %v6650_v7, 0.0 }
 0x439   :  { %v3657_v26 = vadd.f32 %v3593_v27, %v6408_v38  ;;  %v3530_v20 = vadd.f32 %v3402_v24, %v6662_v28  ;;  %v3070_v54 = vpop.f32.mrf.mxu0  ;;  %3787 = vst.msk [vmem:[%s7336_s9 + $0x70] sm:$0xff] %vm555_vm1, %v3659_v9  ;;  %v3596_v63 = vmul.f32 0.2, %v3532_v14  ;;  %v6845_v38 = vpop.f32.mrf.mxu1  ;;  %v2673_v49 = vmul.f32 0.01, %v6650_v7 }
 0x43a   :  { %vm3277_vm13 = vcmp.ge.f32.partialorder %v3070_v54, 0.0  ;;  %v3341_v18 = vmul.f32 0.01, %v3070_v54  ;;  %v3407_v40 = vsel %vm3279_vm11, %v4346_v23, %v3343_v35  ;;  %v2678_v47 = vmul.f32 0.01, %v6674_v46  ;;  %v7567_v23 = vld [vmem:[#allocation34_spill] sm:$0xff] }
 0x43b   :  { %3785 = vst.msk [vmem:[%s7336_s9 + $0x60] sm:$0xff] %vm555_vm1, %v3657_v26  ;;  %v3594_v28 = vmul.f32 0.2, %v3530_v20  ;;  %v4347_v55 = vpop.f32.mrf.mxu0  ;;  %v3660_v0 = vadd.f32 %v3596_v63, %v6411_v3  ;;  %v3535_v1 = vadd.f32 %v3407_v40, %v6667_v58  ;;  %v6870_v19 = vpop.f32.mrf.mxu1  ;;  %vm2614_vm4 = vcmp.ge.f32.partialorder %v6674_v46, 0.0  ;;  %v7568_v26 = vld [vmem:[#allocation35_spill] sm:$0xff] }
 0x43c   :  { %v3405_v52 = vsel %vm3277_vm13, %v3070_v54, %v3341_v18  ;;  %vm3280_vm15 = vcmp.ge.f32.partialorder %v4347_v55, 0.0  ;;  %v3344_v6 = vmul.f32 0.01, %v4347_v55  ;;  %vm2612_vm6 = vcmp.ge.f32.partialorder %v6705_v11, 0.0 }
 0x43d   :  { %v3658_v30 = vadd.f32 %v3594_v28, %v7566_v51  ;;  %v3533_v4 = vadd.f32 %v3405_v52, %v6672_v5  ;;  %v3073_v13 = vpop.f32.mrf.mxu0  ;;  %3788 = vst.msk [vmem:[%s7336_s9 + $0x78] sm:$0xff] %vm555_vm1, %v3660_v0  ;;  %v3599_v3 = vmul.f32 0.2, %v3535_v1  ;;  %v2676_v25 = vmul.f32 0.01, %v6705_v11  ;;  %v6889_v27 = vpop.f32.mrf.mxu1  ;;  %v7569_v0 = vld [vmem:[#allocation36_spill] sm:$0xff] }
 0x43e   :  { %vm3278_vm0 = vcmp.ge.f32.partialorder %v3073_v13, 0.0  ;;  %v3342_v58 = vmul.f32 0.01, %v3073_v13  ;;  %v3408_v5 = vsel %vm3280_vm15, %v4347_v55, %v3344_v6  ;;  %v6901_v36 = vsel %vm2609_vm2, %v6650_v7, %v2673_v49 }
 0x43f   :  { %3786 = vst.msk [vmem:[%s7336_s9 + $0x68] sm:$0xff] %vm555_vm1, %v3658_v30  ;;  %v3597_v21 = vmul.f32 0.2, %v3533_v4  ;;  %v4350_v53 = vpop.f32.mrf.mxu0  ;;  %v3663_v2 = vadd.f32 %v3599_v3, %v6419_v22  ;;  %v3536_v17 = vadd.f32 %v3408_v5, %v6685_v61  ;;  %v6908_v18 = vsel %vm2614_vm4, %v6674_v46, %v2678_v47  ;;  %v7570_v30 = vld [vmem:[#allocation38_spill] sm:$0xff] }
 0x440   :  { %v3406_v48 = vsel %vm3278_vm0, %v3073_v13, %v3342_v58  ;;  %vm3283_vm3 = vcmp.ge.f32.partialorder %v4350_v53, 0.0  ;;  %v3347_v45 = vmul.f32 0.01, %v4350_v53  ;;  %v6917_v28 = vsel %vm2612_vm6, %v6705_v11, %v2676_v25 }
 0x441   :  { %v3661_v12 = vadd.f32 %v3597_v21, %v6422_v44  ;;  %v3534_v15 = vadd.f32 %v3406_v48, %v6690_v43  ;;  %v3086_v56 = vpop.f32.mrf.mxu0  ;;  %3791 = vst.msk [vmem:[%s7336_s9 + $0x90] sm:$0xff] %vm555_vm1, %v3663_v2  ;;  %v3600_v22 = vmul.f32 0.2, %v3536_v17  ;;  %vm2615_vm9 = vcmp.ge.f32.partialorder %v6723_v39, 0.0  ;;  %v7571_v17 = vld [vmem:[#allocation37_spill] sm:$0xff] }
 0x442   :  { %vm3281_vm5 = vcmp.ge.f32.partialorder %v3086_v56, 0.0  ;;  %v3345_v61 = vmul.f32 0.01, %v3086_v56  ;;  %v3411_v43 = vsel %vm3283_vm3, %v4350_v53, %v3347_v45  ;;  %v2679_v55 = vmul.f32 0.01, %v6723_v39 }
 0x443   :  { %3789 = vst.msk [vmem:[%s7336_s9 + $0x80] sm:$0xff] %vm555_vm1, %v3661_v12  ;;  %v3598_v44 = vmul.f32 0.2, %v3534_v15  ;;  %v4351_v42 = vpop.f32.mrf.mxu0  ;;  %v3664_v9 = vadd.f32 %v3600_v22, %v7567_v23  ;;  %v3539_v14 = vadd.f32 %v3411_v43, %v6695_v16  ;;  %vm2613_vm11 = vcmp.ge.f32.partialorder %v6753_v32, 0.0  ;;  %v7572_v15 = vld [vmem:[#allocation39_spill] sm:$0xff] }
 0x444   :  { %v3409_v24 = vsel %vm3281_vm5, %v3086_v56, %v3345_v61  ;;  %vm3284_vm7 = vcmp.ge.f32.partialorder %v4351_v42, 0.0  ;;  %v3348_v54 = vmul.f32 0.01, %v4351_v42  ;;  %v2677_v3 = vmul.f32 0.01, %v6753_v32 }
 0x445   :  { %v3662_v20 = vadd.f32 %v3598_v44, %v7568_v26  ;;  %v3537_v35 = vadd.f32 %v3409_v24, %v6730_v41  ;;  %v3089_v63 = vpop.f32.mrf.mxu0  ;;  %3792 = vst.msk [vmem:[%s7336_s9 + $0x98] sm:$0xff] %vm555_vm1, %v3664_v9  ;;  %v3603_v16 = vmul.f32 0.2, %v3539_v14  ;;  %v6920_v41 = vpop.f32.mrf.mxu1  ;;  %vm2618_vm12 = vcmp.ge.f32.partialorder %v6772_v33, 0.0  ;;  %v7573_v9 = vld [vmem:[#allocation41_spill] sm:$0xff] }
 0x446   :  { %vm3282_vm8 = vcmp.ge.f32.partialorder %v3089_v63, 0.0  ;;  %v3346_v7 = vmul.f32 0.01, %v3089_v63  ;;  %v3412_v40 = vsel %vm3284_vm7, %v4351_v42, %v3348_v54  ;;  %v2682_v53 = vmul.f32 0.01, %v6772_v33 }
 0x447   :  { %3790 = vst.msk [vmem:[%s7336_s9 + $0x88] sm:$0xff] %vm555_vm1, %v3662_v20  ;;  %v3601_v46 = vmul.f32 0.2, %v3537_v35  ;;  %v3667_v1 = vadd.f32 %v3603_v16, %v7569_v0  ;;  %v3540_v52 = vadd.f32 %v3412_v40, %v6737_v50  ;;  %v6939_v49 = vpop.f32.mrf.mxu1  ;;  %v2680_v2 = vmul.f32 0.01, %v6799_v29  ;;  %v7575_v0 = vld [vmem:[#allocation42_spill] sm:$0xff] }
 0x448   :  { %v3410_v11 = vsel %vm3282_vm8, %v3089_v63, %v3346_v7  ;;  %v4354_v51 = vpop.f32.mrf.mxu0  ;;  %v6953_v61 = vsel %vm2615_vm9, %v6723_v39, %v2679_v55  ;;  %vm2616_vm15 = vcmp.ge.f32.partialorder %v6799_v29, 0.0  ;;  %v6964_v43 = vsel %vm2613_vm11, %v6753_v32, %v2677_v3 }
 0x449   :  { %v3665_v4 = vadd.f32 %v3601_v46, %v7570_v30  ;;  %v3538_v6 = vadd.f32 %v3410_v11, %v6746_v31  ;;  %vm3287_vm10 = vcmp.ge.f32.partialorder %v4354_v51, 0.0  ;;  %v3351_v13 = vmul.f32 0.01, %v4354_v51  ;;  %3795 = vst.msk [vmem:[%s7336_s9 + $0xb0] sm:$0xff] %vm555_vm1, %v3667_v1  ;;  %v6966_v42 = vpop.f32.mrf.mxu1 }
 0x44a   :  { %v3604_v50 = vmul.f32 0.2, %v3540_v52  ;;  %v3102_v58 = vpop.f32.mrf.mxu0  ;;  %v6982_v20 = vsel %vm2616_vm15, %v6799_v29, %v2680_v2  ;;  %vm2619_vm3 = vcmp.ge.f32.partialorder %v6822_v60, 0.0  ;;  %v2683_v46 = vmul.f32 0.01, %v6822_v60  ;;  %v7577_v2 = vld [vmem:[#allocation44_spill] sm:$0xff] }
 0x44b   :  { %3793 = vst.msk [vmem:[%s7336_s9 + $0xa0] sm:$0xff] %vm555_vm1, %v3665_v4  ;;  %v3602_v31 = vmul.f32 0.2, %v3538_v6  ;;  %v3415_v21 = vsel %vm3287_vm10, %v4354_v51, %v3351_v13  ;;  %vm3285_vm13 = vcmp.ge.f32.partialorder %v3102_v58, 0.0  ;;  %v3349_v5 = vmul.f32 0.01, %v3102_v58  ;;  %v6992_v29 = vpop.f32.mrf.mxu1 }
 0x44c   :  { %v3668_v48 = vadd.f32 %v3604_v50, %v7571_v17  ;;  %v3543_v47 = vadd.f32 %v3415_v21, %v6751_v34  ;;  %v4355_v12 = vpop.f32.mrf.mxu0  ;;  %vm2617_vm5 = vcmp.ge.f32.partialorder %v6845_v38, 0.0  ;;  %v2681_v51 = vmul.f32 0.01, %v6845_v38  ;;  %v7576_v13 = vld [vmem:[#allocation43_spill] sm:$0xff] }
 0x44d   :  { %v3666_v45 = vadd.f32 %v3602_v31, %v7572_v15  ;;  %v3413_v56 = vsel %vm3285_vm13, %v3102_v58, %v3349_v5  ;;  %vm3288_vm14 = vcmp.ge.f32.partialorder %v4355_v12, 0.0  ;;  %v3352_v22 = vmul.f32 0.01, %v4355_v12 }
 0x44e   :  { %3796 = vst.msk [vmem:[%s7336_s9 + $0xb8] sm:$0xff] %vm555_vm1, %v3668_v48  ;;  %v3607_v25 = vmul.f32 0.2, %v3543_v47  ;;  %v3541_v34 = vadd.f32 %v3413_v56, %v6792_v57  ;;  %v3105_v44 = vpop.f32.mrf.mxu0  ;;  %v6975_v57 = vsel %vm2618_vm12, %v6772_v33, %v2682_v53  ;;  %v7574_v33 = vld [vmem:[#allocation40_spill] sm:$0xff]  ;;  %v2686_v6 = vmul.f32 0.01, %v6870_v19 }
 0x44f   :  { %3794 = vst.msk [vmem:[%s7336_s9 + $0xa8] sm:$0xff] %vm555_vm1, %v3666_v45  ;;  %v3416_v39 = vsel %vm3288_vm14, %v4355_v12, %v3352_v22  ;;  %vm3286_vm0 = vcmp.ge.f32.partialorder %v3105_v44, 0.0  ;;  %v3350_v23 = vmul.f32 0.01, %v3105_v44  ;;  %vm2622_vm7 = vcmp.ge.f32.partialorder %v6870_v19, 0.0  ;;  %v7578_v56 = vld [vmem:[#allocation45_spill] sm:$0xff] }
 0x450   :  { %v3671_v14 = vadd.f32 %v3607_v25, %v7573_v9  ;;  %v3605_v24 = vmul.f32 0.2, %v3541_v34  ;;  %v3544_v32 = vadd.f32 %v3416_v39, %v6797_v59  ;;  %v4358_v26 = vpop.f32.mrf.mxu0  ;;  %v7015_v53 = vsel %vm2619_vm3, %v6822_v60, %v2683_v46 }
 0x451   :  { %v3414_v35 = vsel %vm3286_vm0, %v3105_v44, %v3350_v23  ;;  %vm3291_vm2 = vcmp.ge.f32.partialorder %v4358_v26, 0.0  ;;  %v3355_v54 = vmul.f32 0.01, %v4358_v26  ;;  %v7026_v12 = vsel %vm2617_vm5, %v6845_v38, %v2681_v51  ;;  %v7579_v23 = vld [vmem:[#allocation47_spill] sm:$0xff]  ;;  %v7582_v51 = vld [vmem:[#allocation48_spill] sm:$0xff] }
 0x452   :  { %3799 = vst.msk [vmem:[%s7336_s9 + $0xd0] sm:$0xff] %vm555_vm1, %v3671_v14  ;;  %v3669_v63 = vadd.f32 %v3605_v24, %v7574_v33  ;;  %v3608_v16 = vmul.f32 0.2, %v3544_v32  ;;  %v3542_v59 = vadd.f32 %v3414_v35, %v6811_v37  ;;  %v3118_v7 = vpop.f32.mrf.mxu0  ;;  %v7029_v45 = vsel %vm2622_vm7, %v6870_v19, %v2686_v6 }
 0x453   :  { %v3419_v40 = vsel %vm3291_vm2, %v4358_v26, %v3355_v54  ;;  %vm3289_vm4 = vcmp.ge.f32.partialorder %v3118_v7, 0.0  ;;  %v3353_v55 = vmul.f32 0.01, %v3118_v7  ;;  %vm2620_vm10 = vcmp.ge.f32.partialorder %v6889_v27, 0.0  ;;  %v7580_v54 = vld [vmem:[#allocation46_spill] sm:$0xff] }
 0x454   :  { %3797 = vst.msk [vmem:[%s7336_s9 + $0xc0] sm:$0xff] %vm555_vm1, %v3669_v63  ;;  %v3672_v1 = vadd.f32 %v3608_v16, %v7575_v0  ;;  %v3606_v52 = vmul.f32 0.2, %v3542_v59  ;;  %v3547_v37 = vadd.f32 %v3419_v40, %v6842_v8  ;;  %v4359_v11 = vpop.f32.mrf.mxu0  ;;  %v7010_v8 = vpop.f32.mrf.mxu1  ;;  %v2684_v19 = vmul.f32 0.01, %v6889_v27  ;;  %v7581_v40 = vld [vmem:[#allocation50_spill] sm:$0xff] }
 0x455   :  { %v3417_v30 = vsel %vm3289_vm4, %v3118_v7, %v3353_v55  ;;  %vm3292_vm6 = vcmp.ge.f32.partialorder %v4359_v11, 0.0  ;;  %v3356_v4 = vmul.f32 0.01, %v4359_v11  ;;  %vm2623_vm12 = vcmp.ge.f32.partialorder %v6920_v41, 0.0 }
 0x456   :  { %3800 = vst.msk [vmem:[%s7336_s9 + $0xd8] sm:$0xff] %vm555_vm1, %v3672_v1  ;;  %v3670_v3 = vadd.f32 %v3606_v52, %v7576_v13  ;;  %v3611_v50 = vmul.f32 0.2, %v3547_v37  ;;  %v3545_v58 = vadd.f32 %v3417_v30, %v6857_v62  ;;  %v3121_v31 = vpop.f32.mrf.mxu0  ;;  %v7038_v38 = vpop.f32.mrf.mxu1  ;;  %v2687_v35 = vmul.f32 0.01, %v6920_v41 }
 0x457   :  { %v3420_v21 = vsel %vm3292_vm6, %v4359_v11, %v3356_v4  ;;  %vm3290_vm8 = vcmp.ge.f32.partialorder %v3121_v31, 0.0  ;;  %v3354_v5 = vmul.f32 0.01, %v3121_v31  ;;  %vm2621_vm14 = vcmp.ge.f32.partialorder %v6939_v49, 0.0 }
 0x458   :  { %3798 = vst.msk [vmem:[%s7336_s9 + $0xc8] sm:$0xff] %vm555_vm1, %v3670_v3  ;;  %v3675_v62 = vadd.f32 %v3611_v50, %v7577_v2  ;;  %v3609_v17 = vmul.f32 0.2, %v3545_v58  ;;  %v3548_v48 = vadd.f32 %v3420_v21, %v6862_v10  ;;  %v4362_v47 = vpop.f32.mrf.mxu0  ;;  %v7057_v7 = vpop.f32.mrf.mxu1  ;;  %vm2626_vm0 = vcmp.ge.f32.partialorder %v6966_v42, 0.0  ;;  %v7583_v21 = vld [vmem:[#allocation51_spill] sm:$0xff] }
 0x459   :  { %v3418_v15 = vsel %vm3290_vm8, %v3121_v31, %v3354_v5  ;;  %vm3295_vm9 = vcmp.ge.f32.partialorder %v4362_v47, 0.0  ;;  %v3359_v60 = vmul.f32 0.01, %v4362_v47  ;;  %v2690_v37 = vmul.f32 0.01, %v6966_v42 }
 0x45a   :  { %3803 = vst.msk [vmem:[%s7336_s9 + $0xf0] sm:$0xff] %vm555_vm1, %v3675_v62  ;;  %v3673_v22 = vadd.f32 %v3609_v17, %v7578_v56  ;;  %v3612_v10 = vmul.f32 0.2, %v3548_v48  ;;  %v3546_v25 = vadd.f32 %v3418_v15, %v6901_v36  ;;  %v3134_v34 = vpop.f32.mrf.mxu0  ;;  %v2688_v11 = vmul.f32 0.01, %v6992_v29  ;;  %v7084_v58 = vpop.f32.mrf.mxu1 }
 0x45b   :  { %v3423_v44 = vsel %vm3295_vm9, %v4362_v47, %v3359_v60  ;;  %vm3293_vm11 = vcmp.ge.f32.partialorder %v3134_v34, 0.0  ;;  %v3357_v39 = vmul.f32 0.01, %v3134_v34  ;;  %v7076_v3 = vsel %vm2620_vm10, %v6889_v27, %v2684_v19 }
 0x45c   :  { %3801 = vst.msk [vmem:[%s7336_s9 + $0xe0] sm:$0xff] %vm555_vm1, %v3673_v22  ;;  %v3676_v9 = vadd.f32 %v3612_v10, %v7579_v23  ;;  %v3610_v14 = vmul.f32 0.2, %v3546_v25  ;;  %v3551_v36 = vadd.f32 %v3423_v44, %v6908_v18  ;;  %v4363_v24 = vpop.f32.mrf.mxu0  ;;  %v2685_v18 = vmul.f32 0.01, %v6939_v49  ;;  %v7110_v56 = vpop.f32.mrf.mxu1  ;;  %v7584_v22 = vld [vmem:[#allocation49_spill] sm:$0xff] }
 0x45d   :  { %v3421_v32 = vsel %vm3293_vm11, %v3134_v34, %v3357_v39  ;;  %vm3296_vm13 = vcmp.ge.f32.partialorder %v4363_v24, 0.0  ;;  %v3360_v26 = vmul.f32 0.01, %v4363_v24  ;;  %v7081_v50 = vsel %vm2623_vm12, %v6920_v41, %v2687_v35  ;;  %v7585_v39 = vld [vmem:[#allocation53_spill] sm:$0xff] }
 0x45e   :  { %3804 = vst.msk [vmem:[%s7336_s9 + $0xf8] sm:$0xff] %vm555_vm1, %v3676_v9  ;;  %v3674_v33 = vadd.f32 %v3610_v14, %v7580_v54  ;;  %v3615_v63 = vmul.f32 0.2, %v3551_v36  ;;  %v3549_v16 = vadd.f32 %v3421_v32, %v6917_v28  ;;  %v3137_v59 = vpop.f32.mrf.mxu0  ;;  %vm2624_vm3 = vcmp.ge.f32.partialorder %v6992_v29, 0.0  ;;  %v7124_v32 = vpop.f32.mrf.mxu1 }
 0x45f   :  { %v3424_v46 = vsel %vm3296_vm13, %v4363_v24, %v3360_v26  ;;  %vm3294_vm15 = vcmp.ge.f32.partialorder %v3137_v59, 0.0  ;;  %v3358_v28 = vmul.f32 0.01, %v3137_v59  ;;  %v7095_v41 = vsel %vm2621_vm14, %v6939_v49, %v2685_v18  ;;  %v7586_v26 = vld [vmem:[#allocation52_spill] sm:$0xff]  ;;  %v7587_v18 = vld [vmem:[#allocation54_spill] sm:$0xff] }
 0x460   :  { %3802 = vst.msk [vmem:[%s7336_s9 + $0xe8] sm:$0xff] %vm555_vm1, %v3674_v33  ;;  %v3679_v55 = vadd.f32 %v3615_v63, %v7581_v40  ;;  %v3613_v0 = vmul.f32 0.2, %v3549_v16  ;;  %v3552_v1 = vadd.f32 %v3424_v46, %v6953_v61  ;;  %v4366_v52 = vpop.f32.mrf.mxu0  ;;  %v7104_v47 = vsel %vm2624_vm3, %v6992_v29, %v2688_v11 }
 0x461   :  { %vm3299_vm2 = vcmp.ge.f32.partialorder %v4366_v52, 0.0  ;;  %v3422_v6 = vsel %vm3294_vm15, %v3137_v59, %v3358_v28  ;;  %v3363_v13 = vmul.f32 0.01, %v4366_v52  ;;  %vm2627_vm7 = vcmp.ge.f32.partialorder %v7010_v8, 0.0 }
 0x462   :  { %3807 = vst.msk [vmem:[%s7336_s9 + $0x110] sm:$0xff] %vm555_vm1, %v3679_v55  ;;  %v3677_v30 = vadd.f32 %v3613_v0, %v7582_v51  ;;  %v3616_v4 = vmul.f32 0.2, %v3552_v1  ;;  %v3150_v61 = vpop.f32.mrf.mxu0  ;;  %v3550_v31 = vadd.f32 %v3422_v6, %v6964_v43  ;;  %v7100_v43 = vsel %vm2626_vm0, %v6966_v42, %v2690_v37  ;;  %v7588_v37 = vld [vmem:[#allocation55_spill] sm:$0xff] }
 0x463   :  { %v3427_v27 = vsel %vm3299_vm2, %v4366_v52, %v3363_v13  ;;  %vm3297_vm4 = vcmp.ge.f32.partialorder %v3150_v61, 0.0  ;;  %v3361_v2 = vmul.f32 0.01, %v3150_v61  ;;  %vm2625_vm9 = vcmp.ge.f32.partialorder %v7038_v38, 0.0  ;;  %v7142_v52 = vpop.f32.mrf.mxu1 }
 0x464   :  { %3805 = vst.msk [vmem:[%s7336_s9 + $0x100] sm:$0xff] %vm555_vm1, %v3677_v30  ;;  %v3680_v5 = vadd.f32 %v3616_v4, %v7583_v21  ;;  %v4367_v62 = vpop.f32.mrf.mxu0  ;;  %v3614_v17 = vmul.f32 0.2, %v3550_v31  ;;  %v3555_v48 = vadd.f32 %v3427_v27, %v6975_v57  ;;  %v2691_v57 = vmul.f32 0.01, %v7010_v8  ;;  %v7589_v31 = vld [vmem:[#allocation17_spill] sm:$0xff] }
 0x465   :  { %v3425_v15 = vsel %vm3297_vm4, %v3150_v61, %v3361_v2  ;;  %vm3300_vm5 = vcmp.ge.f32.partialorder %v4367_v62, 0.0  ;;  %v3364_v49 = vmul.f32 0.01, %v4367_v62  ;;  %vm2630_vm11 = vcmp.ge.f32.partialorder %v7057_v7, 0.0 }
 0x466   :  { %3808 = vst.msk [vmem:[%s7336_s9 + $0x118] sm:$0xff] %vm555_vm1, %v3680_v5  ;;  %v3153_v60 = vpop.f32.mrf.mxu0  ;;  %v3678_v42 = vadd.f32 %v3614_v17, %v7584_v22  ;;  %v3619_v10 = vmul.f32 0.2, %v3555_v48  ;;  %v3553_v25 = vadd.f32 %v3425_v15, %v6982_v20  ;;  %v2689_v20 = vmul.f32 0.01, %v7038_v38  ;;  %v2533_v17 = vpop.f32.mrf.mxu1 }
 0x467   :  { %vm3298_vm6 = vcmp.ge.f32.partialorder %v3153_v60, 0.0  ;;  %v3428_v29 = vsel %vm3300_vm5, %v4367_v62, %v3364_v49  ;;  %v3362_v34 = vmul.f32 0.01, %v3153_v60  ;;  %v2694_v33 = vmul.f32 0.01, %v7057_v7 }
 0x468   :  { %v4370_v44 = vpop.f32.mrf.mxu0  ;;  %3806 = vst.msk [vmem:[%s7336_s9 + $0x108] sm:$0xff] %vm555_vm1, %v3678_v42  ;;  %v3683_v19 = vadd.f32 %v3619_v10, %v7585_v39  ;;  %v3617_v23 = vmul.f32 0.2, %v3553_v25  ;;  %v3556_v9 = vadd.f32 %v3428_v29, %v7015_v53  ;;  %vm2628_vm13 = vcmp.ge.f32.partialorder %v7084_v58, 0.0  ;;  %v7591_v42 = vld [vmem:[#allocation19_spill] sm:$0xff]  ;;  %v7186_v39 = vpop.f32.mrf.mxu1 }
 0x469   :  { %vm3303_vm8 = vcmp.ge.f32.partialorder %v4370_v44, 0.0  ;;  %v3426_v14 = vsel %vm3298_vm6, %v3153_v60, %v3362_v34  ;;  %v3367_v36 = vmul.f32 0.01, %v4370_v44  ;;  %v2755_v30 = vsel %vm2627_vm7, %v7010_v8, %v2691_v57 }
 0x46a   :  { %v3166_v24 = vpop.f32.mrf.mxu0  ;;  %3811 = vst.msk [vmem:[%s7336_s9 + $0x130] sm:$0xff] %vm555_vm1, %v3683_v19  ;;  %v3681_v35 = vadd.f32 %v3617_v23, %v7586_v26  ;;  %v3620_v54 = vmul.f32 0.2, %v3556_v9  ;;  %v3554_v53 = vadd.f32 %v3426_v14, %v7026_v12  ;;  %v2692_v12 = vmul.f32 0.01, %v7084_v58  ;;  %v7592_v19 = vld [vmem:[#allocation23_spill] sm:$0xff] }
 0x46b   :  { %vm3301_vm10 = vcmp.ge.f32.partialorder %v3166_v24, 0.0  ;;  %v3431_v63 = vsel %vm3303_vm8, %v4370_v44, %v3367_v36  ;;  %v3365_v16 = vmul.f32 0.01, %v3166_v24  ;;  %v2753_v4 = vsel %vm2625_vm9, %v7038_v38, %v2689_v20  ;;  %v7593_v26 = vld [vmem:[#allocation20_spill] sm:$0xff] }
 0x46c   :  { %v4371_v59 = vpop.f32.mrf.mxu0  ;;  %3809 = vst.msk [vmem:[%s7336_s9 + $0x120] sm:$0xff] %vm555_vm1, %v3681_v35  ;;  %v3684_v46 = vadd.f32 %v3620_v54, %v7587_v18  ;;  %v3618_v40 = vmul.f32 0.2, %v3554_v53  ;;  %v3559_v55 = vadd.f32 %v3431_v63, %v7029_v45  ;;  %v2758_v8 = vsel %vm2630_vm11, %v7057_v7, %v2694_v33  ;;  %v7594_v18 = vld [vmem:[#allocation21_spill] sm:$0xff] }
 0x46d   :  { %vm3304_vm12 = vcmp.ge.f32.partialorder %v4371_v59, 0.0  ;;  %v3429_v0 = vsel %vm3301_vm10, %v3166_v24, %v3365_v16  ;;  %v3368_v1 = vmul.f32 0.01, %v4371_v59  ;;  %v7168_v38 = vsel %vm2628_vm13, %v7084_v58, %v2692_v12 }
 0x46e   :  { %v3169_v28 = vpop.f32.mrf.mxu0  ;;  %3812 = vst.msk [vmem:[%s7336_s9 + $0x138] sm:$0xff] %vm555_vm1, %v3684_v46  ;;  %v3682_v11 = vadd.f32 %v3618_v40, %v7588_v37  ;;  %v3623_v51 = vmul.f32 0.2, %v3559_v55  ;;  %v3557_v45 = vadd.f32 %v3429_v0, %v7076_v3  ;;  %vm2631_vm2 = vcmp.ge.f32.partialorder %v7110_v56, 0.0 }
 0x46f   :  { %vm3302_vm14 = vcmp.ge.f32.partialorder %v3169_v28, 0.0  ;;  %v3432_v6 = vsel %vm3304_vm12, %v4371_v59, %v3368_v1  ;;  %v3366_v13 = vmul.f32 0.01, %v3169_v28  ;;  %v2695_v7 = vmul.f32 0.01, %v7110_v56  ;;  %v7201_v59 = vpop.f32.mrf.mxu1 }
 0x470   :  { %v4374_v61 = vpop.f32.mrf.mxu0  ;;  %3810 = vst.msk [vmem:[%s7336_s9 + $0x128] sm:$0xff] %vm555_vm1, %v3682_v11  ;;  %v3687_v21 = vadd.f32 %v3623_v51, %v7589_v31  ;;  %v3621_v3 = vmul.f32 0.2, %v3557_v45  ;;  %v3560_v5 = vadd.f32 %v3432_v6, %v7081_v50  ;;  %v7590_v50 = vld [vmem:[#allocation16_spill] sm:$0xff]  ;;  %vm2629_vm4 = vcmp.ge.f32.partialorder %v7124_v32, 0.0  ;;  %v7595_v11 = vld [vmem:[#allocation3_spill] sm:$0xff] }
 0x471   :  { %vm3307_vm15 = vcmp.ge.f32.partialorder %v4374_v61, 0.0  ;;  %v3430_v27 = vsel %vm3302_vm14, %v3169_v28, %v3366_v13  ;;  %v3371_v2 = vmul.f32 0.01, %v4374_v61  ;;  %vm2634_vm6 = vcmp.ge.f32.partialorder %v7142_v52, 0.0  ;;  %v7596_v31 = vld [vmem:[#allocation18_spill] sm:$0xff] }
 0x472   :  { %v3182_v62 = vpop.f32.mrf.mxu0  ;;  %3815 = vst.msk [vmem:[%s7336_s9 + $0x150] sm:$0xff] %vm555_vm1, %v3687_v21  ;;  %v3685_v48 = vadd.f32 %v3621_v3, %v7590_v50  ;;  %v3624_v15 = vmul.f32 0.2, %v3560_v5  ;;  %v3558_v49 = vadd.f32 %v3430_v27, %v7095_v41  ;;  %v2693_v41 = vmul.f32 0.01, %v7124_v32 }
 0x473   :  { %vm3305_vm0 = vcmp.ge.f32.partialorder %v3182_v62, 0.0  ;;  %v3435_v58 = vsel %vm3307_vm15, %v4374_v61, %v3371_v2  ;;  %v3369_v60 = vmul.f32 0.01, %v3182_v62  ;;  %v2698_v20 = vmul.f32 0.01, %v7142_v52  ;;  %v4320_v61 = vpop.f32.mrf.mxu1 }
 0x474   :  { %v4375_v22 = vpop.f32.mrf.mxu0  ;;  %3813 = vst.msk [vmem:[%s7336_s9 + $0x140] sm:$0xff] %vm555_vm1, %v3685_v48  ;;  %v3688_v10 = vadd.f32 %v3624_v15, %v7591_v42  ;;  %v3622_v25 = vmul.f32 0.2, %v3558_v49  ;;  %v3563_v57 = vadd.f32 %v3435_v58, %v7100_v43  ;;  %vm2632_vm8 = vcmp.ge.f32.partialorder %v2533_v17, 0.0 }
 0x475   :  { %vm3308_vm3 = vcmp.ge.f32.partialorder %v4375_v22, 0.0  ;;  %v3433_v29 = vsel %vm3305_vm0, %v3182_v62, %v3369_v60  ;;  %v3372_v34 = vmul.f32 0.01, %v4375_v22  ;;  %v2759_v12 = vsel %vm2631_vm2, %v7110_v56, %v2695_v7  ;;  %v7597_v62 = vld [vmem:[#allocation58_spill] sm:$0xff]  ;;  %v2549_v58 = vpop.f32.mrf.mxu1  ;;  %v7598_v60 = vld [vmem:[#allocation56_spill] sm:$0xff] }
 0x476   :  { %v3185_v44 = vpop.f32.mrf.mxu0  ;;  %3816 = vst.msk [vmem:[%s7336_s9 + $0x158] sm:$0xff] %vm555_vm1, %v3688_v10  ;;  %v3686_v23 = vadd.f32 %v3622_v25, %v7592_v19  ;;  %v3627_v9 = vmul.f32 0.2, %v3563_v57  ;;  %v3561_v43 = vadd.f32 %v3433_v29, %v7104_v47  ;;  %v2696_v47 = vmul.f32 0.01, %v2533_v17 }
 0x477   :  { %vm3306_vm5 = vcmp.ge.f32.partialorder %v3185_v44, 0.0  ;;  %v3436_v14 = vsel %vm3308_vm3, %v4375_v22, %v3372_v34  ;;  %v3370_v36 = vmul.f32 0.01, %v3185_v44  ;;  %v2757_v0 = vsel %vm2629_vm4, %v7124_v32, %v2693_v41  ;;  %v7599_v34 = vld [vmem:[#allocation59_spill] sm:$0xff] }
 0x478   :  { %v4378_v24 = vpop.f32.mrf.mxu0  ;;  %3814 = vst.msk [vmem:[%s7336_s9 + $0x148] sm:$0xff] %vm555_vm1, %v3686_v23  ;;  %v3691_v35 = vadd.f32 %v3627_v9, %v7593_v26  ;;  %v3625_v54 = vmul.f32 0.2, %v3561_v43  ;;  %v3564_v53 = vadd.f32 %v3436_v14, %v2755_v30  ;;  %v2762_v56 = vsel %vm2634_vm6, %v7142_v52, %v2698_v20 }
 0x479   :  { %vm3311_vm7 = vcmp.ge.f32.partialorder %v4378_v24, 0.0  ;;  %v3434_v33 = vsel %vm3306_vm5, %v3185_v44, %v3370_v36  ;;  %v3375_v63 = vmul.f32 0.01, %v4378_v24  ;;  %vm2635_vm12 = vcmp.ge.f32.partialorder %v7186_v39, 0.0  ;;  %v4321_v36 = vpop.f32.mrf.mxu1 }
 0x47a   :  { %v3198_v16 = vpop.f32.mrf.mxu0  ;;  %3819 = vst.msk [vmem:[%s7336_s9 + $0x170] sm:$0xff] %vm555_vm1, %v3691_v35  ;;  %v3689_v46 = vadd.f32 %v3625_v54, %v7594_v18  ;;  %v3628_v40 = vmul.f32 0.2, %v3564_v53  ;;  %v3562_v55 = vadd.f32 %v3434_v33, %v2753_v4  ;;  %v2760_v4 = vsel %vm2632_vm8, %v2533_v17, %v2696_v47  ;;  %v7601_v18 = vld [vmem:[#allocation60_spill] sm:$0xff] }
 0x47b   :  { %vm3309_vm9 = vcmp.ge.f32.partialorder %v3198_v16, 0.0  ;;  %v3439_v1 = vsel %vm3311_vm7, %v4378_v24, %v3375_v63  ;;  %v3373_v28 = vmul.f32 0.01, %v3198_v16  ;;  %v2699_v52 = vmul.f32 0.01, %v7186_v39  ;;  %v7600_v24 = vld [vmem:[#allocation57_spill] sm:$0xff] }
 0x47c   :  { %v4379_v37 = vpop.f32.mrf.mxu0  ;;  %3817 = vst.msk [vmem:[%s7336_s9 + $0x160] sm:$0xff] %vm555_vm1, %v3689_v46  ;;  %v3692_v51 = vadd.f32 %v3628_v40, %v7595_v11  ;;  %v3626_v45 = vmul.f32 0.2, %v3562_v55  ;;  %v3567_v30 = vadd.f32 %v3439_v1, %v2758_v8  ;;  %vm2633_vm14 = vcmp.ge.f32.partialorder %v7201_v59, 0.0 }
 0x47d   :  { %vm3312_vm10 = vcmp.ge.f32.partialorder %v4379_v37, 0.0  ;;  %v3437_v32 = vsel %vm3309_vm9, %v3198_v16, %v3373_v28  ;;  %v3376_v6 = vmul.f32 0.01, %v4379_v37  ;;  %vm2638_vm0 = vcmp.ge.f32.partialorder %v4320_v61, 0.0  ;;  %v2552_v28 = vpop.f32.mrf.mxu1 }
 0x47e   :  { %v3201_v13 = vpop.f32.mrf.mxu0  ;;  %3820 = vst.msk [vmem:[%s7336_s9 + $0x178] sm:$0xff] %vm555_vm1, %v3692_v51  ;;  %v3690_v21 = vadd.f32 %v3626_v45, %v7596_v31  ;;  %v3631_v3 = vmul.f32 0.2, %v3567_v30  ;;  %v3565_v5 = vadd.f32 %v3437_v32, %v7168_v38  ;;  %v2697_v38 = vmul.f32 0.01, %v7201_v59 }
 0x47f   :  { %vm3310_vm11 = vcmp.ge.f32.partialorder %v3201_v13, 0.0  ;;  %v3440_v8 = vsel %vm3312_vm10, %v4379_v37, %v3376_v6  ;;  %v3374_v27 = vmul.f32 0.01, %v3201_v13  ;;  %v2702_v25 = vmul.f32 0.01, %v4320_v61  ;;  %v7602_v37 = vld [vmem:[#allocation5_spill] sm:$0xff] }
 0x480   :  { %v4382_v2 = vpop.f32.mrf.mxu0  ;;  %3818 = vst.msk [vmem:[%s7336_s9 + $0x168] sm:$0xff] %vm555_vm1, %v3690_v21  ;;  %v3695_v17 = vadd.f32 %v3631_v3, %v7597_v62  ;;  %v3629_v50 = vmul.f32 0.2, %v3565_v5  ;;  %v3568_v48 = vadd.f32 %v3440_v8, %v2759_v12  ;;  %vm2636_vm3 = vcmp.ge.f32.partialorder %v2549_v58, 0.0  ;;  %v7603_v6 = vld [vmem:[#allocation4_spill] sm:$0xff]  ;;  %v7604_v8 = vld [vmem:[#allocation2_spill] sm:$0xff] }
 0x481   :  { %vm3315_vm13 = vcmp.ge.f32.partialorder %v4382_v2, 0.0  ;;  %v3438_v15 = vsel %vm3310_vm11, %v3201_v13, %v3374_v27  ;;  %v3379_v49 = vmul.f32 0.01, %v4382_v2  ;;  %v2700_v9 = vmul.f32 0.01, %v2549_v58 }
 0x482   :  { %v3214_v7 = vpop.f32.mrf.mxu0  ;;  %3823 = vst.msk [vmem:[%s7336_s9 + $0x190] sm:$0xff] %vm555_vm1, %v3695_v17  ;;  %v3693_v22 = vadd.f32 %v3629_v50, %v7598_v60  ;;  %v3632_v42 = vmul.f32 0.2, %v3568_v48  ;;  %v3566_v10 = vadd.f32 %v3438_v15, %v2757_v0  ;;  %v2763_v53 = vsel %vm2635_vm12, %v7186_v39, %v2699_v52 }
 0x483   :  { %vm3313_vm15 = vcmp.ge.f32.partialorder %v3214_v7, 0.0  ;;  %v3443_v57 = vsel %vm3315_vm13, %v4382_v2, %v3379_v49  ;;  %v3377_v41 = vmul.f32 0.01, %v3214_v7  ;;  %v2761_v47 = vsel %vm2633_vm14, %v7201_v59, %v2697_v38  ;;  %v7605_v38 = vld [vmem:[#allocation61_spill] sm:$0xff]  ;;  %v7606_v49 = vld [vmem:[#allocation7_spill] sm:$0xff] }
 0x484   :  { %v4383_v29 = vpop.f32.mrf.mxu0  ;;  %3821 = vst.msk [vmem:[%s7336_s9 + $0x180] sm:$0xff] %vm555_vm1, %v3693_v22  ;;  %v3696_v44 = vadd.f32 %v3632_v42, %v7599_v34  ;;  %v3630_v19 = vmul.f32 0.2, %v3566_v10  ;;  %v3571_v23 = vadd.f32 %v3443_v57, %v2762_v56  ;;  %v2766_v12 = vsel %vm2638_vm0, %v4320_v61, %v2702_v25  ;;  %v7607_v25 = vld [vmem:[#allocation6_spill] sm:$0xff] }
 0x485   :  { %vm3316_vm2 = vcmp.ge.f32.partialorder %v4383_v29, 0.0  ;;  %v3441_v43 = vsel %vm3313_vm15, %v3214_v7, %v3377_v41  ;;  %v3380_v20 = vmul.f32 0.01, %v4383_v29  ;;  %v2764_v39 = vsel %vm2636_vm3, %v2549_v58, %v2700_v9 }
 0x486   :  { %v3217_v14 = vpop.f32.mrf.mxu0  ;;  %3824 = vst.msk [vmem:[%s7336_s9 + $0x198] sm:$0xff] %vm555_vm1, %v3696_v44  ;;  %v3694_v26 = vadd.f32 %v3630_v19, %v7600_v24  ;;  %v3635_v35 = vmul.f32 0.2, %v3571_v23  ;;  %v3569_v54 = vadd.f32 %v3441_v43, %v2760_v4  ;;  %vm2639_vm7 = vcmp.ge.f32.partialorder %v4321_v36, 0.0  ;;  %v7608_v44 = vld [vmem:[#allocation9_spill] sm:$0xff]  ;;  %v4324_v43 = vpop.f32.mrf.mxu1 }
 0x487   :  { %vm3314_vm4 = vcmp.ge.f32.partialorder %v3217_v14, 0.0  ;;  %v3444_v33 = vsel %vm3316_vm2, %v4383_v29, %v3380_v20  ;;  %v3378_v63 = vmul.f32 0.01, %v3217_v14  ;;  %v2703_v30 = vmul.f32 0.01, %v4321_v36 }
 0x488   :  { %v4386_v16 = vpop.f32.mrf.mxu0  ;;  %3822 = vst.msk [vmem:[%s7336_s9 + $0x188] sm:$0xff] %vm555_vm1, %v3694_v26  ;;  %v3699_v46 = vadd.f32 %v3635_v35, %v7601_v18  ;;  %v3633_v40 = vmul.f32 0.2, %v3569_v54  ;;  %v3572_v55 = vadd.f32 %v3444_v33, %v2763_v53  ;;  %vm2637_vm9 = vcmp.ge.f32.partialorder %v2552_v28, 0.0  ;;  %v2565_v20 = vpop.f32.mrf.mxu1 }
 0x489   :  { %vm3319_vm5 = vcmp.ge.f32.partialorder %v4386_v16, 0.0  ;;  %v3442_v0 = vsel %vm3314_vm4, %v3217_v14, %v3378_v63  ;;  %v3383_v1 = vmul.f32 0.01, %v4386_v16  ;;  %v2701_v21 = vmul.f32 0.01, %v2552_v28 }
 0x48a   :  { %v3230_v59 = vpop.f32.mrf.mxu0  ;;  %3827 = vst.msk [vmem:[%s7336_s9 + $0x1b0] sm:$0xff] %vm555_vm1, %v3699_v46  ;;  %v3697_v11 = vadd.f32 %v3633_v40, %v7602_v37  ;;  %v3636_v51 = vmul.f32 0.2, %v3572_v55  ;;  %v3570_v45 = vadd.f32 %v3442_v0, %v2761_v47  ;;  %v2767_v17 = vsel %vm2639_vm7, %v4321_v36, %v2703_v30  ;;  %v4325_v36 = vpop.f32.mrf.mxu1  ;;  %v7609_v0 = vld [vmem:[#allocation13_spill] sm:$0xff] }
 0x48b   :  { %vm3317_vm6 = vcmp.ge.f32.partialorder %v3230_v59, 0.0  ;;  %v3447_v56 = vsel %vm3319_vm5, %v4386_v16, %v3383_v1  ;;  %v3381_v4 = vmul.f32 0.01, %v3230_v59  ;;  %v3509_v7 = vmul.f32 0.6, %v7606_v49 }
 0x48c   :  { %v4387_v32 = vpop.f32.mrf.mxu0  ;;  %3825 = vst.msk [vmem:[%s7336_s9 + $0x1a0] sm:$0xff] %vm555_vm1, %v3697_v11  ;;  %v3700_v13 = vadd.f32 %v3636_v51, %v7603_v6  ;;  %v3634_v61 = vmul.f32 0.2, %v3570_v45  ;;  %v3575_v31 = vadd.f32 %v3447_v56, %v2766_v12  ;;  %v2765_v22 = vsel %vm2637_vm9, %v2552_v28, %v2701_v21  ;;  %v2568_v53 = vpop.f32.mrf.mxu1  ;;  %v7610_v56 = vld [vmem:[#allocation8_spill] sm:$0xff]  ;;  %v7611_v21 = vld [vmem:[#allocation10_spill] sm:$0xff] }
 0x48d   :  { %vm3320_vm8 = vcmp.ge.f32.partialorder %v4387_v32, 0.0  ;;  %v3445_v3 = vsel %vm3317_vm6, %v3230_v59, %v3381_v4  ;;  %v3384_v5 = vmul.f32 0.01, %v4387_v32  ;;  %v3512_v57 = vmul.f32 0.6, %v7607_v25 }
 0x48e   :  { %v3233_v52 = vpop.f32.mrf.mxu0  ;;  %3828 = vst.msk [vmem:[%s7336_s9 + $0x1b8] sm:$0xff] %vm555_vm1, %v3700_v13  ;;  %v3698_v27 = vadd.f32 %v3634_v61, %v7604_v8  ;;  %v3639_v2 = vmul.f32 0.2, %v3575_v31  ;;  %v3573_v62 = vadd.f32 %v3445_v3, %v2764_v39  ;;  %v3510_v19 = vmul.f32 0.6, %v7608_v44 }
 0x48f   :  { %vm3318_vm10 = vcmp.ge.f32.partialorder %v3233_v52, 0.0  ;;  %v3448_v50 = vsel %vm3320_vm8, %v4387_v32, %v3384_v5  ;;  %v3382_v48 = vmul.f32 0.01, %v3233_v52  ;;  %v2706_v14 = vmul.f32 0.01, %v4324_v43 }
 0x490   :  { %3826 = vst.msk [vmem:[%s7336_s9 + $0x1a8] sm:$0xff] %vm555_vm1, %v3698_v27  ;;  %v3703_v15 = vadd.f32 %v3639_v2, %v7605_v38  ;;  %v3637_v58 = vmul.f32 0.2, %v3573_v62  ;;  %v3576_v60 = vadd.f32 %v3448_v50, %v2767_v17  ;;  %vm2642_vm11 = vcmp.ge.f32.partialorder %v4324_v43, 0.0  ;;  %v7612_v27 = vld [vmem:[#allocation11_spill] sm:$0xff] }
 0x491   :  { %v3446_v42 = vsel %vm3318_vm10, %v3233_v52, %v3382_v48  ;;  %v2704_v24 = vmul.f32 0.01, %v2565_v20  ;;  %vm2640_vm12 = vcmp.ge.f32.partialorder %v2565_v20, 0.0  ;;  %v2770_v54 = vsel %vm2642_vm11, %v4324_v43, %v2706_v14 }
 0x492   :  { %3831 = vst.msk [vmem:[%s7336_s9 + $0x1d0] sm:$0xff] %vm555_vm1, %v3703_v15  ;;  %v3701_v10 = vadd.f32 %v3637_v58, %v3509_v7  ;;  %v3640_v41 = vmul.f32 0.2, %v3576_v60  ;;  %v3574_v29 = vadd.f32 %v3446_v42, %v2765_v22  ;;  %v2707_v33 = vmul.f32 0.01, %v4325_v36 }
 0x493   :  { %v2768_v18 = vsel %vm2640_vm12, %v2565_v20, %v2704_v24  ;;  %vm2643_vm15 = vcmp.ge.f32.partialorder %v4325_v36, 0.0  ;;  %v2705_v55 = vmul.f32 0.01, %v2568_v53  ;;  %vm2641_vm2 = vcmp.ge.f32.partialorder %v2568_v53, 0.0 }
 0x494   :  { %3829 = vst.msk [vmem:[%s7336_s9 + $0x1c0] sm:$0xff] %vm555_vm1, %v3701_v10  ;;  %v3704_v34 = vadd.f32 %v3640_v41, %v3512_v57  ;;  %v3638_v23 = vmul.f32 0.2, %v3574_v29  ;;  %v3515_v1 = vmul.f32 0.6, %v7609_v0  ;;  %v2771_v11 = vsel %vm2643_vm15, %v4325_v36, %v2707_v33 }
 0x495   :  { %v3513_v4 = vmul.f32 0.6, %v7610_v56  ;;  %v2769_v13 = vsel %vm2641_vm2, %v2568_v53, %v2705_v55  ;;  %v3516_v3 = vmul.f32 0.6, %v7611_v21  ;;  %v3514_v2 = vmul.f32 0.6, %v7612_v27 }
 0x496   :  { %3832 = vst.msk [vmem:[%s7336_s9 + $0x1d8] sm:$0xff] %vm555_vm1, %v3704_v34  ;;  %v3702_v9 = vadd.f32 %v3638_v23, %v3510_v19 }
 0x498   :  { %3830 = vst.msk [vmem:[%s7336_s9 + $0x1c8] sm:$0xff] %vm555_vm1, %v3702_v9 }
 0x4d1   :  { %v4390_v26 = vpop.f32.mrf.mxu0 }
 0x4d2   :  { %vm3323_vm13 = vcmp.ge.f32.partialorder %v4390_v26, 0.0  ;;  %v3387_v35 = vmul.f32 0.01, %v4390_v26 }
 0x4d3   :  { %v3246_v47 = vpop.f32.mrf.mxu0 }
 0x4d4   :  { %v3451_v63 = vsel %vm3323_vm13, %v4390_v26, %v3387_v35  ;;  %vm3321_vm14 = vcmp.ge.f32.partialorder %v3246_v47, 0.0  ;;  %v3385_v16 = vmul.f32 0.01, %v3246_v47 }
 0x4d5   :  { %v3579_v46 = vadd.f32 %v3451_v63, %v2770_v54  ;;  %v4391_v40 = vpop.f32.mrf.mxu0 }
 0x4d6   :  { %v3449_v12 = vsel %vm3321_vm14, %v3246_v47, %v3385_v16  ;;  %vm3324_vm0 = vcmp.ge.f32.partialorder %v4391_v40, 0.0  ;;  %v3388_v39 = vmul.f32 0.01, %v4391_v40 }
 0x4d7   :  { %v3643_v59 = vmul.f32 0.2, %v3579_v46  ;;  %v3577_v28 = vadd.f32 %v3449_v12, %v2768_v18  ;;  %v3249_v37 = vpop.f32.mrf.mxu0 }
 0x4d8   :  { %v3452_v51 = vsel %vm3324_vm0, %v4391_v40, %v3388_v39  ;;  %vm3322_vm3 = vcmp.ge.f32.partialorder %v3249_v37, 0.0  ;;  %v3386_v45 = vmul.f32 0.01, %v3249_v37 }
 0x4d9   :  { %v3707_v30 = vadd.f32 %v3643_v59, %v3515_v1  ;;  %v3641_v32 = vmul.f32 0.2, %v3577_v28  ;;  %v3580_v6 = vadd.f32 %v3452_v51, %v2771_v11 }
 0x4da   :  { %v3450_v61 = vsel %vm3322_vm3, %v3249_v37, %v3386_v45 }
 0x4db   :  { %3835 = vst.msk [vmem:[%s7336_s9 + $0x1f0] sm:$0xff] %vm555_vm1, %v3707_v30  ;;  %v3705_v31 = vadd.f32 %v3641_v32, %v3513_v4  ;;  %v3644_v5 = vmul.f32 0.2, %v3580_v6  ;;  %v3578_v52 = vadd.f32 %v3450_v61, %v2769_v13 }
 0x4dd   :  { %3833 = vst.msk [vmem:[%s7336_s9 + $0x1e0] sm:$0xff] %vm555_vm1, %v3705_v31  ;;  %v3708_v8 = vadd.f32 %v3644_v5, %v3516_v3  ;;  %v3642_v62 = vmul.f32 0.2, %v3578_v52 }
 0x4df   :  { %3836 = vst.msk [vmem:[%s7336_s9 + $0x1f8] sm:$0xff] %vm555_vm1, %v3708_v8  ;;  %v3706_v17 = vadd.f32 %v3642_v62, %v3514_v2 }
 0x4e1   :  { %3834 = vst.msk [vmem:[%s7336_s9 + $0x1e8] sm:$0xff] %vm555_vm1, %v3706_v17 }

</bundles_post_ra>
